<compile_context>
chip_gen: v6e
topology: v6e:2x2x1
jax: 0.10.0
libtpu: 0.0.40
codegen_flags: <defaults>
</compile_context>

<pallas_src>
import functools

import jax
import jax.numpy as jnp
from jax.experimental import pallas as pl
from jax.experimental.pallas import tpu as pltpu


# ---------------------------------------------------------------------------
# Fused kernel: feature net + heads + losses
# ---------------------------------------------------------------------------
def ddlearn_kernel(x_ref, w1_ref, b1_ref, w2_ref, b2_ref, wfc_ref, bfc_ref,
                   wact_ref, bact_ref, waug_ref, baug_ref,
                   act1h_ref, aug1h_ref, conmask_ref,
                   actp_ref, loss_ref,
                   *, T, K1, K2, temperature, base_temperature):
    f32 = jnp.float32
    BT = x_ref.shape[0]            # 2B * T  (batch-concatenated time)
    B2 = BT // T                   # 2B
    O1 = w1_ref.shape[1]
    O2 = w2_ref.shape[1]
    NF = wfc_ref.shape[1]

    To1 = T - K1 + 1               # conv1 valid length per sample
    Tp1 = To1 // 2                 # after pool1
    To2 = Tp1 - K2 + 1             # conv2 valid length per sample
    Tp2 = To2 // 2                 # after pool2

    x = x_ref[...]                 # (2B*T, C)

    # ---- conv1: im2col over the concatenated time axis, one MXU dot --------
    L1 = BT - K1 + 1
    slab1 = jnp.concatenate([x[k:k + L1, :] for k in range(K1)], axis=1)   # (L1, K1*C)
    c1 = jnp.dot(slab1, w1_ref[...], preferred_element_type=f32) + b1_ref[...]
    c1 = jnp.maximum(c1, 0.0)                                              # (L1, O1)

    # ---- MaxPool(1,2)/2 + drop cross-sample windows:
    #      adjacent-pair max, then a constant 0/1 row-selection matmul.
    M1 = L1 - 1
    m1 = jnp.maximum(c1[0:M1, :], c1[1:L1, :])                             # (M1, O1)
    R1 = B2 * Tp1
    row1 = jax.lax.broadcasted_iota(jnp.int32, (R1, M1), 0)
    col1 = jax.lax.broadcasted_iota(jnp.int32, (R1, M1), 1)
    # b = row1 // Tp1 without integer division: sum of threshold compares.
    b_idx = jnp.zeros((R1, M1), jnp.int32)
    for k in range(1, B2):
        b_idx = b_idx + jnp.where(row1 >= k * Tp1, 1, 0).astype(jnp.int32)
    tgt1 = 2 * row1 + (T - 2 * Tp1) * b_idx            # = b*T + 2*p
    sel1 = jnp.where(col1 == tgt1, 1.0, 0.0).astype(f32)
    h1 = jnp.dot(sel1, m1, preferred_element_type=f32)                     # (2B*Tp1, O1)

    # ---- conv2: same im2col trick on the pooled, batch-concatenated rows ---
    L2 = R1 - K2 + 1
    slab2 = jnp.concatenate([h1[k:k + L2, :] for k in range(K2)], axis=1)  # (L2, K2*O1)
    c2 = jnp.dot(slab2, w2_ref[...], preferred_element_type=f32) + b2_ref[...]
    c2 = jnp.maximum(c2, 0.0)                                              # (L2, O2)

    # ---- MaxPool2 + flatten + fc(+ReLU). The flatten is folded into the fc
    #      weights (rows stored p-major, channel-minor): one selection matmul
    #      + one fc matmul per pooled time position p (Tp2 tiny, static).
    M2 = L2 - 1
    m2 = jnp.maximum(c2[0:M2, :], c2[1:L2, :])                             # (M2, O2)
    wfc = wfc_ref[...]
    rowb = jax.lax.broadcasted_iota(jnp.int32, (B2, M2), 0)
    colb = jax.lax.broadcasted_iota(jnp.int32, (B2, M2), 1)
    feat = jnp.zeros((B2, NF), f32) + bfc_ref[...]
    for p in range(Tp2):
        selp = jnp.where(colb == rowb * Tp1 + 2 * p, 1.0, 0.0).astype(f32)  # (B2, M2)
        rows = jnp.dot(selp, m2, preferred_element_type=f32)                # (B2, O2)
        feat = feat + jnp.dot(rows, wfc[p * O2:(p + 1) * O2, :],
                              preferred_element_type=f32)
    feature = jnp.maximum(feat, 0.0)                                        # (2B, NF)

    # ---- act / aug heads ----------------------------------------------------
    act_logits = jnp.dot(feature, wact_ref[...], preferred_element_type=f32) + bact_ref[...]
    aug_logits = jnp.dot(feature, waug_ref[...], preferred_element_type=f32) + baug_ref[...]
    actp_ref[...] = act_logits

    # ---- mean cross-entropy (== nn.CrossEntropyLoss) ------------------------
    def mean_ce(logits, onehot):
        z = logits - jnp.max(logits, axis=1, keepdims=True)
        logp = z - jnp.log(jnp.sum(jnp.exp(z), axis=1, keepdims=True))
        nll = -jnp.sum(onehot * logp, axis=1, keepdims=True)                # (2B, 1)
        return jnp.sum(nll, axis=0, keepdims=True) * (1.0 / B2)             # (1, 1)

    loss_c = mean_ce(act_logits, act1h_ref[...])
    loss_ss = mean_ce(aug_logits, aug1h_ref[...])

    # ---- SupConLoss_m (contrast_mode='all') on cat(feature_ori, feature_aug)
    sim = jax.lax.dot_general(feature, feature, (((1,), (1,)), ((), ())),
                              preferred_element_type=f32) / temperature
    logits = sim - jnp.max(sim, axis=1, keepdims=True)
    rr = jax.lax.broadcasted_iota(jnp.int32, (B2, B2), 0)
    cc = jax.lax.broadcasted_iota(jnp.int32, (B2, B2), 1)
    logits_mask = jnp.where(rr == cc, 0.0, 1.0).astype(f32)                 # drop self
    pos_mask = conmask_ref[...] * logits_mask
    exp_logits = jnp.exp(logits) * logits_mask
    log_prob = logits - jnp.log(jnp.sum(exp_logits, axis=1, keepdims=True))
    denom = jnp.maximum(jnp.sum(pos_mask, axis=1, keepdims=True), 1.0)      # 0/0 guard
    mean_log_prob_pos = jnp.sum(pos_mask * log_prob, axis=1, keepdims=True) / denom
    con = -(temperature / base_temperature) * mean_log_prob_pos             # (2B, 1)
    con_loss = jnp.sum(con, axis=0, keepdims=True) * (1.0 / B2)             # (1, 1)

    # ---- pack the three scalars into one lane-dense row ---------------------
    lane = jax.lax.broadcasted_iota(jnp.int32, (1, loss_ref.shape[1]), 1)
    loss_ref[...] = jnp.where(lane == 0, loss_c,
                    jnp.where(lane == 1, loss_ss,
                    jnp.where(lane == 2, con_loss, 0.0)))


# ---------------------------------------------------------------------------
# Wrapper (only cheap label / weight reshaping glue stays in plain JAX)
# ---------------------------------------------------------------------------
def _full_spec(shape):
    zeros = (0,) * len(shape)
    return pl.BlockSpec(shape, lambda i: zeros)


def ddlearn_forward(params, x_ori, x_onlyaug, labels, n_act_class, n_aug_class,
                    temperature=0.07, base_temperature=0.07):
    actlabel_ori, actlabel_aug, auglabel_ori, auglabel_aug = labels
    B, T, C = x_ori.shape
    B2 = 2 * B

    K1, _, O1 = params["conv1_w"].shape
    K2, _, O2 = params["conv2_w"].shape

    # single feature pass over the concatenated batch; (2B, T, C) -> (2B*T, C)
    x2d = jnp.concatenate([x_ori, x_onlyaug], axis=0).reshape(B2 * T, C)

    w1 = params["conv1_w"].reshape(K1 * C, O1)          # k-major, channel-minor
    w2 = params["conv2_w"].reshape(K2 * O1, O2)

    actlabel_true = jnp.concatenate([actlabel_ori, actlabel_aug], axis=0)
    auglabel_true = jnp.concatenate([auglabel_ori, auglabel_aug], axis=0)
    act_onehot = jax.nn.one_hot(actlabel_true, n_act_class, dtype=jnp.float32)
    aug_onehot = jax.nn.one_hot(auglabel_true, n_aug_class, dtype=jnp.float32)
    con_mask = (actlabel_true[:, None] == actlabel_true[None, :]).astype(jnp.float32)

    kern = functools.partial(ddlearn_kernel, T=T, K1=K1, K2=K2,
                             temperature=temperature,
                             base_temperature=base_temperature)

    inputs = (x2d, w1, params["conv1_b"], w2, params["conv2_b"],
              params["fc_w"], params["fc_b"],
              params["act_w"], params["act_b"],
              params["aug_w"], params["aug_b"],
              act_onehot, aug_onehot, con_mask)

    actlabel_p, losses = pl.pallas_call(
        kern,
        out_shape=(jax.ShapeDtypeStruct((B2, n_act_class), jnp.float32),
                   jax.ShapeDtypeStruct((1, 128), jnp.float32)),
        grid=(1,),
        in_specs=[_full_spec(a.shape) for a in inputs],
        out_specs=(_full_spec((B2, n_act_class)), _full_spec((1, 128))),
        compiler_params=pltpu.CompilerParams(dimension_semantics=("arbitrary",)),
    )(*inputs)

    loss_c = losses[0, 0]
    loss_selfsup = losses[0, 1]
    con_loss = losses[0, 2]
    loss_dp = jnp.zeros((1,), jnp.float32)   # dp == 'no' branch of the reference
    return actlabel_p, loss_c, loss_selfsup, loss_dp, con_loss


# ---------------------------------------------------------------------------
# Main
# ---------------------------------------------------------------------------
if __name__ == "__main__":
    key = jax.random.PRNGKey(0)

    B, T, C_IN = 4, 32, 6
    N_FEATURE, N_ACT, N_AUG = 32, 4, 3
    K1, O1 = 5, 16
    K2, O2 = 5, 32
    T1 = (T - K1 + 1) // 2           # after conv1 + pool
    T2 = (T1 - K2 + 1) // 2          # after conv2 + pool
    FC_IN = O2 * T2

    ks = jax.random.split(key, 16)

    def init(k, shape, fan_in):
        return jax.random.normal(k, shape, jnp.float32) / jnp.sqrt(float(fan_in))

    params = {
        "conv1_w": init(ks[0], (K1, C_IN, O1), K1 * C_IN),
        "conv1_b": jnp.zeros((1, O1), jnp.float32),
        "conv2_w": init(ks[1], (K2, O1, O2), K2 * O1),
        "conv2_b": jnp.zeros((1, O2), jnp.float32),
        # fc_w rows stored (pooled-time p major, channel minor): the PyTorch
        # NCHW flatten permutation is absorbed into the weight matrix at init,
        # so no runtime transpose/reshape is needed.
        "fc_w": init(ks[2], (FC_IN, N_FEATURE), FC_IN),
        "fc_b": jnp.zeros((1, N_FEATURE), jnp.float32),
        "act_w": init(ks[3], (N_FEATURE, N_ACT), N_FEATURE),
        "act_b": jnp.zeros((1, N_ACT), jnp.float32),
        "aug_w": init(ks[4], (N_FEATURE, N_AUG), N_FEATURE),
        "aug_b": jnp.zeros((1, N_AUG), jnp.float32),
    }

    x_ori = jax.random.normal(ks[5], (B, T, C_IN), jnp.float32)
    x_onlyaug = x_ori + 0.1 * jax.random.normal(ks[6], (B, T, C_IN), jnp.float32)

    actlabel_ori = jax.random.randint(ks[7], (B,), 0, N_ACT, dtype=jnp.int32)
    actlabel_aug = actlabel_ori                     # augmentation keeps activity label
    auglabel_ori = jnp.zeros((B,), jnp.int32)       # original == aug class 0
    auglabel_aug = jax.random.randint(ks[8], (B,), 0, N_AUG, dtype=jnp.int32)
    labels = (actlabel_ori, actlabel_aug, auglabel_ori, auglabel_aug)

    out = ddlearn_forward(params, x_ori, x_onlyaug, labels, N_ACT, N_AUG)
    out = jax.block_until_ready(out)

    actp, loss_c, loss_ss, loss_dp, con_loss = out
    ok = (bool(jnp.all(jnp.isfinite(actp)))
          and bool(jnp.isfinite(loss_c))
          and bool(jnp.isfinite(loss_ss))
          and bool(jnp.isfinite(con_loss)))
    assert ok, "non-finite output from fused DDLearn kernel"
    print("KERNEL_OK")
</pallas_src>

<mosaic_0001>
module attributes {stable_mosaic.version = 11 : i64} {
  func.func @ddlearn_kernel(%arg0: i32, %arg1: memref<256x6xf32, #tpu.memory_space<vmem>>, %arg2: memref<30x16xf32, #tpu.memory_space<vmem>>, %arg3: memref<1x16xf32, #tpu.memory_space<vmem>>, %arg4: memref<80x32xf32, #tpu.memory_space<vmem>>, %arg5: memref<1x32xf32, #tpu.memory_space<vmem>>, %arg6: memref<160x32xf32, #tpu.memory_space<vmem>>, %arg7: memref<1x32xf32, #tpu.memory_space<vmem>>, %arg8: memref<32x4xf32, #tpu.memory_space<vmem>>, %arg9: memref<1x4xf32, #tpu.memory_space<vmem>>, %arg10: memref<32x3xf32, #tpu.memory_space<vmem>>, %arg11: memref<1x3xf32, #tpu.memory_space<vmem>>, %arg12: memref<8x4xf32, #tpu.memory_space<vmem>>, %arg13: memref<8x3xf32, #tpu.memory_space<vmem>>, %arg14: memref<8x8xf32, #tpu.memory_space<vmem>>, %arg15: memref<8x4xf32, #tpu.memory_space<vmem>>, %arg16: memref<1x128xf32, #tpu.memory_space<vmem>>) attributes {dimension_semantics = [#tpu.dimension_semantics<arbitrary>], iteration_bounds = array<i64: 1>, scalar_prefetch = 0 : i64, scratch_operands = 0 : i64, tpu.core_type = #tpu.core_type<tc>, window_params = [{pipeline_mode = #tpu.pipeline_mode<synchronous>, transform_indices = @transform_0, window_bounds = array<i64: 256, 6>}, {pipeline_mode = #tpu.pipeline_mode<synchronous>, transform_indices = @transform_1, window_bounds = array<i64: 30, 16>}, {pipeline_mode = #tpu.pipeline_mode<synchronous>, transform_indices = @transform_2, window_bounds = array<i64: 1, 16>}, {pipeline_mode = #tpu.pipeline_mode<synchronous>, transform_indices = @transform_3, window_bounds = array<i64: 80, 32>}, {pipeline_mode = #tpu.pipeline_mode<synchronous>, transform_indices = @transform_4, window_bounds = array<i64: 1, 32>}, {pipeline_mode = #tpu.pipeline_mode<synchronous>, transform_indices = @transform_5, window_bounds = array<i64: 160, 32>}, {pipeline_mode = #tpu.pipeline_mode<synchronous>, transform_indices = @transform_6, window_bounds = array<i64: 1, 32>}, {pipeline_mode = #tpu.pipeline_mode<synchronous>, transform_indices = @transform_7, window_bounds = array<i64: 32, 4>}, {pipeline_mode = #tpu.pipeline_mode<synchronous>, transform_indices = @transform_8, window_bounds = array<i64: 1, 4>}, {pipeline_mode = #tpu.pipeline_mode<synchronous>, transform_indices = @transform_9, window_bounds = array<i64: 32, 3>}, {pipeline_mode = #tpu.pipeline_mode<synchronous>, transform_indices = @transform_10, window_bounds = array<i64: 1, 3>}, {pipeline_mode = #tpu.pipeline_mode<synchronous>, transform_indices = @transform_11, window_bounds = array<i64: 8, 4>}, {pipeline_mode = #tpu.pipeline_mode<synchronous>, transform_indices = @transform_12, window_bounds = array<i64: 8, 3>}, {pipeline_mode = #tpu.pipeline_mode<synchronous>, transform_indices = @transform_13, window_bounds = array<i64: 8, 8>}, {pipeline_mode = #tpu.pipeline_mode<synchronous>, transform_indices = @transform_14, window_bounds = array<i64: 8, 4>}, {pipeline_mode = #tpu.pipeline_mode<synchronous>, transform_indices = @transform_15, window_bounds = array<i64: 1, 128>}]} {
    %c0 = arith.constant 0 : index
    %c0_0 = arith.constant 0 : index
    %0 = vector.load %arg1[%c0, %c0_0] : memref<256x6xf32, #tpu.memory_space<vmem>>, vector<256x6xf32>
    %1 = vector.extract_strided_slice %0 {offsets = [0, 0], sizes = [252, 6], strides = [1, 1]} : vector<256x6xf32> to vector<252x6xf32>
    %2 = vector.extract_strided_slice %0 {offsets = [1, 0], sizes = [252, 6], strides = [1, 1]} : vector<256x6xf32> to vector<252x6xf32>
    %3 = vector.extract_strided_slice %0 {offsets = [2, 0], sizes = [252, 6], strides = [1, 1]} : vector<256x6xf32> to vector<252x6xf32>
    %4 = vector.extract_strided_slice %0 {offsets = [3, 0], sizes = [252, 6], strides = [1, 1]} : vector<256x6xf32> to vector<252x6xf32>
    %5 = vector.extract_strided_slice %0 {offsets = [4, 0], sizes = [252, 6], strides = [1, 1]} : vector<256x6xf32> to vector<252x6xf32>
    %6 = tpu.concatenate %1, %2, %3, %4, %5 in 1 : vector<252x6xf32>, vector<252x6xf32>, vector<252x6xf32>, vector<252x6xf32>, vector<252x6xf32> -> vector<252x30xf32>
    %c0_1 = arith.constant 0 : index
    %c0_2 = arith.constant 0 : index
    %7 = vector.load %arg2[%c0_1, %c0_2] : memref<30x16xf32, #tpu.memory_space<vmem>>, vector<30x16xf32>
    %cst = arith.constant dense<0.000000e+00> : vector<252x16xf32>
    %8 = tpu.matmul %6, %7, %cst {dimension_numbers = #tpu.dot_dimension_numbers<[1], [0], [0], [1], [0, 0, 1, 1], [], []>} : vector<252x30xf32>, vector<30x16xf32>, vector<252x16xf32> -> vector<252x16xf32>
    %c0_3 = arith.constant 0 : index
    %c0_4 = arith.constant 0 : index
    %9 = vector.load %arg3[%c0_3, %c0_4] : memref<1x16xf32, #tpu.memory_space<vmem>>, vector<1x16xf32>
    %10 = vector.broadcast %9 : vector<1x16xf32> to vector<252x16xf32>
    %11 = arith.addf %8, %10 : vector<252x16xf32>
    %cst_5 = arith.constant 0.000000e+00 : f32
    %12 = vector.broadcast %cst_5 : f32 to vector<252x16xf32>
    %13 = arith.maximumf %11, %12 : vector<252x16xf32>
    %14 = vector.extract_strided_slice %13 {offsets = [0, 0], sizes = [251, 16], strides = [1, 1]} : vector<252x16xf32> to vector<251x16xf32>
    %15 = vector.extract_strided_slice %13 {offsets = [1, 0], sizes = [251, 16], strides = [1, 1]} : vector<252x16xf32> to vector<251x16xf32>
    %16 = arith.maximumf %14, %15 : vector<251x16xf32>
    %17 = tpu.iota {dimensions = array<i32: 0>} : vector<112x251xi32>
    %18 = tpu.iota {dimensions = array<i32: 1>} : vector<112x251xi32>
    %c0_i32 = arith.constant 0 : i32
    %19 = vector.broadcast %c0_i32 : i32 to vector<112x251xi32>
    %c14_i32 = arith.constant 14 : i32
    %20 = vector.broadcast %c14_i32 : i32 to vector<112x251xi32>
    %21 = arith.cmpi sge, %17, %20 : vector<112x251xi32>
    %c1_i32 = arith.constant 1 : i32
    %c0_i32_6 = arith.constant 0 : i32
    %22 = vector.broadcast %c1_i32 : i32 to vector<112x251xi32>
    %23 = vector.broadcast %c0_i32_6 : i32 to vector<112x251xi32>
    %24 = arith.select %21, %22, %23 : vector<112x251xi1>, vector<112x251xi32>
    %25 = arith.addi %19, %24 : vector<112x251xi32>
    %c28_i32 = arith.constant 28 : i32
    %26 = vector.broadcast %c28_i32 : i32 to vector<112x251xi32>
    %27 = arith.cmpi sge, %17, %26 : vector<112x251xi32>
    %c1_i32_7 = arith.constant 1 : i32
    %c0_i32_8 = arith.constant 0 : i32
    %28 = vector.broadcast %c1_i32_7 : i32 to vector<112x251xi32>
    %29 = vector.broadcast %c0_i32_8 : i32 to vector<112x251xi32>
    %30 = arith.select %27, %28, %29 : vector<112x251xi1>, vector<112x251xi32>
    %31 = arith.addi %25, %30 : vector<112x251xi32>
    %c42_i32 = arith.constant 42 : i32
    %32 = vector.broadcast %c42_i32 : i32 to vector<112x251xi32>
    %33 = arith.cmpi sge, %17, %32 : vector<112x251xi32>
    %c1_i32_9 = arith.constant 1 : i32
    %c0_i32_10 = arith.constant 0 : i32
    %34 = vector.broadcast %c1_i32_9 : i32 to vector<112x251xi32>
    %35 = vector.broadcast %c0_i32_10 : i32 to vector<112x251xi32>
    %36 = arith.select %33, %34, %35 : vector<112x251xi1>, vector<112x251xi32>
    %37 = arith.addi %31, %36 : vector<112x251xi32>
    %c56_i32 = arith.constant 56 : i32
    %38 = vector.broadcast %c56_i32 : i32 to vector<112x251xi32>
    %39 = arith.cmpi sge, %17, %38 : vector<112x251xi32>
    %c1_i32_11 = arith.constant 1 : i32
    %c0_i32_12 = arith.constant 0 : i32
    %40 = vector.broadcast %c1_i32_11 : i32 to vector<112x251xi32>
    %41 = vector.broadcast %c0_i32_12 : i32 to vector<112x251xi32>
    %42 = arith.select %39, %40, %41 : vector<112x251xi1>, vector<112x251xi32>
    %43 = arith.addi %37, %42 : vector<112x251xi32>
    %c70_i32 = arith.constant 70 : i32
    %44 = vector.broadcast %c70_i32 : i32 to vector<112x251xi32>
    %45 = arith.cmpi sge, %17, %44 : vector<112x251xi32>
    %c1_i32_13 = arith.constant 1 : i32
    %c0_i32_14 = arith.constant 0 : i32
    %46 = vector.broadcast %c1_i32_13 : i32 to vector<112x251xi32>
    %47 = vector.broadcast %c0_i32_14 : i32 to vector<112x251xi32>
    %48 = arith.select %45, %46, %47 : vector<112x251xi1>, vector<112x251xi32>
    %49 = arith.addi %43, %48 : vector<112x251xi32>
    %c84_i32 = arith.constant 84 : i32
    %50 = vector.broadcast %c84_i32 : i32 to vector<112x251xi32>
    %51 = arith.cmpi sge, %17, %50 : vector<112x251xi32>
    %c1_i32_15 = arith.constant 1 : i32
    %c0_i32_16 = arith.constant 0 : i32
    %52 = vector.broadcast %c1_i32_15 : i32 to vector<112x251xi32>
    %53 = vector.broadcast %c0_i32_16 : i32 to vector<112x251xi32>
    %54 = arith.select %51, %52, %53 : vector<112x251xi1>, vector<112x251xi32>
    %55 = arith.addi %49, %54 : vector<112x251xi32>
    %c98_i32 = arith.constant 98 : i32
    %56 = vector.broadcast %c98_i32 : i32 to vector<112x251xi32>
    %57 = arith.cmpi sge, %17, %56 : vector<112x251xi32>
    %c1_i32_17 = arith.constant 1 : i32
    %c0_i32_18 = arith.constant 0 : i32
    %58 = vector.broadcast %c1_i32_17 : i32 to vector<112x251xi32>
    %59 = vector.broadcast %c0_i32_18 : i32 to vector<112x251xi32>
    %60 = arith.select %57, %58, %59 : vector<112x251xi1>, vector<112x251xi32>
    %61 = arith.addi %55, %60 : vector<112x251xi32>
    %c2_i32 = arith.constant 2 : i32
    %62 = vector.broadcast %c2_i32 : i32 to vector<112x251xi32>
    %63 = arith.muli %62, %17 : vector<112x251xi32>
    %c4_i32 = arith.constant 4 : i32
    %64 = vector.broadcast %c4_i32 : i32 to vector<112x251xi32>
    %65 = arith.muli %64, %61 : vector<112x251xi32>
    %66 = arith.addi %63, %65 : vector<112x251xi32>
    %67 = arith.cmpi eq, %18, %66 : vector<112x251xi32>
    %cst_19 = arith.constant 1.000000e+00 : f32
    %cst_20 = arith.constant 0.000000e+00 : f32
    %68 = vector.broadcast %cst_19 : f32 to vector<112x251xf32>
    %69 = vector.broadcast %cst_20 : f32 to vector<112x251xf32>
    %70 = arith.select %67, %68, %69 : vector<112x251xi1>, vector<112x251xf32>
    %cst_21 = arith.constant dense<0.000000e+00> : vector<112x16xf32>
    %71 = tpu.matmul %70, %16, %cst_21 {dimension_numbers = #tpu.dot_dimension_numbers<[1], [0], [0], [1], [0, 0, 1, 1], [], []>} : vector<112x251xf32>, vector<251x16xf32>, vector<112x16xf32> -> vector<112x16xf32>
    %72 = vector.extract_strided_slice %71 {offsets = [0, 0], sizes = [108, 16], strides = [1, 1]} : vector<112x16xf32> to vector<108x16xf32>
    %73 = vector.extract_strided_slice %71 {offsets = [1, 0], sizes = [108, 16], strides = [1, 1]} : vector<112x16xf32> to vector<108x16xf32>
    %74 = vector.extract_strided_slice %71 {offsets = [2, 0], sizes = [108, 16], strides = [1, 1]} : vector<112x16xf32> to vector<108x16xf32>
    %75 = vector.extract_strided_slice %71 {offsets = [3, 0], sizes = [108, 16], strides = [1, 1]} : vector<112x16xf32> to vector<108x16xf32>
    %76 = vector.extract_strided_slice %71 {offsets = [4, 0], sizes = [108, 16], strides = [1, 1]} : vector<112x16xf32> to vector<108x16xf32>
    %77 = tpu.concatenate %72, %73, %74, %75, %76 in 1 : vector<108x16xf32>, vector<108x16xf32>, vector<108x16xf32>, vector<108x16xf32>, vector<108x16xf32> -> vector<108x80xf32>
    %c0_22 = arith.constant 0 : index
    %c0_23 = arith.constant 0 : index
    %78 = vector.load %arg4[%c0_22, %c0_23] : memref<80x32xf32, #tpu.memory_space<vmem>>, vector<80x32xf32>
    %cst_24 = arith.constant dense<0.000000e+00> : vector<108x32xf32>
    %79 = tpu.matmul %77, %78, %cst_24 {dimension_numbers = #tpu.dot_dimension_numbers<[1], [0], [0], [1], [0, 0, 1, 1], [], []>} : vector<108x80xf32>, vector<80x32xf32>, vector<108x32xf32> -> vector<108x32xf32>
    %c0_25 = arith.constant 0 : index
    %c0_26 = arith.constant 0 : index
    %80 = vector.load %arg5[%c0_25, %c0_26] : memref<1x32xf32, #tpu.memory_space<vmem>>, vector<1x32xf32>
    %81 = vector.broadcast %80 : vector<1x32xf32> to vector<108x32xf32>
    %82 = arith.addf %79, %81 : vector<108x32xf32>
    %cst_27 = arith.constant 0.000000e+00 : f32
    %83 = vector.broadcast %cst_27 : f32 to vector<108x32xf32>
    %84 = arith.maximumf %82, %83 : vector<108x32xf32>
    %85 = vector.extract_strided_slice %84 {offsets = [0, 0], sizes = [107, 32], strides = [1, 1]} : vector<108x32xf32> to vector<107x32xf32>
    %86 = vector.extract_strided_slice %84 {offsets = [1, 0], sizes = [107, 32], strides = [1, 1]} : vector<108x32xf32> to vector<107x32xf32>
    %87 = arith.maximumf %85, %86 : vector<107x32xf32>
    %c0_28 = arith.constant 0 : index
    %c0_29 = arith.constant 0 : index
    %88 = vector.load %arg6[%c0_28, %c0_29] : memref<160x32xf32, #tpu.memory_space<vmem>>, vector<160x32xf32>
    %89 = tpu.iota {dimensions = array<i32: 0>} : vector<8x107xi32>
    %90 = tpu.iota {dimensions = array<i32: 1>} : vector<8x107xi32>
    %cst_30 = arith.constant 0.000000e+00 : f32
    %91 = vector.broadcast %cst_30 : f32 to vector<8x32xf32>
    %c0_31 = arith.constant 0 : index
    %c0_32 = arith.constant 0 : index
    %92 = vector.load %arg7[%c0_31, %c0_32] : memref<1x32xf32, #tpu.memory_space<vmem>>, vector<1x32xf32>
    %93 = vector.broadcast %92 : vector<1x32xf32> to vector<8x32xf32>
    %94 = arith.addf %91, %93 : vector<8x32xf32>
    %c14_i32_33 = arith.constant 14 : i32
    %95 = vector.broadcast %c14_i32_33 : i32 to vector<8x107xi32>
    %96 = arith.muli %89, %95 : vector<8x107xi32>
    %c0_i32_34 = arith.constant 0 : i32
    %97 = vector.broadcast %c0_i32_34 : i32 to vector<8x107xi32>
    %98 = arith.addi %96, %97 : vector<8x107xi32>
    %99 = arith.cmpi eq, %90, %98 : vector<8x107xi32>
    %cst_35 = arith.constant 1.000000e+00 : f32
    %cst_36 = arith.constant 0.000000e+00 : f32
    %100 = vector.broadcast %cst_35 : f32 to vector<8x107xf32>
    %101 = vector.broadcast %cst_36 : f32 to vector<8x107xf32>
    %102 = arith.select %99, %100, %101 : vector<8x107xi1>, vector<8x107xf32>
    %cst_37 = arith.constant dense<0.000000e+00> : vector<8x32xf32>
    %103 = tpu.matmul %102, %87, %cst_37 {dimension_numbers = #tpu.dot_dimension_numbers<[1], [0], [0], [1], [0, 0, 1, 1], [], []>} : vector<8x107xf32>, vector<107x32xf32>, vector<8x32xf32> -> vector<8x32xf32>
    %104 = vector.extract_strided_slice %88 {offsets = [0, 0], sizes = [32, 32], strides = [1, 1]} : vector<160x32xf32> to vector<32x32xf32>
    %cst_38 = arith.constant dense<0.000000e+00> : vector<8x32xf32>
    %105 = tpu.matmul %103, %104, %cst_38 {dimension_numbers = #tpu.dot_dimension_numbers<[1], [0], [0], [1], [0, 0, 1, 1], [], []>} : vector<8x32xf32>, vector<32x32xf32>, vector<8x32xf32> -> vector<8x32xf32>
    %106 = arith.addf %94, %105 : vector<8x32xf32>
    %c14_i32_39 = arith.constant 14 : i32
    %107 = vector.broadcast %c14_i32_39 : i32 to vector<8x107xi32>
    %108 = arith.muli %89, %107 : vector<8x107xi32>
    %c2_i32_40 = arith.constant 2 : i32
    %109 = vector.broadcast %c2_i32_40 : i32 to vector<8x107xi32>
    %110 = arith.addi %108, %109 : vector<8x107xi32>
    %111 = arith.cmpi eq, %90, %110 : vector<8x107xi32>
    %cst_41 = arith.constant 1.000000e+00 : f32
    %cst_42 = arith.constant 0.000000e+00 : f32
    %112 = vector.broadcast %cst_41 : f32 to vector<8x107xf32>
    %113 = vector.broadcast %cst_42 : f32 to vector<8x107xf32>
    %114 = arith.select %111, %112, %113 : vector<8x107xi1>, vector<8x107xf32>
    %cst_43 = arith.constant dense<0.000000e+00> : vector<8x32xf32>
    %115 = tpu.matmul %114, %87, %cst_43 {dimension_numbers = #tpu.dot_dimension_numbers<[1], [0], [0], [1], [0, 0, 1, 1], [], []>} : vector<8x107xf32>, vector<107x32xf32>, vector<8x32xf32> -> vector<8x32xf32>
    %116 = vector.extract_strided_slice %88 {offsets = [32, 0], sizes = [32, 32], strides = [1, 1]} : vector<160x32xf32> to vector<32x32xf32>
    %cst_44 = arith.constant dense<0.000000e+00> : vector<8x32xf32>
    %117 = tpu.matmul %115, %116, %cst_44 {dimension_numbers = #tpu.dot_dimension_numbers<[1], [0], [0], [1], [0, 0, 1, 1], [], []>} : vector<8x32xf32>, vector<32x32xf32>, vector<8x32xf32> -> vector<8x32xf32>
    %118 = arith.addf %106, %117 : vector<8x32xf32>
    %c14_i32_45 = arith.constant 14 : i32
    %119 = vector.broadcast %c14_i32_45 : i32 to vector<8x107xi32>
    %120 = arith.muli %89, %119 : vector<8x107xi32>
    %c4_i32_46 = arith.constant 4 : i32
    %121 = vector.broadcast %c4_i32_46 : i32 to vector<8x107xi32>
    %122 = arith.addi %120, %121 : vector<8x107xi32>
    %123 = arith.cmpi eq, %90, %122 : vector<8x107xi32>
    %cst_47 = arith.constant 1.000000e+00 : f32
    %cst_48 = arith.constant 0.000000e+00 : f32
    %124 = vector.broadcast %cst_47 : f32 to vector<8x107xf32>
    %125 = vector.broadcast %cst_48 : f32 to vector<8x107xf32>
    %126 = arith.select %123, %124, %125 : vector<8x107xi1>, vector<8x107xf32>
    %cst_49 = arith.constant dense<0.000000e+00> : vector<8x32xf32>
    %127 = tpu.matmul %126, %87, %cst_49 {dimension_numbers = #tpu.dot_dimension_numbers<[1], [0], [0], [1], [0, 0, 1, 1], [], []>} : vector<8x107xf32>, vector<107x32xf32>, vector<8x32xf32> -> vector<8x32xf32>
    %128 = vector.extract_strided_slice %88 {offsets = [64, 0], sizes = [32, 32], strides = [1, 1]} : vector<160x32xf32> to vector<32x32xf32>
    %cst_50 = arith.constant dense<0.000000e+00> : vector<8x32xf32>
    %129 = tpu.matmul %127, %128, %cst_50 {dimension_numbers = #tpu.dot_dimension_numbers<[1], [0], [0], [1], [0, 0, 1, 1], [], []>} : vector<8x32xf32>, vector<32x32xf32>, vector<8x32xf32> -> vector<8x32xf32>
    %130 = arith.addf %118, %129 : vector<8x32xf32>
    %c14_i32_51 = arith.constant 14 : i32
    %131 = vector.broadcast %c14_i32_51 : i32 to vector<8x107xi32>
    %132 = arith.muli %89, %131 : vector<8x107xi32>
    %c6_i32 = arith.constant 6 : i32
    %133 = vector.broadcast %c6_i32 : i32 to vector<8x107xi32>
    %134 = arith.addi %132, %133 : vector<8x107xi32>
    %135 = arith.cmpi eq, %90, %134 : vector<8x107xi32>
    %cst_52 = arith.constant 1.000000e+00 : f32
    %cst_53 = arith.constant 0.000000e+00 : f32
    %136 = vector.broadcast %cst_52 : f32 to vector<8x107xf32>
    %137 = vector.broadcast %cst_53 : f32 to vector<8x107xf32>
    %138 = arith.select %135, %136, %137 : vector<8x107xi1>, vector<8x107xf32>
    %cst_54 = arith.constant dense<0.000000e+00> : vector<8x32xf32>
    %139 = tpu.matmul %138, %87, %cst_54 {dimension_numbers = #tpu.dot_dimension_numbers<[1], [0], [0], [1], [0, 0, 1, 1], [], []>} : vector<8x107xf32>, vector<107x32xf32>, vector<8x32xf32> -> vector<8x32xf32>
    %140 = vector.extract_strided_slice %88 {offsets = [96, 0], sizes = [32, 32], strides = [1, 1]} : vector<160x32xf32> to vector<32x32xf32>
    %cst_55 = arith.constant dense<0.000000e+00> : vector<8x32xf32>
    %141 = tpu.matmul %139, %140, %cst_55 {dimension_numbers = #tpu.dot_dimension_numbers<[1], [0], [0], [1], [0, 0, 1, 1], [], []>} : vector<8x32xf32>, vector<32x32xf32>, vector<8x32xf32> -> vector<8x32xf32>
    %142 = arith.addf %130, %141 : vector<8x32xf32>
    %c14_i32_56 = arith.constant 14 : i32
    %143 = vector.broadcast %c14_i32_56 : i32 to vector<8x107xi32>
    %144 = arith.muli %89, %143 : vector<8x107xi32>
    %c8_i32 = arith.constant 8 : i32
    %145 = vector.broadcast %c8_i32 : i32 to vector<8x107xi32>
    %146 = arith.addi %144, %145 : vector<8x107xi32>
    %147 = arith.cmpi eq, %90, %146 : vector<8x107xi32>
    %cst_57 = arith.constant 1.000000e+00 : f32
    %cst_58 = arith.constant 0.000000e+00 : f32
    %148 = vector.broadcast %cst_57 : f32 to vector<8x107xf32>
    %149 = vector.broadcast %cst_58 : f32 to vector<8x107xf32>
    %150 = arith.select %147, %148, %149 : vector<8x107xi1>, vector<8x107xf32>
    %cst_59 = arith.constant dense<0.000000e+00> : vector<8x32xf32>
    %151 = tpu.matmul %150, %87, %cst_59 {dimension_numbers = #tpu.dot_dimension_numbers<[1], [0], [0], [1], [0, 0, 1, 1], [], []>} : vector<8x107xf32>, vector<107x32xf32>, vector<8x32xf32> -> vector<8x32xf32>
    %152 = vector.extract_strided_slice %88 {offsets = [128, 0], sizes = [32, 32], strides = [1, 1]} : vector<160x32xf32> to vector<32x32xf32>
    %cst_60 = arith.constant dense<0.000000e+00> : vector<8x32xf32>
    %153 = tpu.matmul %151, %152, %cst_60 {dimension_numbers = #tpu.dot_dimension_numbers<[1], [0], [0], [1], [0, 0, 1, 1], [], []>} : vector<8x32xf32>, vector<32x32xf32>, vector<8x32xf32> -> vector<8x32xf32>
    %154 = arith.addf %142, %153 : vector<8x32xf32>
    %cst_61 = arith.constant 0.000000e+00 : f32
    %155 = vector.broadcast %cst_61 : f32 to vector<8x32xf32>
    %156 = arith.maximumf %154, %155 : vector<8x32xf32>
    %c0_62 = arith.constant 0 : index
    %c0_63 = arith.constant 0 : index
    %157 = vector.load %arg8[%c0_62, %c0_63] : memref<32x4xf32, #tpu.memory_space<vmem>>, vector<32x4xf32>
    %cst_64 = arith.constant dense<0.000000e+00> : vector<8x4xf32>
    %158 = tpu.matmul %156, %157, %cst_64 {dimension_numbers = #tpu.dot_dimension_numbers<[1], [0], [0], [1], [0, 0, 1, 1], [], []>} : vector<8x32xf32>, vector<32x4xf32>, vector<8x4xf32> -> vector<8x4xf32>
    %c0_65 = arith.constant 0 : index
    %c0_66 = arith.constant 0 : index
    %159 = vector.load %arg9[%c0_65, %c0_66] : memref<1x4xf32, #tpu.memory_space<vmem>>, vector<1x4xf32>
    %160 = vector.broadcast %159 : vector<1x4xf32> to vector<8x4xf32>
    %161 = arith.addf %158, %160 : vector<8x4xf32>
    %c0_67 = arith.constant 0 : index
    %c0_68 = arith.constant 0 : index
    %162 = vector.load %arg10[%c0_67, %c0_68] : memref<32x3xf32, #tpu.memory_space<vmem>>, vector<32x3xf32>
    %cst_69 = arith.constant dense<0.000000e+00> : vector<8x3xf32>
    %163 = tpu.matmul %156, %162, %cst_69 {dimension_numbers = #tpu.dot_dimension_numbers<[1], [0], [0], [1], [0, 0, 1, 1], [], []>} : vector<8x32xf32>, vector<32x3xf32>, vector<8x3xf32> -> vector<8x3xf32>
    %c0_70 = arith.constant 0 : index
    %c0_71 = arith.constant 0 : index
    %164 = vector.load %arg11[%c0_70, %c0_71] : memref<1x3xf32, #tpu.memory_space<vmem>>, vector<1x3xf32>
    %165 = vector.broadcast %164 : vector<1x3xf32> to vector<8x3xf32>
    %166 = arith.addf %163, %165 : vector<8x3xf32>
    %c0_72 = arith.constant 0 : index
    %c0_73 = arith.constant 0 : index
    %167 = vector.load %arg15[%c0_72, %c0_73] : memref<8x4xf32, #tpu.memory_space<vmem>>, vector<8x4xf32>
    tpu.vector_store %arg15[%c0_72, %c0_73], %161 {strides = array<i32>} : memref<8x4xf32, #tpu.memory_space<vmem>>, vector<8x4xf32>,
    %c0_74 = arith.constant 0 : index
    %c0_75 = arith.constant 0 : index
    %168 = vector.load %arg12[%c0_74, %c0_75] : memref<8x4xf32, #tpu.memory_space<vmem>>, vector<8x4xf32>
    %cst_76 = arith.constant dense<0xFF800000> : vector<8xf32>
    %169 = vector.multi_reduction <maximumf>, %161, %cst_76 [1] : vector<8x4xf32> to vector<8xf32>
    %170 = vector.shape_cast %169 : vector<8xf32> to vector<8x1xf32>
    %171 = vector.broadcast %170 : vector<8x1xf32> to vector<8x4xf32>
    %172 = arith.subf %161, %171 : vector<8x4xf32>
    %173 = math.exp %172 : vector<8x4xf32>
    %cst_77 = arith.constant dense<0.000000e+00> : vector<8xf32>
    %174 = vector.multi_reduction <add>, %173, %cst_77 [1] : vector<8x4xf32> to vector<8xf32>
    %175 = vector.shape_cast %174 : vector<8xf32> to vector<8x1xf32>
    %176 = math.log %175 : vector<8x1xf32>
    %177 = vector.broadcast %176 : vector<8x1xf32> to vector<8x4xf32>
    %178 = arith.subf %172, %177 : vector<8x4xf32>
    %179 = arith.mulf %168, %178 : vector<8x4xf32>
    %cst_78 = arith.constant dense<0.000000e+00> : vector<8xf32>
    %180 = vector.multi_reduction <add>, %179, %cst_78 [1] : vector<8x4xf32> to vector<8xf32>
    %181 = vector.shape_cast %180 : vector<8xf32> to vector<8x1xf32>
    %cst_79 = arith.constant 0.000000e+00 : f32
    %182 = vector.broadcast %cst_79 : f32 to vector<8x1xf32>
    %183 = arith.subf %182, %181 : vector<8x1xf32>
    %cst_80 = arith.constant dense<0.000000e+00> : vector<1xf32>
    %184 = vector.multi_reduction <add>, %183, %cst_80 [0] : vector<8x1xf32> to vector<1xf32>
    %185 = vector.shape_cast %184 : vector<1xf32> to vector<1x1xf32>
    %cst_81 = arith.constant 1.250000e-01 : f32
    %186 = vector.broadcast %cst_81 : f32 to vector<1x1xf32>
    %187 = arith.mulf %185, %186 : vector<1x1xf32>
    %c0_82 = arith.constant 0 : index
    %c0_83 = arith.constant 0 : index
    %188 = vector.load %arg13[%c0_82, %c0_83] : memref<8x3xf32, #tpu.memory_space<vmem>>, vector<8x3xf32>
    %cst_84 = arith.constant dense<0xFF800000> : vector<8xf32>
    %189 = vector.multi_reduction <maximumf>, %166, %cst_84 [1] : vector<8x3xf32> to vector<8xf32>
    %190 = vector.shape_cast %189 : vector<8xf32> to vector<8x1xf32>
    %191 = vector.broadcast %190 : vector<8x1xf32> to vector<8x3xf32>
    %192 = arith.subf %166, %191 : vector<8x3xf32>
    %193 = math.exp %192 : vector<8x3xf32>
    %cst_85 = arith.constant dense<0.000000e+00> : vector<8xf32>
    %194 = vector.multi_reduction <add>, %193, %cst_85 [1] : vector<8x3xf32> to vector<8xf32>
    %195 = vector.shape_cast %194 : vector<8xf32> to vector<8x1xf32>
    %196 = math.log %195 : vector<8x1xf32>
    %197 = vector.broadcast %196 : vector<8x1xf32> to vector<8x3xf32>
    %198 = arith.subf %192, %197 : vector<8x3xf32>
    %199 = arith.mulf %188, %198 : vector<8x3xf32>
    %cst_86 = arith.constant dense<0.000000e+00> : vector<8xf32>
    %200 = vector.multi_reduction <add>, %199, %cst_86 [1] : vector<8x3xf32> to vector<8xf32>
    %201 = vector.shape_cast %200 : vector<8xf32> to vector<8x1xf32>
    %cst_87 = arith.constant 0.000000e+00 : f32
    %202 = vector.broadcast %cst_87 : f32 to vector<8x1xf32>
    %203 = arith.subf %202, %201 : vector<8x1xf32>
    %cst_88 = arith.constant dense<0.000000e+00> : vector<1xf32>
    %204 = vector.multi_reduction <add>, %203, %cst_88 [0] : vector<8x1xf32> to vector<1xf32>
    %205 = vector.shape_cast %204 : vector<1xf32> to vector<1x1xf32>
    %cst_89 = arith.constant 1.250000e-01 : f32
    %206 = vector.broadcast %cst_89 : f32 to vector<1x1xf32>
    %207 = arith.mulf %205, %206 : vector<1x1xf32>
    %cst_90 = arith.constant dense<0.000000e+00> : vector<8x8xf32>
    %208 = tpu.matmul %156, %156, %cst_90 {dimension_numbers = #tpu.dot_dimension_numbers<[1], [1], [0], [0], [0, 0, 1, 0], [], []>} : vector<8x32xf32>, vector<8x32xf32>, vector<8x8xf32> -> vector<8x8xf32>
    %cst_91 = arith.constant 7.000000e-02 : f32
    %209 = vector.broadcast %cst_91 : f32 to vector<8x8xf32>
    %210 = arith.divf %208, %209 : vector<8x8xf32>
    %cst_92 = arith.constant dense<0xFF800000> : vector<8xf32>
    %211 = vector.multi_reduction <maximumf>, %210, %cst_92 [1] : vector<8x8xf32> to vector<8xf32>
    %212 = vector.shape_cast %211 : vector<8xf32> to vector<8x1xf32>
    %213 = vector.broadcast %212 : vector<8x1xf32> to vector<8x8xf32>
    %214 = arith.subf %210, %213 : vector<8x8xf32>
    %215 = tpu.iota {dimensions = array<i32: 0>} : vector<8x8xi32>
    %216 = tpu.iota {dimensions = array<i32: 1>} : vector<8x8xi32>
    %217 = arith.cmpi eq, %215, %216 : vector<8x8xi32>
    %cst_93 = arith.constant 0.000000e+00 : f32
    %cst_94 = arith.constant 1.000000e+00 : f32
    %218 = vector.broadcast %cst_93 : f32 to vector<8x8xf32>
    %219 = vector.broadcast %cst_94 : f32 to vector<8x8xf32>
    %220 = arith.select %217, %218, %219 : vector<8x8xi1>, vector<8x8xf32>
    %c0_95 = arith.constant 0 : index
    %c0_96 = arith.constant 0 : index
    %221 = vector.load %arg14[%c0_95, %c0_96] : memref<8x8xf32, #tpu.memory_space<vmem>>, vector<8x8xf32>
    %222 = arith.mulf %221, %220 : vector<8x8xf32>
    %223 = math.exp %214 : vector<8x8xf32>
    %224 = arith.mulf %223, %220 : vector<8x8xf32>
    %cst_97 = arith.constant dense<0.000000e+00> : vector<8xf32>
    %225 = vector.multi_reduction <add>, %224, %cst_97 [1] : vector<8x8xf32> to vector<8xf32>
    %226 = vector.shape_cast %225 : vector<8xf32> to vector<8x1xf32>
    %227 = math.log %226 : vector<8x1xf32>
    %228 = vector.broadcast %227 : vector<8x1xf32> to vector<8x8xf32>
    %229 = arith.subf %214, %228 : vector<8x8xf32>
    %cst_98 = arith.constant dense<0.000000e+00> : vector<8xf32>
    %230 = vector.multi_reduction <add>, %222, %cst_98 [1] : vector<8x8xf32> to vector<8xf32>
    %231 = vector.shape_cast %230 : vector<8xf32> to vector<8x1xf32>
    %cst_99 = arith.constant 1.000000e+00 : f32
    %232 = vector.broadcast %cst_99 : f32 to vector<8x1xf32>
    %233 = arith.maximumf %231, %232 : vector<8x1xf32>
    %234 = arith.mulf %222, %229 : vector<8x8xf32>
    %cst_100 = arith.constant dense<0.000000e+00> : vector<8xf32>
    %235 = vector.multi_reduction <add>, %234, %cst_100 [1] : vector<8x8xf32> to vector<8xf32>
    %236 = vector.shape_cast %235 : vector<8xf32> to vector<8x1xf32>
    %237 = arith.divf %236, %233 : vector<8x1xf32>
    %cst_101 = arith.constant -1.000000e+00 : f32
    %238 = vector.broadcast %cst_101 : f32 to vector<8x1xf32>
    %239 = arith.mulf %238, %237 : vector<8x1xf32>
    %cst_102 = arith.constant dense<0.000000e+00> : vector<1xf32>
    %240 = vector.multi_reduction <add>, %239, %cst_102 [0] : vector<8x1xf32> to vector<1xf32>
    %241 = vector.shape_cast %240 : vector<1xf32> to vector<1x1xf32>
    %cst_103 = arith.constant 1.250000e-01 : f32
    %242 = vector.broadcast %cst_103 : f32 to vector<1x1xf32>
    %243 = arith.mulf %241, %242 : vector<1x1xf32>
    %244 = tpu.iota {dimensions = array<i32: 1>} : vector<1x128xi32>
    %c0_i32_104 = arith.constant 0 : i32
    %245 = vector.broadcast %c0_i32_104 : i32 to vector<1x128xi32>
    %246 = arith.cmpi eq, %244, %245 : vector<1x128xi32>
    %c1_i32_105 = arith.constant 1 : i32
    %247 = vector.broadcast %c1_i32_105 : i32 to vector<1x128xi32>
    %248 = arith.cmpi eq, %244, %247 : vector<1x128xi32>
    %c2_i32_106 = arith.constant 2 : i32
    %249 = vector.broadcast %c2_i32_106 : i32 to vector<1x128xi32>
    %250 = arith.cmpi eq, %244, %249 : vector<1x128xi32>
    %cst_107 = arith.constant 0.000000e+00 : f32
    %251 = vector.shape_cast %243 : vector<1x1xf32> to vector<1x1xf32>
    %252 = vector.broadcast %251 : vector<1x1xf32> to vector<1x128xf32>
    %253 = vector.broadcast %cst_107 : f32 to vector<1x128xf32>
    %254 = arith.select %250, %252, %253 : vector<1x128xi1>, vector<1x128xf32>
    %255 = vector.shape_cast %207 : vector<1x1xf32> to vector<1x1xf32>
    %256 = vector.broadcast %255 : vector<1x1xf32> to vector<1x128xf32>
    %257 = arith.select %248, %256, %254 : vector<1x128xi1>, vector<1x128xf32>
    %258 = vector.shape_cast %187 : vector<1x1xf32> to vector<1x1xf32>
    %259 = vector.broadcast %258 : vector<1x1xf32> to vector<1x128xf32>
    %260 = arith.select %246, %259, %257 : vector<1x128xi1>, vector<1x128xf32>
    %c0_108 = arith.constant 0 : index
    %c0_109 = arith.constant 0 : index
    %261 = vector.load %arg16[%c0_108, %c0_109] : memref<1x128xf32, #tpu.memory_space<vmem>>, vector<1x128xf32>
    tpu.vector_store %arg16[%c0_108, %c0_109], %260 {strides = array<i32>} : memref<1x128xf32, #tpu.memory_space<vmem>>, vector<1x128xf32>,
    return
  }
  func.func @transform_0(%arg0: i32) -> (i32, i32) {
    %c0_i32 = arith.constant 0 : i32
    %c0_i32_0 = arith.constant 0 : i32
    %c0_i32_1 = arith.constant 0 : i32
    return %c0_i32, %c0_i32_0 : i32, i32
  }
  func.func @transform_1(%arg0: i32) -> (i32, i32) {
    %c0_i32 = arith.constant 0 : i32
    %c0_i32_0 = arith.constant 0 : i32
    %c0_i32_1 = arith.constant 0 : i32
    return %c0_i32, %c0_i32_0 : i32, i32
  }
  func.func @transform_2(%arg0: i32) -> (i32, i32) {
    %c0_i32 = arith.constant 0 : i32
    %c0_i32_0 = arith.constant 0 : i32
    %c0_i32_1 = arith.constant 0 : i32
    return %c0_i32, %c0_i32_0 : i32, i32
  }
  func.func @transform_3(%arg0: i32) -> (i32, i32) {
    %c0_i32 = arith.constant 0 : i32
    %c0_i32_0 = arith.constant 0 : i32
    %c0_i32_1 = arith.constant 0 : i32
    return %c0_i32, %c0_i32_0 : i32, i32
  }
  func.func @transform_4(%arg0: i32) -> (i32, i32) {
    %c0_i32 = arith.constant 0 : i32
    %c0_i32_0 = arith.constant 0 : i32
    %c0_i32_1 = arith.constant 0 : i32
    return %c0_i32, %c0_i32_0 : i32, i32
  }
  func.func @transform_5(%arg0: i32) -> (i32, i32) {
    %c0_i32 = arith.constant 0 : i32
    %c0_i32_0 = arith.constant 0 : i32
    %c0_i32_1 = arith.constant 0 : i32
    return %c0_i32, %c0_i32_0 : i32, i32
  }
  func.func @transform_6(%arg0: i32) -> (i32, i32) {
    %c0_i32 = arith.constant 0 : i32
    %c0_i32_0 = arith.constant 0 : i32
    %c0_i32_1 = arith.constant 0 : i32
    return %c0_i32, %c0_i32_0 : i32, i32
  }
  func.func @transform_7(%arg0: i32) -> (i32, i32) {
    %c0_i32 = arith.constant 0 : i32
    %c0_i32_0 = arith.constant 0 : i32
    %c0_i32_1 = arith.constant 0 : i32
    return %c0_i32, %c0_i32_0 : i32, i32
  }
  func.func @transform_8(%arg0: i32) -> (i32, i32) {
    %c0_i32 = arith.constant 0 : i32
    %c0_i32_0 = arith.constant 0 : i32
    %c0_i32_1 = arith.constant 0 : i32
    return %c0_i32, %c0_i32_0 : i32, i32
  }
  func.func @transform_9(%arg0: i32) -> (i32, i32) {
    %c0_i32 = arith.constant 0 : i32
    %c0_i32_0 = arith.constant 0 : i32
    %c0_i32_1 = arith.constant 0 : i32
    return %c0_i32, %c0_i32_0 : i32, i32
  }
  func.func @transform_10(%arg0: i32) -> (i32, i32) {
    %c0_i32 = arith.constant 0 : i32
    %c0_i32_0 = arith.constant 0 : i32
    %c0_i32_1 = arith.constant 0 : i32
    return %c0_i32, %c0_i32_0 : i32, i32
  }
  func.func @transform_11(%arg0: i32) -> (i32, i32) {
    %c0_i32 = arith.constant 0 : i32
    %c0_i32_0 = arith.constant 0 : i32
    %c0_i32_1 = arith.constant 0 : i32
    return %c0_i32, %c0_i32_0 : i32, i32
  }
  func.func @transform_12(%arg0: i32) -> (i32, i32) {
    %c0_i32 = arith.constant 0 : i32
    %c0_i32_0 = arith.constant 0 : i32
    %c0_i32_1 = arith.constant 0 : i32
    return %c0_i32, %c0_i32_0 : i32, i32
  }
  func.func @transform_13(%arg0: i32) -> (i32, i32) {
    %c0_i32 = arith.constant 0 : i32
    %c0_i32_0 = arith.constant 0 : i32
    %c0_i32_1 = arith.constant 0 : i32
    return %c0_i32, %c0_i32_0 : i32, i32
  }
  func.func @transform_14(%arg0: i32) -> (i32, i32) {
    %c0_i32 = arith.constant 0 : i32
    %c0_i32_0 = arith.constant 0 : i32
    %c0_i32_1 = arith.constant 0 : i32
    return %c0_i32, %c0_i32_0 : i32, i32
  }
  func.func @transform_15(%arg0: i32) -> (i32, i32) {
    %c0_i32 = arith.constant 0 : i32
    %c0_i32_0 = arith.constant 0 : i32
    %c0_i32_1 = arith.constant 0 : i32
    return %c0_i32, %c0_i32_0 : i32, i32
  }
}

</mosaic_0001>

<bundles_post_ra>
// kernel: tpu_custom_call.1
= control target key start
LH: loop header
LB: loop body
LE: loop exit
PB: predicated region body
PF: predicated region fallthrough
CT: control target
= control target key end

     0   :  { %vm274_vm0 = vcmask 1045504   ;;  %vm114_vm1 = vcmask 1046528   ;;  %s4482_s24 = smov 12   ;;  %s4483_s25 = smov 6   ;;  %vm434_vm2 = vcmask 1044480   ;;  %vm594_vm3 = vcmask 1043456   ;;  %s6349_s0 = inlined_call_operand.vmem [shape: f32[256,6], index: 0, kind: input, shape index: {}]   ;;  %s6350_s1 = inlined_call_operand.vmem [shape: f32[30,16], index: 1, kind: input, shape index: {}]   ;;  %s6351_s2 = inlined_call_operand.vmem [shape: f32[1,16], index: 2, kind: input, shape index: {}]   ;;  %s6352_s3 = inlined_call_operand.vmem [shape: f32[80,32], index: 3, kind: input, shape index: {}]   ;;  %s6353_s4 = inlined_call_operand.vmem [shape: f32[1,32], index: 4, kind: input, shape index: {}]   ;;  %s6354_s5 = inlined_call_operand.vmem [shape: f32[160,32], index: 5, kind: input, shape index: {}]   ;;  %s6355_s6 = inlined_call_operand.vmem [shape: f32[1,32], index: 6, kind: input, shape index: {}]   ;;  %s6356_s7 = inlined_call_operand.vmem [shape: f32[32,4], index: 7, kind: input, shape index: {}]   ;;  %s6357_s8 = inlined_call_operand.vmem [shape: f32[1,4], index: 8, kind: input, shape index: {}]   ;;  %s6358_s9 = inlined_call_operand.vmem [shape: f32[32,3], index: 9, kind: input, shape index: {}]   ;;  %s6359_s10 = inlined_call_operand.vmem [shape: f32[1,3], index: 10, kind: input, shape index: {}]   ;;  %s6360_s11 = inlined_call_operand.vmem [shape: f32[8,4], index: 11, kind: input, shape index: {}]   ;;  %s6361_s12 = inlined_call_operand.vmem [shape: f32[8,3], index: 12, kind: input, shape index: {}]   ;;  %s6362_s13 = inlined_call_operand.vmem [shape: f32[8,8], index: 13, kind: input, shape index: {}]   ;;  %s6363_s14 = inlined_call_operand.vmem [shape: f32[8,4], index: 14, kind: output, shape index: {0}]   ;;  %s6364_s15 = inlined_call_operand.hbm [shape: f32[1,128], index: 15, kind: output, shape index: {1}]  }
   0x1   :  { %v4578_v0 = vld [vmem:[%s6349_s0] sm:$0xff]  ;;  %v4583_v1 = vld [vmem:[%s6349_s0 + $0x8] sm:$0xff]  ;;  %v4592_v6 = vld [vmem:[%s6349_s0 + $0x10] sm:$0xff] }
   0x2   :  { %v275_v2 = vrot.slane %v4578_v0, 2  ;;  %v276_v3 = vrot.slane %v4583_v1, 2  ;;  %v115_v4 = vrot.slane %v4578_v0, 1  ;;  %v116_v5 = vrot.slane %v4583_v1, 1  ;;  %v4608_v16 = vld [vmem:[%s6349_s0 + $0x18] sm:$0xff]  ;;  %v888_v19 = vld [vmem:[%s6350_s1 + $0x10] sm:$0xff] }
   0x3   :  { %v278_v7 = vrot.slane %v4592_v6, 2  ;;  %v118_v8 = vrot.slane %v4592_v6, 1  ;;  %v436_v11 = vrot.slane %v4583_v1, 3  ;;  %v438_v14 = vrot.slane %v4592_v6, 3  ;;  %v889_v18 = vld [vmem:[%s6350_s1 + $0x18] sm:$0x3f] }
   0x4   :  { %v277_v9 = vsel %vm274_vm0, %v275_v2, %v276_v3  ;;  %v117_v10 = vsel %vm114_vm1, %v115_v4, %v116_v5  ;;  %v435_v15 = vrot.slane %v4578_v0, 3  ;;  %v120_v17 = vrot.slane %v4608_v16, 1  ;;  %4099 = vmatprep.subr.msk.mxu0 %vm274_vm0, %v889_v18  ;;  %v4627_v24 = vld [vmem:[%s6349_s0 + $0x20] sm:$0xff] }
   0x5   :  { %338 = vrot.lane.b32.xlu1 %v277_v9, %s4482_s24  ;;  %178 = vrot.lane.b32.xlu0 %v117_v10, %s4483_s25  ;;  %v279_v12 = vsel %vm274_vm0, %v276_v3, %v278_v7  ;;  %v119_v13 = vsel %vm114_vm1, %v116_v5, %v118_v8  ;;  %v439_v20 = vsel %vm434_vm2, %v436_v11, %v438_v14  ;;  %v595_v22 = vrot.slane %v4578_v0, 4 }
   0x6   :  { %v437_v21 = vsel %vm434_vm2, %v435_v15, %v436_v11  ;;  %v596_v23 = vrot.slane %v4583_v1, 4  ;;  %4100 = vmatpush3.msk.msra.mxu0 %vm274_vm0, %v889_v18 }
   0x9   :  { %340 = vrot.lane.b32.xlu1 %v279_v12, %s4482_s24  ;;  %180 = vrot.lane.b32.xlu0 %v119_v13, %s4483_s25 }
   0xa   :  { %21 = vsyncpa [#allocation3], 0  ;;  %4101 = vmatprep.subr.mxu0 %v888_v19  ;;  %v887_v25 = vld [vmem:[%s6350_s1 + $0x8] sm:$0xff]  ;;  %s4484_s21 = smov 18   ;;  %v121_v26 = vsel %vm114_vm1, %v118_v8, %v120_v17  ;;  %v597_v27 = vsel %vm594_vm3, %v595_v22, %v596_v23  ;;  %v122_v28 = vrot.slane %v4627_v24, 1  ;;  %v598_v29 = vrot.slane %v4592_v6, 4 }
   0xb   :  { %4102 = vmatpush3.msra.mxu0 %v888_v19  ;;  %v886_v30 = vld [vmem:[%s6350_s1] sm:$0xff]  ;;  %s4485_s26 = smov 24   ;;  %v280_v33 = vrot.slane %v4608_v16, 2  ;;  %v282_v34 = vrot.slane %v4627_v24, 2  ;;  %v440_v37 = vrot.slane %v4608_v16, 3  ;;  %v442_v38 = vrot.slane %v4627_v24, 3 }
   0xc   :  { %4103 = vmatprep.subr.mxu0 %v887_v25  ;;  %v123_v31 = vsel %vm114_vm1, %v120_v17, %v122_v28  ;;  %v599_v32 = vsel %vm594_vm3, %v596_v23, %v598_v29  ;;  %v4657_v39 = vld [vmem:[%s6349_s0 + $0x28] sm:$0xff]  ;;  %v600_v43 = vrot.slane %v4608_v16, 4  ;;  %v4668_v44 = vld [vmem:[%s6349_s0 + $0x30] sm:$0xff]  ;;  %v602_v48 = vrot.slane %v4627_v24, 4  ;;  %v4691_v57 = vld [vmem:[%s6349_s0 + $0x38] sm:$0xff]  ;;  %s4492_s17 = smov 64  }
   0xd   :  { %500 = vrot.lane.b32.xlu1 %v439_v20, %s4484_s21  ;;  %498 = vrot.lane.b32.xlu0 %v437_v21, %s4484_s21  ;;  %v283_v35 = vsel %vm274_vm0, %v280_v33, %v282_v34  ;;  %v281_v36 = vsel %vm274_vm0, %v278_v7, %v280_v33  ;;  %v443_v40 = vsel %vm434_vm2, %v440_v37, %v442_v38  ;;  %v124_v42 = vrot.slane %v4657_v39, 1  ;;  %v4702_v62 = vld [vmem:[%s6349_s0 + $0x40] sm:$0xff]  ;;  %v4736_v20 = vld [vmem:[%s6349_s0 + $0x50] sm:$0xff] }
   0xe   :  { %4104 = vmatpush3.msra.mxu0 %v887_v25  ;;  %v441_v41 = vsel %vm434_vm2, %v438_v14, %v440_v37  ;;  %v601_v46 = vsel %vm594_vm3, %v598_v29, %v600_v43  ;;  %v126_v47 = vrot.slane %v4668_v44, 1  ;;  %v603_v50 = vsel %vm594_vm3, %v600_v43, %v602_v48  ;;  %v4725_v14 = vld [vmem:[%s6349_s0 + $0x48] sm:$0xff] }
   0xf   :  { %4105 = vmatprep.subr.mxu0 %v886_v30  ;;  %v125_v45 = vsel %vm114_vm1, %v122_v28, %v124_v42  ;;  %v284_v51 = vrot.slane %v4657_v39, 2  ;;  %v286_v52 = vrot.slane %v4668_v44, 2  ;;  %v444_v55 = vrot.slane %v4657_v39, 3 }
  0x10   :  { %4106 = vmatpush3.msra.mxu0 %v886_v30  ;;  %v127_v49 = vsel %vm114_vm1, %v124_v42, %v126_v47  ;;  %v446_v56 = vrot.slane %v4668_v44, 3  ;;  %v128_v60 = vrot.slane %v4691_v57, 1  ;;  %v604_v61 = vrot.slane %v4657_v39, 4 }
  0x11   :  { %182 = vrot.lane.b32.xlu1 %v121_v26, %s4483_s25  ;;  %658 = vrot.lane.b32.xlu0 %v597_v27, %s4485_s26  ;;  %v287_v53 = vsel %vm274_vm0, %v284_v51, %v286_v52  ;;  %v285_v54 = vsel %vm274_vm0, %v282_v34, %v284_v51  ;;  %v445_v59 = vsel %vm434_vm2, %v442_v38, %v444_v55  ;;  %v130_v3 = vrot.slane %v4702_v62, 1  ;;  %v4759_v34 = vld [vmem:[%s6349_s0 + $0x58] sm:$0xff] }
  0x12   :  { %v447_v58 = vsel %vm434_vm2, %v444_v55, %v446_v56  ;;  %v129_v63 = vsel %vm114_vm1, %v126_v47, %v128_v60  ;;  %v605_v2 = vsel %vm594_vm3, %v602_v48, %v604_v61  ;;  %v606_v4 = vrot.slane %v4668_v44, 4 }
  0x13   :  { %v131_v5 = vsel %vm114_vm1, %v128_v60, %v130_v3  ;;  %v288_v8 = vrot.slane %v4691_v57, 2  ;;  %v290_v9 = vrot.slane %v4702_v62, 2  ;;  %v448_v12 = vrot.slane %v4691_v57, 3  ;;  %v4804_v60 = vld [vmem:[%s6349_s0 + $0x70] sm:$0xff] }
  0x14   :  { %v607_v7 = vsel %vm594_vm3, %v604_v61, %v606_v4  ;;  %v450_v13 = vrot.slane %v4702_v62, 3  ;;  %v132_v18 = vrot.slane %v4725_v14, 1  ;;  %v608_v19 = vrot.slane %v4691_v57, 4 }
  0x15   :  { %184 = vrot.lane.b32.xlu1 %v123_v31, %s4483_s25  ;;  %660 = vrot.lane.b32.xlu0 %v599_v32, %s4485_s26  ;;  %v291_v10 = vsel %vm274_vm0, %v288_v8, %v290_v9  ;;  %v289_v11 = vsel %vm274_vm0, %v286_v52, %v288_v8  ;;  %v449_v17 = vsel %vm434_vm2, %v446_v56, %v448_v12  ;;  %v134_v23 = vrot.slane %v4736_v20, 1 }
  0x16   :  { %v451_v15 = vsel %vm434_vm2, %v448_v12, %v450_v13  ;;  %v133_v21 = vsel %vm114_vm1, %v130_v3, %v132_v18  ;;  %v609_v22 = vsel %vm594_vm3, %v606_v4, %v608_v19  ;;  %v610_v25 = vrot.slane %v4702_v62, 4 }
  0x17   :  { %v135_v26 = vsel %vm114_vm1, %v132_v18, %v134_v23  ;;  %v292_v28 = vrot.slane %v4725_v14, 2  ;;  %v294_v29 = vrot.slane %v4736_v20, 2  ;;  %v452_v32 = vrot.slane %v4725_v14, 3 }
  0x18   :  { %v611_v27 = vsel %vm594_vm3, %v608_v19, %v610_v25  ;;  %v454_v33 = vrot.slane %v4736_v20, 3  ;;  %v136_v37 = vrot.slane %v4759_v34, 1  ;;  %v612_v38 = vrot.slane %v4725_v14, 4 }
  0x19   :  { %344 = vrot.lane.b32.xlu1 %v283_v35, %s4482_s24  ;;  %342 = vrot.lane.b32.xlu0 %v281_v36, %s4482_s24  ;;  %v295_v30 = vsel %vm274_vm0, %v292_v28, %v294_v29  ;;  %v293_v31 = vsel %vm274_vm0, %v290_v9, %v292_v28  ;;  %v453_v36 = vsel %vm434_vm2, %v450_v13, %v452_v32  ;;  %v296_v48 = vrot.slane %v4759_v34, 2  ;;  %v4827_v13 = vld [vmem:[%s6349_s0 + $0x78] sm:$0xff] }
  0x1a   :  { %v455_v35 = vsel %vm434_vm2, %v452_v32, %v454_v33  ;;  %v613_v42 = vsel %vm594_vm3, %v610_v25, %v612_v38  ;;  %v456_v52 = vrot.slane %v4759_v34, 3  ;;  %v302_v8 = vrot.slane %v4804_v60, 2 }
  0x1b   :  { %v297_v51 = vsel %vm274_vm0, %v294_v29, %v296_v48  ;;  %v462_v12 = vrot.slane %v4804_v60, 3  ;;  %v144_v18 = vrot.slane %v4827_v13, 1  ;;  %v304_v29 = vrot.slane %v4827_v13, 2 }
  0x1c   :  { %v457_v56 = vsel %vm434_vm2, %v454_v33, %v456_v52  ;;  %v464_v33 = vrot.slane %v4827_v13, 3  ;;  %vm754_vm4 = vcmask 48128   ;;  %vm787_vm5 = vcmask 97280  }
  0x1d   :  { %504 = vrot.lane.b32.xlu1 %v443_v40, %s4484_s21  ;;  %502 = vrot.lane.b32.xlu0 %v441_v41, %s4484_s21  ;;  %v4770_v40 = vld [vmem:[%s6349_s0 + $0x60] sm:$0xff]  ;;  %v137_v41 = vsel %vm114_vm1, %v134_v23, %v136_v37  ;;  %v305_v32 = vsel %vm274_vm0, %v302_v8, %v304_v29  ;;  %vm820_vm6 = vcmask 146432   ;;  %vm853_vm7 = vcmask 195584  }
  0x1e   :  { %v138_v43 = vrot.slane %v4770_v40, 1  ;;  %v618_v3 = vrot.slane %v4770_v40, 4  ;;  %vm897_vm8 = vcmask 244736   ;;  %vm1809_vm10 = vcmask 1006592  }
  0x1f   :  { %vm1852_vm11 = vcmask 1042432  }
  0x21   :  { %186 = vrot.lane.b32.xlu1 %v125_v45, %s4483_s25  ;;  %662 = vrot.lane.b32.xlu0 %v601_v46, %s4485_s26  ;;  %v614_v45 = vrot.slane %v4736_v20, 4  ;;  %v139_v46 = vsel %vm114_vm1, %v136_v37, %v138_v43 }
  0x23   :  { %v615_v47 = vsel %vm594_vm3, %v612_v38, %v614_v45  ;;  %v4861_v38 = vld [vmem:[%s6349_s0 + $0x88] sm:$0xff] }
  0x25   :  { %188 = vrot.lane.b32.xlu1 %v127_v49, %s4483_s25  ;;  %664 = vrot.lane.b32.xlu0 %v603_v50, %s4485_s26  ;;  %v298_v49 = vrot.slane %v4770_v40, 2 }
  0x27   :  { %v299_v50 = vsel %vm274_vm0, %v296_v48, %v298_v49  ;;  %v4872_v48 = vld [vmem:[%s6349_s0 + $0x90] sm:$0xff] }
  0x29   :  { %348 = vrot.lane.b32.xlu1 %v287_v53, %s4482_s24  ;;  %346 = vrot.lane.b32.xlu0 %v285_v54, %s4482_s24  ;;  %v458_v53 = vrot.slane %v4770_v40, 3  ;;  %v4793_v54 = vld [vmem:[%s6349_s0 + $0x68] sm:$0xff] }
  0x2a   :  { %v620_v19 = vrot.slane %v4793_v54, 4 }
  0x2b   :  { %v459_v55 = vsel %vm434_vm2, %v456_v52, %v458_v53 }
  0x2c   :  { %v621_v23 = vsel %vm594_vm3, %v618_v3, %v620_v19 }
  0x2d   :  { %508 = vrot.lane.b32.xlu1 %v447_v58, %s4484_s21  ;;  %506 = vrot.lane.b32.xlu0 %v445_v59, %s4484_s21  ;;  %v140_v58 = vrot.slane %v4793_v54, 1  ;;  %v616_v59 = vrot.slane %v4759_v34, 4 }
  0x2f   :  { %v141_v61 = vsel %vm114_vm1, %v138_v43, %v140_v58  ;;  %v148_v43 = vrot.slane %v4861_v38, 1 }
  0x31   :  { %190 = vrot.lane.b32.xlu1 %v129_v63, %s4483_s25  ;;  %666 = vrot.lane.b32.xlu0 %v605_v2, %s4485_s26  ;;  %v617_v63 = vsel %vm594_vm3, %v614_v45, %v616_v59  ;;  %v142_v2 = vrot.slane %v4804_v60, 1  ;;  %v624_v45 = vrot.slane %v4827_v13, 4 }
  0x33   :  { %v143_v4 = vsel %vm114_vm1, %v140_v58, %v142_v2  ;;  %v308_v58 = vrot.slane %v4861_v38, 2 }
  0x35   :  { %192 = vrot.lane.b32.xlu1 %v131_v5, %s4483_s25  ;;  %668 = vrot.lane.b32.xlu0 %v607_v7, %s4485_s26  ;;  %v619_v5 = vsel %vm594_vm3, %v616_v59, %v618_v3  ;;  %v300_v7 = vrot.slane %v4793_v54, 2 }
  0x37   :  { %v303_v9 = vsel %vm274_vm0, %v300_v7, %v302_v8 }
  0x39   :  { %352 = vrot.lane.b32.xlu1 %v291_v10, %s4482_s24  ;;  %350 = vrot.lane.b32.xlu0 %v289_v11, %s4482_s24  ;;  %v301_v10 = vsel %vm274_vm0, %v298_v49, %v300_v7  ;;  %v460_v11 = vrot.slane %v4793_v54, 3 }
  0x3d   :  { %512 = vrot.lane.b32.xlu1 %v451_v15, %s4484_s21  ;;  %510 = vrot.lane.b32.xlu0 %v449_v17, %s4484_s21  ;;  %v463_v15 = vsel %vm434_vm2, %v460_v11, %v462_v12  ;;  %v461_v17 = vsel %vm434_vm2, %v458_v53, %v460_v11  ;;  %v470_v11 = vrot.slane %v4872_v48, 3 }
  0x41   :  { %194 = vrot.lane.b32.xlu1 %v133_v21, %s4483_s25  ;;  %670 = vrot.lane.b32.xlu0 %v609_v22, %s4485_s26  ;;  %v4838_v21 = vld [vmem:[%s6349_s0 + $0x80] sm:$0xff]  ;;  %v145_v22 = vsel %vm114_vm1, %v142_v2, %v144_v18  ;;  %v310_v2 = vrot.slane %v4872_v48, 2 }
  0x42   :  { %v146_v25 = vrot.slane %v4838_v21, 1  ;;  %v626_v52 = vrot.slane %v4838_v21, 4 }
  0x44   :  { %v149_v49 = vsel %vm114_vm1, %v146_v25, %v148_v43 }
  0x45   :  { %196 = vrot.lane.b32.xlu1 %v135_v26, %s4483_s25  ;;  %672 = vrot.lane.b32.xlu0 %v611_v27, %s4485_s26  ;;  %v622_v26 = vrot.slane %v4804_v60, 4  ;;  %v147_v27 = vsel %vm114_vm1, %v144_v18, %v146_v25  ;;  %v4905_v18 = vld [vmem:[%s6349_s0 + $0x98] sm:$0xff] }
  0x46   :  { %v152_v25 = vrot.slane %v4905_v18, 1 }
  0x47   :  { %v623_v28 = vsel %vm594_vm3, %v620_v19, %v622_v26 }
  0x49   :  { %356 = vrot.lane.b32.xlu1 %v295_v30, %s4482_s24  ;;  %354 = vrot.lane.b32.xlu0 %v293_v31, %s4482_s24  ;;  %v306_v30 = vrot.slane %v4838_v21, 2 }
  0x4b   :  { %v307_v31 = vsel %vm274_vm0, %v304_v29, %v306_v30  ;;  %v309_v8 = vsel %vm274_vm0, %v306_v30, %v308_v58  ;;  %v4918_v29 = vld [vmem:[%s6349_s0 + $0xa0] sm:$0xff] }
  0x4d   :  { %516 = vrot.lane.b32.xlu1 %v455_v35, %s4484_s21  ;;  %514 = vrot.lane.b32.xlu0 %v453_v36, %s4484_s21  ;;  %v466_v35 = vrot.slane %v4838_v21, 3 }
  0x51   :  { %198 = vrot.lane.b32.xlu1 %v137_v41, %s4483_s25  ;;  %674 = vrot.lane.b32.xlu0 %v613_v42, %s4485_s26  ;;  %v467_v41 = vsel %vm434_vm2, %v464_v33, %v466_v35  ;;  %v465_v42 = vsel %vm434_vm2, %v462_v12, %v464_v33  ;;  %v630_v33 = vrot.slane %v4872_v48, 4 }
  0x55   :  { %200 = vrot.lane.b32.xlu1 %v139_v46, %s4483_s25  ;;  %676 = vrot.lane.b32.xlu0 %v615_v47, %s4485_s26 }
  0x59   :  { %360 = vrot.lane.b32.xlu1 %v299_v50, %s4482_s24  ;;  %358 = vrot.lane.b32.xlu0 %v297_v51, %s4482_s24  ;;  %v625_v50 = vsel %vm594_vm3, %v622_v26, %v624_v45  ;;  %v150_v51 = vrot.slane %v4872_v48, 1  ;;  %v628_v26 = vrot.slane %v4861_v38, 4 }
  0x5b   :  { %v153_v30 = vsel %vm114_vm1, %v150_v51, %v152_v25 }
  0x5d   :  { %520 = vrot.lane.b32.xlu1 %v459_v55, %s4484_s21  ;;  %518 = vrot.lane.b32.xlu0 %v457_v56, %s4484_s21 }
  0x61   :  { %202 = vrot.lane.b32.xlu1 %v141_v61, %s4483_s25  ;;  %678 = vrot.lane.b32.xlu0 %v617_v63, %s4485_s26  ;;  %v151_v61 = vsel %vm114_vm1, %v148_v43, %v150_v51  ;;  %v627_v63 = vsel %vm594_vm3, %v624_v45, %v626_v52  ;;  %v631_v45 = vsel %vm594_vm3, %v628_v26, %v630_v33 }
  0x65   :  { %204 = vrot.lane.b32.xlu1 %v143_v4, %s4483_s25  ;;  %680 = vrot.lane.b32.xlu0 %v619_v5, %s4485_s26 }
  0x69   :  { %364 = vrot.lane.b32.xlu1 %v303_v9, %s4482_s24  ;;  %362 = vrot.lane.b32.xlu0 %v301_v10, %s4482_s24  ;;  %v311_v10 = vsel %vm274_vm0, %v308_v58, %v310_v2  ;;  %v474_v58 = vrot.slane %v4918_v29, 3 }
  0x6d   :  { %524 = vrot.lane.b32.xlu1 %v463_v15, %s4484_s21  ;;  %522 = vrot.lane.b32.xlu0 %v461_v17, %s4484_s21 }
  0x71   :  { %206 = vrot.lane.b32.xlu1 %v145_v22, %s4483_s25  ;;  %682 = vrot.lane.b32.xlu0 %v621_v23, %s4485_s26 }
  0x75   :  { %208 = vrot.lane.b32.xlu1 %v147_v27, %s4483_s25  ;;  %684 = vrot.lane.b32.xlu0 %v623_v28, %s4485_s26 }
  0x77   :  { %v339_v36 = vpop.permute.xlu1 %338  ;;  %v179_v37 = vpop.permute.xlu0 %178 }
  0x78   :  { %v755_v53 = vsel %vm754_vm4, %v4578_v0, %v179_v37 }
  0x79   :  { %368 = vrot.lane.b32.xlu1 %v307_v31, %s4482_s24  ;;  %366 = vrot.lane.b32.xlu0 %v305_v32, %s4482_s24  ;;  %v788_v59 = vsel %vm787_vm5, %v755_v53, %v339_v36  ;;  %v629_v31 = vsel %vm594_vm3, %v626_v52, %v628_v26  ;;  %v154_v32 = vrot.slane %v4918_v29, 1 }
  0x7b   :  { %v341_v46 = vpop.permute.xlu1 %340  ;;  %v181_v47 = vpop.permute.xlu0 %180  ;;  %v155_v43 = vsel %vm114_vm1, %v152_v25, %v154_v32 }
  0x7c   :  { %v756_v0 = vsel %vm754_vm4, %v4583_v1, %v181_v47  ;;  %v468_v1 = vrot.slane %v4861_v38, 3 }
  0x7d   :  { %528 = vrot.lane.b32.xlu1 %v467_v41, %s4484_s21  ;;  %526 = vrot.lane.b32.xlu0 %v465_v42, %s4484_s21  ;;  %v789_v9 = vsel %vm787_vm5, %v756_v0, %v341_v46  ;;  %v312_v41 = vrot.slane %v4905_v18, 2  ;;  %v314_v46 = vrot.slane %v4918_v29, 2 }
  0x7e   :  { %v471_v22 = vsel %vm434_vm2, %v468_v1, %v470_v11  ;;  %v469_v23 = vsel %vm434_vm2, %v466_v35, %v468_v1 }
  0x7f   :  { %v501_v55 = vpop.permute.xlu1 %500  ;;  %v499_v56 = vpop.permute.xlu0 %498  ;;  %v313_v52 = vsel %vm274_vm0, %v310_v2, %v312_v41 }
  0x80   :  { %v821_v3 = vsel %vm820_vm6, %v788_v59, %v499_v56  ;;  %v822_v12 = vsel %vm820_vm6, %v789_v9, %v501_v55  ;;  %v315_v55 = vsel %vm274_vm0, %v312_v41, %v314_v46  ;;  %v472_v56 = vrot.slane %v4905_v18, 3  ;;  %v4964_v9 = vld [vmem:[%s6349_s0 + $0xb0] sm:$0xff] }
  0x81   :  { %210 = vrot.lane.b32.xlu1 %v149_v49, %s4483_s25  ;;  %686 = vrot.lane.b32.xlu0 %v625_v50, %s4485_s26  ;;  %v478_v41 = vrot.slane %v4964_v9, 3 }
  0x82   :  { %v475_v0 = vsel %vm434_vm2, %v472_v56, %v474_v58 }
  0x83   :  { %v183_v4 = vpop.permute.xlu1 %182  ;;  %v659_v5 = vpop.permute.xlu0 %658 }
  0x84   :  { %v854_v7 = vsel %vm853_vm7, %v821_v3, %v659_v5  ;;  %v757_v37 = vsel %vm754_vm4, %v4592_v6, %v183_v4  ;;  %v473_v3 = vsel %vm434_vm2, %v470_v11, %v472_v56  ;;  %v632_v5 = vrot.slane %v4905_v18, 4 }
  0x85   :  { %212 = vrot.lane.b32.xlu1 %v151_v61, %s4483_s25  ;;  %688 = vrot.lane.b32.xlu0 %v627_v63, %s4485_s26  ;;  %v4951_v63 = vld [vmem:[%s6349_s0 + $0xa8] sm:$0xff]  ;;  %v158_v11 = vrot.slane %v4964_v9, 1 }
  0x86   :  { %4107 = vmatprep.mubr.msk.f32.mxu0 %vm897_vm8, %v854_v7  ;;  %v156_v4 = vrot.slane %v4951_v63, 1  ;;  %v633_v1 = vsel %vm594_vm3, %v630_v33, %v632_v5 }
  0x87   :  { %v185_v15 = vpop.permute.xlu1 %184  ;;  %v661_v17 = vpop.permute.xlu0 %660 }
  0x88   :  { %v855_v19 = vsel %vm853_vm7, %v822_v12, %v661_v17  ;;  %v758_v51 = vsel %vm754_vm4, %v4608_v16, %v185_v15  ;;  %v634_v12 = vrot.slane %v4918_v29, 4  ;;  %v159_v25 = vsel %vm114_vm1, %v156_v4, %v158_v11 }
  0x89   :  { %372 = vrot.lane.b32.xlu1 %v311_v10, %s4482_s24  ;;  %370 = vrot.lane.b32.xlu0 %v309_v8, %s4482_s24  ;;  %v157_v10 = vsel %vm114_vm1, %v154_v32, %v156_v4 }
  0x8a   :  { %4108 = vmatmul.mubr.msk.f32.vlgmr.msra.gmra.mxu0 %vm897_vm8, %v855_v19  ;;  %v635_v26 = vsel %vm594_vm3, %v632_v5, %v634_v12 }
  0x8b   :  { %v345_v27 = vpop.permute.xlu1 %344  ;;  %v343_v28 = vpop.permute.xlu0 %342 }
  0x8c   :  { %v790_v42 = vsel %vm787_vm5, %v757_v37, %v343_v28  ;;  %v791_v53 = vsel %vm787_vm5, %v758_v51, %v345_v27  ;;  %v318_v27 = vrot.slane %v4964_v9, 2  ;;  %v476_v37 = vrot.slane %v4951_v63, 3 }
  0x8d   :  { %532 = vrot.lane.b32.xlu1 %v471_v22, %s4484_s21  ;;  %530 = vrot.lane.b32.xlu0 %v469_v23, %s4484_s21  ;;  %v316_v22 = vrot.slane %v4951_v63, 2 }
  0x8f   :  { %v505_v35 = vpop.permute.xlu1 %504  ;;  %v503_v36 = vpop.permute.xlu0 %502  ;;  %v317_v33 = vsel %vm274_vm0, %v314_v46, %v316_v22 }
  0x90   :  { %v823_v47 = vsel %vm820_vm6, %v790_v42, %v503_v36  ;;  %v824_v59 = vsel %vm820_vm6, %v791_v53, %v505_v35  ;;  %v319_v36 = vsel %vm274_vm0, %v316_v22, %v318_v27  ;;  %v5010_v53 = vld [vmem:[%s6349_s0 + $0xc0] sm:$0xff] }
  0x91   :  { %214 = vrot.lane.b32.xlu1 %v153_v30, %s4483_s25  ;;  %690 = vrot.lane.b32.xlu0 %v629_v31, %s4485_s26  ;;  %v482_v22 = vrot.slane %v5010_v53, 3 }
  0x93   :  { %v187_v49 = vpop.permute.xlu1 %186  ;;  %v663_v50 = vpop.permute.xlu0 %662 }
  0x94   :  { %v856_v6 = vsel %vm853_vm7, %v823_v47, %v663_v50  ;;  %v759_v19 = vsel %vm754_vm4, %v4627_v24, %v187_v49  ;;  %v479_v47 = vsel %vm434_vm2, %v476_v37, %v478_v41  ;;  %v477_v49 = vsel %vm434_vm2, %v474_v58, %v476_v37 }
  0x95   :  { %216 = vrot.lane.b32.xlu1 %v155_v43, %s4483_s25  ;;  %692 = vrot.lane.b32.xlu0 %v631_v45, %s4485_s26  ;;  %v4997_v45 = vld [vmem:[%s6349_s0 + $0xb8] sm:$0xff]  ;;  %v162_v58 = vrot.slane %v5010_v53, 1 }
  0x96   :  { %4110 = vmatprep.mubr.msk.f32.mxu0 %vm897_vm8, %v856_v6  ;;  %v160_v50 = vrot.slane %v4997_v45, 1  ;;  %v636_v6 = vrot.slane %v4951_v63, 4 }
  0x97   :  { %v189_v61 = vpop.permute.xlu1 %188  ;;  %v665_v16 = vpop.permute.xlu0 %664 }
  0x98   :  { %v857_v2 = vsel %vm853_vm7, %v824_v59, %v665_v16  ;;  %v760_v32 = vsel %vm754_vm4, %v4657_v39, %v189_v61  ;;  %v637_v56 = vsel %vm594_vm3, %v634_v12, %v636_v6  ;;  %v638_v59 = vrot.slane %v4964_v9, 4 }
  0x99   :  { %376 = vrot.lane.b32.xlu1 %v315_v55, %s4482_s24  ;;  %374 = vrot.lane.b32.xlu0 %v313_v52, %s4482_s24  ;;  %v161_v55 = vsel %vm114_vm1, %v158_v11, %v160_v50  ;;  %v163_v5 = vsel %vm114_vm1, %v160_v50, %v162_v58 }
  0x9a   :  { %4111 = vmatmul.mubr.msk.f32.gmra.mxu0 %vm897_vm8, %v857_v2 }
  0x9b   :  { %v349_v7 = vpop.permute.xlu1 %348  ;;  %v347_v8 = vpop.permute.xlu0 %346 }
  0x9c   :  { %v792_v23 = vsel %vm787_vm5, %v759_v19, %v347_v8  ;;  %v793_v35 = vsel %vm787_vm5, %v760_v32, %v349_v7  ;;  %v639_v7 = vsel %vm594_vm3, %v636_v6, %v638_v59  ;;  %v480_v19 = vrot.slane %v4997_v45, 3 }
  0x9d   :  { %536 = vrot.lane.b32.xlu1 %v475_v0, %s4484_s21  ;;  %534 = vrot.lane.b32.xlu0 %v473_v3, %s4484_s21  ;;  %v320_v0 = vrot.slane %v4997_v45, 2  ;;  %v322_v3 = vrot.slane %v5010_v53, 2 }
  0x9f   :  { %v509_v15 = vpop.permute.xlu1 %508  ;;  %v507_v17 = vpop.permute.xlu0 %506  ;;  %v323_v12 = vsel %vm274_vm0, %v320_v0, %v322_v3 }
  0xa0   :  { %v825_v28 = vsel %vm820_vm6, %v792_v23, %v507_v17  ;;  %v826_v42 = vsel %vm820_vm6, %v793_v35, %v509_v15  ;;  %v321_v17 = vsel %vm274_vm0, %v318_v27, %v320_v0  ;;  %v483_v27 = vsel %vm434_vm2, %v480_v19, %v482_v22  ;;  %v5056_v35 = vld [vmem:[%s6349_s0 + $0xd0] sm:$0xff] }
  0xa1   :  { %218 = vrot.lane.b32.xlu1 %v157_v10, %s4483_s25  ;;  %694 = vrot.lane.b32.xlu0 %v633_v1, %s4485_s26  ;;  %v486_v0 = vrot.slane %v5056_v35, 3 }
  0xa3   :  { %v191_v30 = vpop.permute.xlu1 %190  ;;  %v667_v31 = vpop.permute.xlu0 %666 }
  0xa4   :  { %v858_v24 = vsel %vm853_vm7, %v825_v28, %v667_v31  ;;  %v761_v2 = vsel %vm754_vm4, %v4668_v44, %v191_v30  ;;  %v481_v30 = vsel %vm434_vm2, %v478_v41, %v480_v19  ;;  %v166_v41 = vrot.slane %v5056_v35, 1 }
  0xa5   :  { %220 = vrot.lane.b32.xlu1 %v159_v25, %s4483_s25  ;;  %696 = vrot.lane.b32.xlu0 %v635_v26, %s4485_s26  ;;  %v5043_v26 = vld [vmem:[%s6349_s0 + $0xc8] sm:$0xff] }
  0xa6   :  { %4113 = vmatprep.mubr.msk.f32.mxu0 %vm897_vm8, %v858_v24  ;;  %v164_v31 = vrot.slane %v5043_v26, 1  ;;  %v640_v24 = vrot.slane %v4997_v45, 4 }
  0xa7   :  { %v193_v43 = vpop.permute.xlu1 %192  ;;  %v669_v39 = vpop.permute.xlu0 %668 }
  0xa8   :  { %v859_v46 = vsel %vm853_vm7, %v826_v42, %v669_v39  ;;  %v762_v11 = vsel %vm754_vm4, %v4691_v57, %v193_v43  ;;  %v641_v37 = vsel %vm594_vm3, %v638_v59, %v640_v24  ;;  %v642_v42 = vrot.slane %v5010_v53, 4 }
  0xa9   :  { %380 = vrot.lane.b32.xlu1 %v319_v36, %s4482_s24  ;;  %378 = vrot.lane.b32.xlu0 %v317_v33, %s4482_s24  ;;  %v165_v36 = vsel %vm114_vm1, %v162_v58, %v164_v31  ;;  %v167_v6 = vsel %vm114_vm1, %v164_v31, %v166_v41 }
  0xaa   :  { %4114 = vmatmul.mubr.msk.f32.gmra.mxu0 %vm897_vm8, %v859_v46 }
  0xab   :  { %v353_v51 = vpop.permute.xlu1 %352  ;;  %v351_v52 = vpop.permute.xlu0 %350 }
  0xac   :  { %v794_v4 = vsel %vm787_vm5, %v761_v2, %v351_v52  ;;  %v795_v15 = vsel %vm787_vm5, %v762_v11, %v353_v51  ;;  %v643_v51 = vsel %vm594_vm3, %v640_v24, %v642_v42  ;;  %v484_v2 = vrot.slane %v5043_v26, 3 }
  0xad   :  { %540 = vrot.lane.b32.xlu1 %v479_v47, %s4484_s21  ;;  %538 = vrot.lane.b32.xlu0 %v477_v49, %s4484_s21  ;;  %v324_v47 = vrot.slane %v5043_v26, 2  ;;  %v326_v49 = vrot.slane %v5056_v35, 2 }
  0xaf   :  { %v513_v61 = vpop.permute.xlu1 %512  ;;  %v511_v16 = vpop.permute.xlu0 %510  ;;  %v327_v59 = vsel %vm274_vm0, %v324_v47, %v326_v49 }
  0xb0   :  { %v827_v8 = vsel %vm820_vm6, %v794_v4, %v511_v16  ;;  %v828_v23 = vsel %vm820_vm6, %v795_v15, %v513_v61  ;;  %v325_v16 = vsel %vm274_vm0, %v322_v3, %v324_v47  ;;  %v487_v3 = vsel %vm434_vm2, %v484_v2, %v486_v0  ;;  %v5102_v15 = vld [vmem:[%s6349_s0 + $0xe0] sm:$0xff] }
  0xb1   :  { %222 = vrot.lane.b32.xlu1 %v161_v55, %s4483_s25  ;;  %698 = vrot.lane.b32.xlu0 %v637_v56, %s4485_s26  ;;  %v490_v47 = vrot.slane %v5102_v15, 3 }
  0xb3   :  { %v195_v10 = vpop.permute.xlu1 %194  ;;  %v671_v1 = vpop.permute.xlu0 %670 }
  0xb4   :  { %v860_v44 = vsel %vm853_vm7, %v827_v8, %v671_v1  ;;  %v763_v46 = vsel %vm754_vm4, %v4702_v62, %v195_v10  ;;  %v485_v10 = vsel %vm434_vm2, %v482_v22, %v484_v2  ;;  %v170_v22 = vrot.slane %v5102_v15, 1 }
  0xb5   :  { %224 = vrot.lane.b32.xlu1 %v163_v5, %s4483_s25  ;;  %700 = vrot.lane.b32.xlu0 %v639_v7, %s4485_s26  ;;  %v5089_v7 = vld [vmem:[%s6349_s0 + $0xd8] sm:$0xff] }
  0xb6   :  { %4116 = vmatprep.mubr.msk.f32.mxu0 %vm897_vm8, %v860_v44  ;;  %v168_v1 = vrot.slane %v5089_v7, 1  ;;  %v644_v44 = vrot.slane %v5043_v26, 4 }
  0xb7   :  { %v197_v25 = vpop.permute.xlu1 %196  ;;  %v673_v57 = vpop.permute.xlu0 %672 }
  0xb8   :  { %v861_v28 = vsel %vm853_vm7, %v828_v23, %v673_v57  ;;  %v764_v58 = vsel %vm754_vm4, %v4725_v14, %v197_v25  ;;  %v645_v19 = vsel %vm594_vm3, %v642_v42, %v644_v44  ;;  %v646_v23 = vrot.slane %v5056_v35, 4 }
  0xb9   :  { %384 = vrot.lane.b32.xlu1 %v323_v12, %s4482_s24  ;;  %382 = vrot.lane.b32.xlu0 %v321_v17, %s4482_s24  ;;  %v169_v17 = vsel %vm114_vm1, %v166_v41, %v168_v1  ;;  %v171_v24 = vsel %vm114_vm1, %v168_v1, %v170_v22 }
  0xba   :  { %4117 = vmatmul.mubr.msk.f32.gmra.mxu0 %vm897_vm8, %v861_v28 }
  0xbb   :  { %v357_v32 = vpop.permute.xlu1 %356  ;;  %v355_v33 = vpop.permute.xlu0 %354 }
  0xbc   :  { %v796_v50 = vsel %vm787_vm5, %v763_v46, %v355_v33  ;;  %v797_v61 = vsel %vm787_vm5, %v764_v58, %v357_v32  ;;  %v647_v32 = vsel %vm594_vm3, %v644_v44, %v646_v23  ;;  %v488_v46 = vrot.slane %v5089_v7, 3 }
  0xbd   :  { %544 = vrot.lane.b32.xlu1 %v483_v27, %s4484_s21  ;;  %542 = vrot.lane.b32.xlu0 %v481_v30, %s4484_s21  ;;  %v328_v27 = vrot.slane %v5089_v7, 2  ;;  %v330_v30 = vrot.slane %v5102_v15, 2 }
  0xbf   :  { %v517_v43 = vpop.permute.xlu1 %516  ;;  %v515_v39 = vpop.permute.xlu0 %514  ;;  %v331_v42 = vsel %vm274_vm0, %v328_v27, %v330_v30 }
  0xc0   :  { %v829_v52 = vsel %vm820_vm6, %v796_v50, %v515_v39  ;;  %v830_v4 = vsel %vm820_vm6, %v797_v61, %v517_v43  ;;  %v329_v39 = vsel %vm274_vm0, %v326_v49, %v328_v27  ;;  %v491_v49 = vsel %vm434_vm2, %v488_v46, %v490_v47  ;;  %v5148_v61 = vld [vmem:[%s6349_s0 + $0xf0] sm:$0xff] }
  0xc1   :  { %226 = vrot.lane.b32.xlu1 %v165_v36, %s4483_s25  ;;  %702 = vrot.lane.b32.xlu0 %v641_v37, %s4485_s26  ;;  %v494_v27 = vrot.slane %v5148_v61, 3 }
  0xc3   :  { %v199_v55 = vpop.permute.xlu1 %198  ;;  %v675_v56 = vpop.permute.xlu0 %674 }
  0xc4   :  { %v862_v62 = vsel %vm853_vm7, %v829_v52, %v675_v56  ;;  %v765_v28 = vsel %vm754_vm4, %v4736_v20, %v199_v55  ;;  %v489_v55 = vsel %vm434_vm2, %v486_v0, %v488_v46  ;;  %v174_v0 = vrot.slane %v5148_v61, 1 }
  0xc5   :  { %228 = vrot.lane.b32.xlu1 %v167_v6, %s4483_s25  ;;  %704 = vrot.lane.b32.xlu0 %v643_v51, %s4485_s26  ;;  %v5135_v51 = vld [vmem:[%s6349_s0 + $0xe8] sm:$0xff]  ;;  %v654_v46 = vrot.slane %v5148_v61, 4 }
  0xc6   :  { %4119 = vmatprep.mubr.msk.f32.mxu0 %vm897_vm8, %v862_v62  ;;  %v172_v56 = vrot.slane %v5135_v51, 1  ;;  %v648_v62 = vrot.slane %v5089_v7, 4 }
  0xc7   :  { %v201_v5 = vpop.permute.xlu1 %200  ;;  %v677_v14 = vpop.permute.xlu0 %676 }
  0xc8   :  { %v863_v8 = vsel %vm853_vm7, %v830_v4, %v677_v14  ;;  %v766_v41 = vsel %vm754_vm4, %v4759_v34, %v201_v5  ;;  %v649_v2 = vsel %vm594_vm3, %v646_v23, %v648_v62  ;;  %v650_v4 = vrot.slane %v5102_v15, 4 }
  0xc9   :  { %388 = vrot.lane.b32.xlu1 %v327_v59, %s4482_s24  ;;  %386 = vrot.lane.b32.xlu0 %v325_v16, %s4482_s24  ;;  %v173_v16 = vsel %vm114_vm1, %v170_v22, %v172_v56  ;;  %v175_v44 = vsel %vm114_vm1, %v172_v56, %v174_v0 }
  0xca   :  { %4120 = vmatmul.mubr.msk.f32.gmra.mxu0 %vm897_vm8, %v863_v8 }
  0xcb   :  { %v361_v11 = vpop.permute.xlu1 %360  ;;  %v359_v12 = vpop.permute.xlu0 %358 }
  0xcc   :  { %v798_v31 = vsel %vm787_vm5, %v765_v28, %v359_v12  ;;  %v799_v43 = vsel %vm787_vm5, %v766_v41, %v361_v11  ;;  %v651_v11 = vsel %vm594_vm3, %v648_v62, %v650_v4  ;;  %v492_v28 = vrot.slane %v5135_v51, 3 }
  0xcd   :  { %548 = vrot.lane.b32.xlu1 %v487_v3, %s4484_s21  ;;  %546 = vrot.lane.b32.xlu0 %v485_v10, %s4484_s21  ;;  %v332_v3 = vrot.slane %v5135_v51, 2  ;;  %v334_v10 = vrot.slane %v5148_v61, 2 }
  0xcf   :  { %v521_v25 = vpop.permute.xlu1 %520  ;;  %v519_v57 = vpop.permute.xlu0 %518  ;;  %v335_v23 = vsel %vm274_vm0, %v332_v3, %v334_v10 }
  0xd0   :  { %v831_v33 = vsel %vm820_vm6, %v798_v31, %v519_v57  ;;  %v832_v50 = vsel %vm820_vm6, %v799_v43, %v521_v25  ;;  %v333_v57 = vsel %vm274_vm0, %v330_v30, %v332_v3  ;;  %v495_v30 = vsel %vm434_vm2, %v492_v28, %v494_v27 }
  0xd1   :  { %230 = vrot.lane.b32.xlu1 %v169_v17, %s4483_s25  ;;  %706 = vrot.lane.b32.xlu0 %v645_v19, %s4485_s26 }
  0xd3   :  { %v203_v36 = vpop.permute.xlu1 %202  ;;  %v679_v37 = vpop.permute.xlu0 %678 }
  0xd4   :  { %v864_v20 = vsel %vm853_vm7, %v831_v33, %v679_v37  ;;  %v767_v8 = vsel %vm754_vm4, %v4770_v40, %v203_v36  ;;  %v493_v36 = vsel %vm434_vm2, %v490_v47, %v492_v28 }
  0xd5   :  { %232 = vrot.lane.b32.xlu1 %v171_v24, %s4483_s25  ;;  %708 = vrot.lane.b32.xlu0 %v647_v32, %s4485_s26  ;;  %v5181_v32 = vld [vmem:[%s6349_s0 + $0xf8] sm:$0xff] }
  0xd6   :  { %4122 = vmatprep.mubr.msk.f32.mxu0 %vm897_vm8, %v864_v20  ;;  %v176_v37 = vrot.slane %v5181_v32, 1  ;;  %v652_v20 = vrot.slane %v5135_v51, 4 }
  0xd7   :  { %v205_v6 = vpop.permute.xlu1 %204  ;;  %v681_v34 = vpop.permute.xlu0 %680 }
  0xd8   :  { %v865_v52 = vsel %vm853_vm7, %v832_v50, %v681_v34  ;;  %v768_v22 = vsel %vm754_vm4, %v4793_v54, %v205_v6  ;;  %v177_v43 = vsel %vm114_vm1, %v174_v0, %v176_v37 }
  0xd9   :  { %392 = vrot.lane.b32.xlu1 %v331_v42, %s4482_s24  ;;  %390 = vrot.lane.b32.xlu0 %v329_v39, %s4482_s24  ;;  %v653_v39 = vsel %vm594_vm3, %v650_v4, %v652_v20 }
  0xda   :  { %4123 = vmatmul.mubr.msk.f32.gmra.mxu0 %vm897_vm8, %v865_v52  ;;  %v655_v52 = vsel %vm594_vm3, %v652_v20, %v654_v46 }
  0xdb   :  { %v365_v58 = vpop.permute.xlu1 %364  ;;  %v363_v59 = vpop.permute.xlu0 %362 }
  0xdc   :  { %v800_v1 = vsel %vm787_vm5, %v767_v8, %v363_v59  ;;  %v801_v25 = vsel %vm787_vm5, %v768_v22, %v365_v58  ;;  %v656_v8 = vrot.slane %v5181_v32, 4 }
  0xdd   :  { %552 = vrot.lane.b32.xlu1 %v491_v49, %s4484_s21  ;;  %550 = vrot.lane.b32.xlu0 %v489_v55, %s4484_s21  ;;  %v336_v49 = vrot.slane %v5181_v32, 2 }
  0xdf   :  { %v525_v5 = vpop.permute.xlu1 %524  ;;  %v523_v14 = vpop.permute.xlu0 %522 }
  0xe0   :  { %v833_v12 = vsel %vm820_vm6, %v800_v1, %v523_v14  ;;  %v834_v31 = vsel %vm820_vm6, %v801_v25, %v525_v5  ;;  %v657_v1 = vsel %vm594_vm3, %v654_v46, %v656_v8 }
  0xe1   :  { %234 = vrot.lane.b32.xlu1 %v173_v16, %s4483_s25  ;;  %710 = vrot.lane.b32.xlu0 %v649_v2, %s4485_s26  ;;  %v337_v16 = vsel %vm274_vm0, %v334_v10, %v336_v49  ;;  %v496_v2 = vrot.slane %v5181_v32, 3 }
  0xe3   :  { %v207_v17 = vpop.permute.xlu1 %206  ;;  %v683_v19 = vpop.permute.xlu0 %682 }
  0xe4   :  { %v866_v40 = vsel %vm853_vm7, %v833_v12, %v683_v19  ;;  %v769_v47 = vsel %vm754_vm4, %v4804_v60, %v207_v17 }
  0xe5   :  { %236 = vrot.lane.b32.xlu1 %v175_v44, %s4483_s25  ;;  %712 = vrot.lane.b32.xlu0 %v651_v11, %s4485_s26 }
  0xe6   :  { %4125 = vmatprep.mubr.msk.f32.mxu0 %vm897_vm8, %v866_v40 }
  0xe7   :  { %v209_v24 = vpop.permute.xlu1 %208  ;;  %v685_v54 = vpop.permute.xlu0 %684 }
  0xe8   :  { %v867_v33 = vsel %vm853_vm7, %v834_v31, %v685_v54  ;;  %v770_v59 = vsel %vm754_vm4, %v4827_v13, %v209_v24  ;;  %v497_v13 = vsel %vm434_vm2, %v494_v27, %v496_v2 }
  0xe9   :  { %396 = vrot.lane.b32.xlu1 %v335_v23, %s4482_s24  ;;  %394 = vrot.lane.b32.xlu0 %v333_v57, %s4482_s24 }
  0xea   :  { %4126 = vmatmul.mubr.msk.f32.gmra.mxu0 %vm897_vm8, %v867_v33 }
  0xeb   :  { %v369_v41 = vpop.permute.xlu1 %368  ;;  %v367_v42 = vpop.permute.xlu0 %366 }
  0xec   :  { %v802_v34 = vsel %vm787_vm5, %v769_v47, %v367_v42  ;;  %v803_v60 = vsel %vm787_vm5, %v770_v59, %v369_v41 }
  0xed   :  { %556 = vrot.lane.b32.xlu1 %v495_v30, %s4484_s21  ;;  %554 = vrot.lane.b32.xlu0 %v493_v36, %s4484_s21 }
  0xef   :  { %v529_v50 = vpop.permute.xlu1 %528  ;;  %v527_v6 = vpop.permute.xlu0 %526 }
  0xf0   :  { %v835_v55 = vsel %vm820_vm6, %v802_v34, %v527_v6  ;;  %v836_v0 = vsel %vm820_vm6, %v803_v60, %v529_v50 }
  0xf1   :  { %238 = vrot.lane.b32.xlu1 %v177_v43, %s4483_s25  ;;  %714 = vrot.lane.b32.xlu0 %v653_v39, %s4485_s26 }
  0xf3   :  { %v211_v56 = vpop.permute.xlu1 %210  ;;  %v687_v62 = vpop.permute.xlu0 %686 }
  0xf4   :  { %v868_v58 = vsel %vm853_vm7, %v835_v55, %v687_v62  ;;  %v771_v12 = vsel %vm754_vm4, %v4838_v21, %v211_v56 }
  0xf5   :  { %240 = vrot.lane.b32.xlu1 %v176_v37, %s4483_s25  ;;  %716 = vrot.lane.b32.xlu0 %v655_v52, %s4485_s26 }
  0xf6   :  { %4128 = vmatprep.mubr.msk.f32.mxu0 %vm897_vm8, %v868_v58 }
  0xf7   :  { %v213_v4 = vpop.permute.xlu1 %212  ;;  %v689_v5 = vpop.permute.xlu0 %688 }
  0xf8   :  { %v869_v14 = vsel %vm853_vm7, %v836_v0, %v689_v5  ;;  %v772_v25 = vsel %vm754_vm4, %v4861_v38, %v213_v4 }
  0xf9   :  { %400 = vrot.lane.b32.xlu1 %v336_v49, %s4482_s24  ;;  %398 = vrot.lane.b32.xlu0 %v337_v16, %s4482_s24 }
  0xfa   :  { %4129 = vmatmul.mubr.msk.f32.gmra.mxu0 %vm897_vm8, %v869_v14 }
  0xfb   :  { %v373_v3 = vpop.permute.xlu1 %372  ;;  %v371_v10 = vpop.permute.xlu0 %370 }
  0xfc   :  { %v804_v17 = vsel %vm787_vm5, %v771_v12, %v371_v10  ;;  %v805_v57 = vsel %vm787_vm5, %v772_v25, %v373_v3 }
  0xfd   :  { %560 = vrot.lane.b32.xlu1 %v496_v2, %s4484_s21  ;;  %558 = vrot.lane.b32.xlu0 %v497_v13, %s4484_s21 }
  0xff   :  { %v533_v44 = vpop.permute.xlu1 %532  ;;  %v531_v11 = vpop.permute.xlu0 %530 }
 0x100   :  { %v837_v19 = vsel %vm820_vm6, %v804_v17, %v531_v11  ;;  %v838_v21 = vsel %vm820_vm6, %v805_v57, %v533_v44 }
 0x101   :  { %720 = vrot.lane.b32.xlu1 %v656_v8, %s4485_s26  ;;  %718 = vrot.lane.b32.xlu0 %v657_v1, %s4485_s26  ;;  %s4490_s26 = smov 32  }
 0x103   :  { %v215_v40 = vpop.permute.xlu1 %214  ;;  %v691_v22 = vpop.permute.xlu0 %690 }
 0x104   :  { %v870_v23 = vsel %vm853_vm7, %v837_v19, %v691_v22  ;;  %v773_v36 = vsel %vm754_vm4, %v4872_v48, %v215_v40 }
 0x105   :  { %4131 = vmatprep.mubr.msk.f32.mxu0 %vm897_vm8, %v870_v23 }
 0x107   :  { %v217_v28 = vpop.permute.xlu1 %216  ;;  %v693_v27 = vpop.permute.xlu0 %692 }
 0x108   :  { %v871_v31 = vsel %vm853_vm7, %v838_v21, %v693_v27  ;;  %v774_v43 = vsel %vm754_vm4, %v4905_v18, %v217_v28 }
 0x109   :  { %4132 = vmatmul.mubr.msk.f32.gmra.mxu0 %vm897_vm8, %v871_v31 }
 0x10b   :  { %v377_v24 = vpop.permute.xlu1 %376  ;;  %v375_v54 = vpop.permute.xlu0 %374 }
 0x10c   :  { %v806_v38 = vsel %vm787_vm5, %v773_v36, %v375_v54  ;;  %v807_v39 = vsel %vm787_vm5, %v774_v43, %v377_v24 }
 0x10f   :  { %v537_v33 = vpop.permute.xlu1 %536  ;;  %v535_v30 = vpop.permute.xlu0 %534 }
 0x110   :  { %v839_v37 = vsel %vm820_vm6, %v806_v38, %v535_v30  ;;  %v840_v46 = vsel %vm820_vm6, %v807_v39, %v537_v33 }
 0x113   :  { %v219_v20 = vpop.permute.xlu1 %218  ;;  %v695_v41 = vpop.permute.xlu0 %694 }
 0x114   :  { %v872_v42 = vsel %vm853_vm7, %v839_v37, %v695_v41  ;;  %v775_v55 = vsel %vm754_vm4, %v4918_v29, %v219_v20  ;;  %v5287_v20 = vld [vmem:[%s6351_s2] ss:$0 sm:$0xff]  ;;  %s4489_s2 = smov 16  }
 0x115   :  { %4134 = vmatprep.mubr.msk.f32.mxu0 %vm897_vm8, %v872_v42 }
 0x117   :  { %v221_v50 = vpop.permute.xlu1 %220  ;;  %v697_v6 = vpop.permute.xlu0 %696 }
 0x118   :  { %v873_v48 = vsel %vm853_vm7, %v840_v46, %v697_v6  ;;  %v776_v60 = vsel %vm754_vm4, %v4951_v63, %v221_v50 }
 0x119   :  { %4135 = vmatmul.mubr.msk.f32.gmra.mxu0 %vm897_vm8, %v873_v48 }
 0x11b   :  { %v381_v47 = vpop.permute.xlu1 %380  ;;  %v379_v34 = vpop.permute.xlu0 %378 }
 0x11c   :  { %v808_v18 = vsel %vm787_vm5, %v775_v55, %v379_v34  ;;  %v809_v16 = vsel %vm787_vm5, %v776_v60, %v381_v47 }
 0x11f   :  { %v541_v52 = vpop.permute.xlu1 %540  ;;  %v539_v49 = vpop.permute.xlu0 %538 }
 0x120   :  { %v841_v56 = vsel %vm820_vm6, %v808_v18, %v539_v49  ;;  %v842_v2 = vsel %vm820_vm6, %v809_v16, %v541_v52 }
 0x123   :  { %v223_v62 = vpop.permute.xlu1 %222  ;;  %v699_v58 = vpop.permute.xlu0 %698 }
 0x124   :  { %v874_v59 = vsel %vm853_vm7, %v841_v56, %v699_v58  ;;  %v777_v3 = vsel %vm754_vm4, %v4964_v9, %v223_v62 }
 0x125   :  { %4137 = vmatprep.mubr.msk.f32.mxu0 %vm897_vm8, %v874_v59 }
 0x127   :  { %v225_v0 = vpop.permute.xlu1 %224  ;;  %v701_v4 = vpop.permute.xlu0 %700 }
 0x128   :  { %v875_v29 = vsel %vm853_vm7, %v842_v2, %v701_v4  ;;  %v778_v12 = vsel %vm754_vm4, %v4997_v45, %v225_v0 }
 0x129   :  { %4138 = vmatmul.mubr.msk.f32.gmra.mxu0 %vm897_vm8, %v875_v29 }
 0x12b   :  { %v385_v5 = vpop.permute.xlu1 %384  ;;  %v383_v14 = vpop.permute.xlu0 %382 }
 0x12c   :  { %v810_v63 = vsel %vm787_vm5, %v777_v3, %v383_v14  ;;  %v811_v17 = vsel %vm787_vm5, %v778_v12, %v385_v5 }
 0x12f   :  { %v545_v13 = vpop.permute.xlu1 %544  ;;  %v543_v8 = vpop.permute.xlu0 %542 }
 0x130   :  { %v843_v10 = vsel %vm820_vm6, %v810_v63, %v543_v8  ;;  %v844_v19 = vsel %vm820_vm6, %v811_v17, %v545_v13 }
 0x133   :  { %v227_v1 = vpop.permute.xlu1 %226  ;;  %v703_v44 = vpop.permute.xlu0 %702 }
 0x134   :  { %v876_v11 = vsel %vm853_vm7, %v843_v10, %v703_v44  ;;  %v779_v28 = vsel %vm754_vm4, %v5010_v53, %v227_v1 }
 0x135   :  { %4140 = vmatprep.mubr.msk.f32.mxu0 %vm897_vm8, %v876_v11 }
 0x137   :  { %v229_v40 = vpop.permute.xlu1 %228  ;;  %v705_v22 = vpop.permute.xlu0 %704 }
 0x138   :  { %v877_v9 = vsel %vm853_vm7, %v844_v19, %v705_v22  ;;  %v780_v33 = vsel %vm754_vm4, %v5043_v26, %v229_v40 }
 0x139   :  { %4141 = vmatmul.mubr.msk.f32.gmra.mxu0 %vm897_vm8, %v877_v9 }
 0x13b   :  { %v389_v23 = vpop.permute.xlu1 %388  ;;  %v387_v25 = vpop.permute.xlu0 %386 }
 0x13c   :  { %v812_v45 = vsel %vm787_vm5, %v779_v28, %v387_v25  ;;  %v813_v30 = vsel %vm787_vm5, %v780_v33, %v389_v23 }
 0x13f   :  { %v549_v57 = vpop.permute.xlu1 %548  ;;  %v547_v21 = vpop.permute.xlu0 %546 }
 0x140   :  { %v845_v27 = vsel %vm820_vm6, %v812_v45, %v547_v21  ;;  %v846_v36 = vsel %vm820_vm6, %v813_v30, %v549_v57 }
 0x143   :  { %v231_v31 = vpop.permute.xlu1 %230  ;;  %v707_v24 = vpop.permute.xlu0 %706 }
 0x144   :  { %v878_v54 = vsel %vm853_vm7, %v845_v27, %v707_v24  ;;  %v781_v34 = vsel %vm754_vm4, %v5056_v35, %v231_v31 }
 0x145   :  { %4143 = vmatprep.mubr.msk.f32.mxu0 %vm897_vm8, %v878_v54 }
 0x147   :  { %v233_v38 = vpop.permute.xlu1 %232  ;;  %v709_v37 = vpop.permute.xlu0 %708 }
 0x148   :  { %v879_v53 = vsel %vm853_vm7, %v846_v36, %v709_v37  ;;  %v782_v16 = vsel %vm754_vm4, %v5089_v7, %v233_v38 }
 0x149   :  { %4144 = vmatmul.mubr.msk.f32.gmra.mxu0 %vm897_vm8, %v879_v53 }
 0x14a   :  { %v4109_v41 = vpop.f32.mrf.mxu0 }
 0x14b   :  { %v1069_v26 = vadd.f32 %v4109_v41, %v5287_v20  ;;  %v393_v42 = vpop.permute.xlu1 %392  ;;  %v391_v43 = vpop.permute.xlu0 %390 }
 0x14c   :  { %v1063_v39 = vpop.f32.mrf.mxu0  ;;  %v814_v55 = vsel %vm787_vm5, %v781_v34, %v391_v43  ;;  %v815_v35 = vsel %vm787_vm5, %v782_v16, %v393_v42 }
 0x14d   :  { %v1223_v46 = vmax.f32 %v1069_v26, 0.0  ;;  %v1064_v50 = vadd.f32 %v5287_v20, %v1063_v39 }
 0x14f   :  { %v1222_v6 = vmax.f32 %v1064_v50, 0.0  ;;  %v553_v48 = vpop.permute.xlu1 %552  ;;  %v551_v47 = vpop.permute.xlu0 %550  ;;  %v1287_v52 = vrot.slane %v1223_v46, 1 }
 0x150   :  { %v847_v56 = vsel %vm820_vm6, %v814_v55, %v551_v47  ;;  %v848_v2 = vsel %vm820_vm6, %v815_v35, %v553_v48 }
 0x151   :  { %v1286_v49 = vrot.slane %v1222_v6, 1 }
 0x153   :  { %v1288_v18 = vsel %vm114_vm1, %v1286_v49, %v1287_v52  ;;  %v235_v62 = vpop.permute.xlu1 %234  ;;  %v711_v58 = vpop.permute.xlu0 %710 }
 0x154   :  { %v5297_v59 = vmax.f32 %v1222_v6, %v1288_v18  ;;  %v880_v60 = vsel %vm853_vm7, %v847_v56, %v711_v58  ;;  %v783_v11 = vsel %vm754_vm4, %v5102_v15, %v235_v62 }
 0x155   :  { %4146 = vmatprep.mubr.msk.f32.mxu0 %vm897_vm8, %v880_v60 }
 0x157   :  { %v237_v0 = vpop.permute.xlu1 %236  ;;  %v713_v4 = vpop.permute.xlu0 %712 }
 0x158   :  { %v881_v29 = vsel %vm853_vm7, %v848_v2, %v713_v4  ;;  %v784_v15 = vsel %vm754_vm4, %v5135_v51, %v237_v0 }
 0x159   :  { %4147 = vmatmul.mubr.msk.f32.gmra.mxu0 %vm897_vm8, %v881_v29 }
 0x15a   :  { %v4112_v5 = vpop.f32.mrf.mxu0 }
 0x15b   :  { %v1079_v14 = vadd.f32 %v4112_v5, %v5287_v20  ;;  %v397_v13 = vpop.permute.xlu1 %396  ;;  %v395_v8 = vpop.permute.xlu0 %394 }
 0x15c   :  { %v1073_v3 = vpop.f32.mrf.mxu0  ;;  %v816_v19 = vsel %vm787_vm5, %v783_v11, %v395_v8  ;;  %v817_v45 = vsel %vm787_vm5, %v784_v15, %v397_v13 }
 0x15d   :  { %v1225_v63 = vmax.f32 %v1079_v14, 0.0  ;;  %v1074_v7 = vadd.f32 %v5287_v20, %v1073_v3  ;;  %v1413_v3 = vlaneseq }
 0x15f   :  { %v1224_v10 = vmax.f32 %v1074_v7, 0.0  ;;  %v557_v1 = vpop.permute.xlu1 %556  ;;  %v555_v44 = vpop.permute.xlu0 %554  ;;  %v1291_v12 = vrot.slane %v1225_v63, 1  ;;  %v5365_v7 = vand.u32 127, %v1413_v3 }
 0x160   :  { %v849_v22 = vsel %vm820_vm6, %v816_v19, %v555_v44  ;;  %v850_v27 = vsel %vm820_vm6, %v817_v45, %v557_v1  ;;  %v6365_v44 = vmov 0.0  }
 0x161   :  { %v1289_v17 = vrot.slane %v1224_v10, 1 }
 0x163   :  { %v1292_v40 = vsel %vm114_vm1, %v1289_v17, %v1291_v12  ;;  %v239_v9 = vpop.permute.xlu1 %238  ;;  %v715_v23 = vpop.permute.xlu0 %714  ;;  %v1290_v25 = vsel %vm114_vm1, %v1287_v52, %v1289_v17 }
 0x164   :  { %v5315_v57 = vmax.f32 %v1224_v10, %v1292_v40  ;;  %v882_v21 = vsel %vm853_vm7, %v849_v22, %v715_v23  ;;  %v5318_v28 = vmax.f32 %v1223_v46, %v1290_v25  ;;  %v785_v43 = vsel %vm754_vm4, %v5148_v61, %v239_v9 }
 0x165   :  { %4149 = vmatprep.mubr.msk.f32.mxu0 %vm897_vm8, %v882_v21  ;;  %v5368_v10 = vadd.s32 128, %v5365_v7 }
 0x167   :  { %v241_v31 = vpop.permute.xlu1 %240  ;;  %v717_v24 = vpop.permute.xlu0 %716 }
 0x168   :  { %v883_v54 = vsel %vm853_vm7, %v850_v27, %v717_v24  ;;  %v786_v39 = vsel %vm754_vm4, %v5181_v32, %v241_v31 }
 0x169   :  { %4150 = vmatmul.mubr.msk.f32.gmra.mxu0 %vm897_vm8, %v883_v54 }
 0x16a   :  { %v4115_v33 = vpop.f32.mrf.mxu0 }
 0x16b   :  { %v1089_v30 = vadd.f32 %v4115_v33, %v5287_v20  ;;  %v401_v36 = vpop.permute.xlu1 %400  ;;  %v399_v38 = vpop.permute.xlu0 %398 }
 0x16c   :  { %v1083_v37 = vpop.f32.mrf.mxu0  ;;  %v819_v6 = vsel %vm787_vm5, %v786_v39, %v401_v36  ;;  %v818_v48 = vsel %vm787_vm5, %v785_v43, %v399_v38 }
 0x16d   :  { %v1227_v53 = vmax.f32 %v1089_v30, 0.0  ;;  %v1084_v51 = vadd.f32 %v5287_v20, %v1083_v37 }
 0x16f   :  { %v1226_v41 = vmax.f32 %v1084_v51, 0.0  ;;  %v561_v26 = vpop.permute.xlu1 %560  ;;  %v559_v42 = vpop.permute.xlu0 %558  ;;  %v1295_v46 = vrot.slane %v1227_v53, 1 }
 0x170   :  { %v852_v34 = vsel %vm820_vm6, %v819_v6, %v561_v26  ;;  %v851_v52 = vsel %vm820_vm6, %v818_v48, %v559_v42 }
 0x171   :  { %v1293_v50 = vrot.slane %v1226_v41, 1 }
 0x173   :  { %v1296_v47 = vsel %vm114_vm1, %v1293_v50, %v1295_v46  ;;  %v721_v49 = vpop.permute.xlu1 %720  ;;  %v719_v55 = vpop.permute.xlu0 %718  ;;  %v1294_v18 = vsel %vm114_vm1, %v1291_v12, %v1293_v50 }
 0x174   :  { %v5339_v61 = vmax.f32 %v1226_v41, %v1296_v47  ;;  %v885_v32 = vsel %vm853_vm7, %v852_v34, %v721_v49  ;;  %v884_v56 = vsel %vm853_vm7, %v851_v52, %v719_v55  ;;  %v5343_v62 = vmax.f32 %v1225_v63, %v1294_v18 }
 0x175   :  { %4152 = vmatprep.mubr.msk.f32.mxu0 %vm897_vm8, %v884_v56  ;;  %v5363_v63 = vshrl.u32 %v1413_v3, 7 }
 0x176   :  { %4153 = vmatmul.mubr.msk.f32.gmra.mxu0 %vm897_vm8, %v885_v32 }
 0x177   :  { %v1711_v1 = vmul.u32 2, %v5363_v63 }
 0x179   :  { %vm1754_vm9 = vcmp.eq.s32.totalorder %v5368_v10, %v1711_v1  ;;  %vm1753_vm4 = vcmp.eq.s32.totalorder %v5365_v7, %v1711_v1 }
 0x17a   :  { %v4118_v58 = vpop.f32.mrf.mxu0  ;;  %v1782_v11 = vsel %vm1754_vm9, 1.0, %v6365_v44 }
 0x17b   :  { %v5348_v60 = vadd.f32 %v4118_v58, %v5287_v20  ;;  %3788 = vmatprep.mubr.msk.f32.mxu1 %vm1809_vm10, %v1782_v11 }
 0x17c   :  { %v1093_v16 = vpop.f32.mrf.mxu0 }
 0x17d   :  { %v1229_v35 = vmax.f32 %v5348_v60, 0.0  ;;  %v1094_v2 = vadd.f32 %v5287_v20, %v1093_v16 }
 0x17f   :  { %v1228_v0 = vmax.f32 %v1094_v2, 0.0  ;;  %v5354_v4 = vrot.slane %v1229_v35, 1 }
 0x181   :  { %v1297_v29 = vrot.slane %v1228_v0, 1 }
 0x183   :  { %v1300_v5 = vsel %vm114_vm1, %v1297_v29, %v5354_v4  ;;  %v1298_v14 = vsel %vm114_vm1, %v1295_v46, %v1297_v29 }
 0x184   :  { %v5359_v13 = vmax.f32 %v1228_v0, %v1300_v5  ;;  %v5361_v8 = vmax.f32 %v1227_v53, %v1298_v14 }
 0x18a   :  { %v4121_v12 = vpop.f32.mrf.mxu0 }
 0x18b   :  { %v5396_v42 = vadd.f32 %v4121_v12, %v5287_v20 }
 0x18c   :  { %v1103_v17 = vpop.f32.mrf.mxu0 }
 0x18d   :  { %v5405_v50 = vadd.f32 %v5287_v20, %v1103_v17  ;;  %v1231_v55 = vmax.f32 %v5396_v42, 0.0 }
 0x18f   :  { %v1230_v16 = vmax.f32 %v5405_v50, 0.0 }
 0x19a   :  { %v4124_v19 = vpop.f32.mrf.mxu0 }
 0x19b   :  { %v5409_v47 = vadd.f32 %v4124_v19, %v5287_v20 }
 0x19c   :  { %v1113_v40 = vpop.f32.mrf.mxu0 }
 0x19d   :  { %v5417_v18 = vadd.f32 %v5287_v20, %v1113_v40  ;;  %v1233_v5 = vmax.f32 %v5409_v47, 0.0 }
 0x1aa   :  { %v4127_v22 = vpop.f32.mrf.mxu0 }
 0x1ab   :  { %v5399_v43 = vadd.f32 %v4127_v22, %v5287_v20 }
 0x1ac   :  { %v1123_v9 = vpop.f32.mrf.mxu0 }
 0x1ad   :  { %v5402_v39 = vadd.f32 %v5287_v20, %v1123_v9  ;;  %v1235_v32 = vmax.f32 %v5399_v43, 0.0  ;;  %v1232_v9 = vmax.f32 %v5417_v18, 0.0 }
 0x1af   :  { %v1234_v56 = vmax.f32 %v5402_v39, 0.0 }
 0x1ba   :  { %v4130_v23 = vpop.f32.mrf.mxu0 }
 0x1bb   :  { %v1139_v26 = vadd.f32 %v4130_v23, %v5287_v20  ;;  %v1311_v23 = vrot.slane %v1235_v32, 1 }
 0x1bc   :  { %v1133_v25 = vpop.f32.mrf.mxu0 }
 0x1bd   :  { %v1134_v51 = vadd.f32 %v5287_v20, %v1133_v25  ;;  %v1237_v34 = vmax.f32 %v1139_v26, 0.0  ;;  %v1309_v25 = vrot.slane %v1234_v56, 1 }
 0x1bf   :  { %v1236_v6 = vmax.f32 %v1134_v51, 0.0  ;;  %v1315_v14 = vrot.slane %v1237_v34, 1 }
 0x1c1   :  { %v1313_v2 = vrot.slane %v1236_v6, 1 }
 0x1c9   :  { %v5376_v21 = vpop.f32.mrf.mxu0 }
 0x1cb   :  { %v1143_v15 = vpop.f32.mrf.mxu0 }
 0x1cc   :  { %v5392_v41 = vadd.f32 %v5287_v20, %v1143_v15  ;;  %v1316_v15 = vsel %vm114_vm1, %v1313_v2, %v1315_v14 }
 0x1ce   :  { %v1238_v48 = vmax.f32 %v5392_v41, 0.0 }
 0x1d0   :  { %v5424_v0 = vrot.slane %v1238_v48, 1 }
 0x1d9   :  { %v5378_v45 = vpop.f32.mrf.mxu0 }
 0x1db   :  { %v5380_v27 = vpop.f32.mrf.mxu0 }
 0x1e9   :  { %v5382_v31 = vpop.f32.mrf.mxu0 }
 0x1eb   :  { %v5384_v24 = vpop.f32.mrf.mxu0 }
 0x1f9   :  { %v5386_v54 = vpop.f32.mrf.mxu0 }
 0x1fb   :  { %v5388_v33 = vpop.f32.mrf.mxu0 }
 0x209   :  { %v4145_v30 = vpop.f32.mrf.mxu0 }
 0x20a   :  { %v5441_v51 = vadd.f32 %v4145_v30, %v5287_v20  ;;  %v1395_v30 = vmax.f32 %v1236_v6, %v1316_v15 }
 0x20b   :  { %v1183_v36 = vpop.f32.mrf.mxu0 }
 0x20c   :  { %v5444_v26 = vadd.f32 %v5287_v20, %v1183_v36  ;;  %v1247_v44 = vmax.f32 %v5441_v51, 0.0 }
 0x20e   :  { %v1246_v6 = vmax.f32 %v5444_v26, 0.0 }
 0x219   :  { %v4148_v38 = vpop.f32.mrf.mxu0 }
 0x21a   :  { %v5429_v3 = vadd.f32 %v4148_v38, %v5287_v20 }
 0x21b   :  { %v1193_v37 = vpop.f32.mrf.mxu0 }
 0x21c   :  { %v5432_v11 = vadd.f32 %v5287_v20, %v1193_v37  ;;  %v1318_v37 = vsel %vm114_vm1, %v1315_v14, %v5424_v0  ;;  %v1249_v43 = vmax.f32 %v5429_v3, 0.0  ;;  %v1312_v14 = vsel %vm114_vm1, %v1309_v25, %v1311_v23 }
 0x21d   :  { %v1314_v3 = vsel %vm114_vm1, %v1311_v23, %v1313_v2  ;;  %v1303_v2 = vrot.slane %v1231_v55, 1 }
 0x21e   :  { %v1248_v39 = vmax.f32 %v5432_v11, 0.0  ;;  %v5457_v11 = vadd.f32 %v5386_v54, %v5287_v20  ;;  %v1339_v15 = vrot.slane %v1249_v43, 1  ;;  %v1301_v54 = vrot.slane %v1230_v16, 1 }
 0x229   :  { %v4151_v53 = vpop.f32.mrf.mxu0 }
 0x22a   :  { %v1209_v52 = vadd.f32 %v4151_v53, %v5287_v20 }
 0x22b   :  { %v1203_v46 = vpop.f32.mrf.mxu0 }
 0x22c   :  { %v5413_v49 = vadd.f32 %v5287_v20, %v1203_v46  ;;  %v1251_v17 = vmax.f32 %v1209_v52, 0.0 }
 0x22e   :  { %v1250_v19 = vmax.f32 %v5413_v49, 0.0  ;;  %v1343_v46 = vrot.slane %v1251_v17, 1 }
 0x230   :  { %v1341_v52 = vrot.slane %v1250_v19, 1 }
 0x232   :  { %v1342_v51 = vsel %vm114_vm1, %v1339_v15, %v1341_v52 }
 0x236   :  { %v4154_v58 = vpop.f32.mrf.mxu0 }
 0x237   :  { %v1219_v29 = vadd.f32 %v4154_v58, %v5287_v20  ;;  %v1307_v58 = vrot.slane %v1233_v5, 1 }
 0x238   :  { %v1213_v12 = vpop.f32.mrf.mxu0 }
 0x239   :  { %v1253_v40 = vmax.f32 %v1219_v29, 0.0  ;;  %v1214_v22 = vadd.f32 %v5287_v20, %v1213_v12  ;;  %v1305_v29 = vrot.slane %v1232_v9, 1  ;;  %v1396_v12 = vmax.f32 %v1237_v34, %v1318_v37 }
 0x23a   :  { %v1344_v37 = vsel %vm114_vm1, %v1341_v52, %v1343_v46  ;;  %v1310_v26 = vsel %vm114_vm1, %v1307_v58, %v1309_v25  ;;  %v1304_v25 = vsel %vm114_vm1, %v1301_v54, %v1303_v2 }
 0x23b   :  { %v1347_v53 = vrot.slane %v1253_v40, 1  ;;  %v1252_v38 = vmax.f32 %v1214_v22, 0.0  ;;  %v1308_v23 = vsel %vm114_vm1, %v1305_v29, %v1307_v58  ;;  %v1306_v58 = vsel %vm114_vm1, %v1303_v2, %v1305_v29 }
 0x23c   :  { %v1389_v47 = vmax.f32 %v1230_v16, %v1304_v25 }
 0x23d   :  { %v1345_v49 = vrot.slane %v1252_v38, 1  ;;  %v1412_v18 = vmax.f32 %v1253_v40, %v1347_v53  ;;  %v5461_v40 = vadd.f32 %v5287_v20, %v5388_v33 }
 0x23f   :  { %v1348_v22 = vsel %vm114_vm1, %v1345_v49, %v1347_v53  ;;  %3889 = vmatprep.subr.msk.mxu1 %vm1852_vm11, %v1412_v18  ;;  %v1346_v36 = vsel %vm114_vm1, %v1343_v46, %v1345_v49  ;;  %v1337_v53 = vrot.slane %v1248_v39, 1  ;;  %v1393_v49 = vmax.f32 %v1234_v56, %v1312_v14 }
 0x240   :  { %v1411_v34 = vmax.f32 %v1252_v38, %v1348_v22  ;;  %3890 = vmatpush3.msra.mxu1 %v1396_v12  ;;  %v1410_v33 = vmax.f32 %v1251_v17, %v1346_v36  ;;  %v1394_v38 = vmax.f32 %v1235_v32, %v1314_v3  ;;  %v5475_v46 = vadd.f32 %v5382_v31, %v5287_v20 }
 0x241   :  { %v5479_v18 = vadd.f32 %v5287_v20, %v5384_v24  ;;  %v1245_v12 = vmax.f32 %v5457_v11, 0.0  ;;  %v1409_v22 = vmax.f32 %v1250_v19, %v1344_v37  ;;  %v1244_v56 = vmax.f32 %v5461_v40, 0.0 }
 0x242   :  { %3891 = vmatprep.subr.mxu1 %v1411_v34  ;;  %v1335_v17 = vrot.slane %v1247_v44, 1  ;;  %v1333_v32 = vrot.slane %v1246_v6, 1  ;;  %v1340_v52 = vsel %vm114_vm1, %v1337_v53, %v1339_v15  ;;  %v1408_v31 = vmax.f32 %v1249_v43, %v1342_v51 }
 0x243   :  { %3892 = vmatpush3.msra.mxu1 %v1395_v30  ;;  %v1391_v14 = vmax.f32 %v1232_v9, %v1308_v23  ;;  %v5488_v24 = vadd.f32 %v5378_v45, %v5287_v20  ;;  %v1392_v19 = vmax.f32 %v1233_v5, %v1310_v26  ;;  %v5495_v36 = vadd.f32 %v5287_v20, %v5380_v27 }
 0x244   :  { %3893 = vmatprep.subr.mxu1 %v1410_v33  ;;  %v1338_v30 = vsel %vm114_vm1, %v1335_v17, %v1337_v53  ;;  %v1243_v3 = vmax.f32 %v5475_v46, 0.0  ;;  %v1407_v43 = vmax.f32 %v1248_v39, %v1340_v52  ;;  %v1415_v9 = vadd.s32 8, %v5363_v63 }
 0x245   :  { %3894 = vmatpush3.msra.mxu1 %v1394_v38  ;;  %v1242_v29 = vmax.f32 %v5479_v18, 0.0  ;;  %v1331_v45 = vrot.slane %v1245_v12, 1  ;;  %v1329_v11 = vrot.slane %v1244_v56, 1  ;;  %v1336_v40 = vsel %vm114_vm1, %v1333_v32, %v1335_v17 }
 0x246   :  { %3895 = vmatprep.subr.mxu1 %v1409_v22  ;;  %v1406_v5 = vmax.f32 %v1247_v44, %v1338_v30  ;;  %v1302_v27 = vsel %vm114_vm1, %v5354_v4, %v1301_v54  ;;  %v1149_v39 = vadd.f32 %v5376_v21, %v5287_v20  ;;  %v1241_v34 = vmax.f32 %v5488_v24, 0.0 }
 0x247   :  { %3896 = vmatpush3.msra.mxu1 %v1393_v49  ;;  %v1390_v15 = vmax.f32 %v1231_v55, %v1306_v58  ;;  %v1334_v53 = vsel %vm114_vm1, %v1331_v45, %v1333_v32  ;;  %v1240_v37 = vmax.f32 %v5495_v36, 0.0  ;;  %v1405_v50 = vmax.f32 %v1246_v6, %v1336_v40 }
 0x248   :  { %3897 = vmatprep.subr.mxu1 %v1408_v31  ;;  %vm1432_vm12 = vcmp.ge.s32.totalorder %v1415_v9, 14  ;;  %v1327_v44 = vrot.slane %v1243_v3, 1  ;;  %v1325_v16 = vrot.slane %v1242_v29, 1  ;;  %v1332_v4 = vsel %vm114_vm1, %v1329_v11, %v1331_v45 }
 0x249   :  { %3898 = vmatpush3.msra.mxu1 %v1392_v19  ;;  %v1417_v20 = vadd.s32 24, %v5363_v63  ;;  %v1404_v21 = vmax.f32 %v1245_v12, %v1334_v53  ;;  %v1388_v42 = vmax.f32 %v1229_v35, %v1302_v27  ;;  %v1239_v2 = vmax.f32 %v1149_v39, 0.0 }
 0x24a   :  { %3899 = vmatprep.subr.mxu1 %v1407_v43  ;;  %v1330_v55 = vsel %vm114_vm1, %v1327_v44, %v1329_v11  ;;  %v1403_v54 = vmax.f32 %v1244_v56, %v1332_v4  ;;  %v4487_v6 = vmov 0   ;;  %v1323_v33 = vrot.slane %v1241_v34, 1 }
 0x24b   :  { %3900 = vmatpush3.msra.mxu1 %v1391_v14  ;;  %v1446_v23 = vsel %vm1432_vm12, 1, %v4487_v6  ;;  %v1321_v49 = vrot.slane %v1240_v37, 1  ;;  %v1328_v38 = vsel %vm114_vm1, %v1325_v16, %v1327_v44  ;;  %vm1462_vm13 = vcmp.ge.s32.totalorder %v1417_v20, 28 }
 0x24c   :  { %3901 = vmatprep.subr.mxu1 %v1406_v5  ;;  %v1402_v51 = vmax.f32 %v1243_v3, %v1330_v55  ;;  %v1416_v26 = vadd.s32 16, %v5363_v63  ;;  %v1326_v60 = vsel %vm114_vm1, %v1323_v33, %v1325_v16  ;;  %v1712_v35 = vmul.u32 2, %v1415_v9 }
 0x24d   :  { %3902 = vmatpush3.msra.mxu1 %v1390_v15  ;;  %v1726_v46 = vmul.u32 4, %v1446_v23  ;;  %v1401_v18 = vmax.f32 %v1242_v29, %v1328_v38  ;;  %v1476_v12 = vsel %vm1462_vm13, 1, %v4487_v6  ;;  %v1319_v22 = vrot.slane %v1239_v2, 1 }
 0x24e   :  { %3903 = vmatprep.subr.mxu1 %v1405_v50  ;;  %v1324_v56 = vsel %vm114_vm1, %v1321_v49, %v1323_v33  ;;  %v1419_v17 = vadd.s32 40, %v5363_v63  ;;  %v1400_v32 = vmax.f32 %v1241_v34, %v1326_v60  ;;  %v1713_v52 = vmul.u32 2, %v1416_v26 }
 0x24f   :  { %3904 = vmatpush3.msra.mxu1 %v1389_v47  ;;  %v1740_v25 = vadd.s32 %v1726_v46, %v1712_v35  ;;  %v1490_v31 = vadd.s32 1, %v1476_v12  ;;  %v1399_v58 = vmax.f32 %v1240_v37, %v1324_v56  ;;  %v1320_v14 = vsel %vm114_vm1, %v5424_v0, %v1319_v22 }
 0x250   :  { %3905 = vmatprep.subr.mxu1 %v1404_v21  ;;  %vm1506_vm14 = vcmp.ge.s32.totalorder %v1419_v17, 42  ;;  %v1741_v24 = vadd.s32 4, %v1713_v52  ;;  %v1418_v30 = vadd.s32 32, %v5363_v63  ;;  %v1397_v36 = vmax.f32 %v1238_v48, %v1320_v14 }
 0x251   :  { %3906 = vmatpush3.msra.mxu1 %v1388_v42  ;;  %vm1756_vm15 = vcmp.eq.s32.totalorder %v5368_v10, %v1740_v25  ;;  %v1728_v19 = vmul.u32 4, %v1490_v31  ;;  %v1520_v0 = vsel %vm1506_vm14, 1, %v4487_v6  ;;  %v4488_v48 = vmov 1.0  }
 0x252   :  { %3907 = vmatprep.subr.mxu1 %v1403_v54  ;;  %vm1758_vm5 = vcmp.eq.s32.totalorder %v5368_v10, %v1741_v24  ;;  %v1715_v43 = vmul.u32 2, %v1418_v30  ;;  %v1534_v41 = vadd.s32 2, %v1520_v0  ;;  %vm1755_vm6 = vcmp.eq.s32.totalorder %v5365_v7, %v1740_v25  ;;  %v2346_v0 = vld [vmem:[%s6352_s3 + $0x28] sm:$0xff] }
 0x253   :  { %3908 = vmatpush3.msra.mxu1 %v5359_v13  ;;  %v1322_v13 = vsel %vm114_vm1, %v1319_v22, %v1321_v49  ;;  %v1716_v29 = vmul.u32 2, %v1419_v17  ;;  %vm1757_vm8 = vcmp.eq.s32.totalorder %v5365_v7, %v1741_v24  ;;  %v1421_v5 = vadd.s32 56, %v5363_v63  ;;  %v2349_v24 = vld [vmem:[%s6352_s3 + $0x40] sm:$0xff] }
 0x254   :  { %3909 = vmatprep.subr.mxu1 %v1402_v51  ;;  %v1743_v9 = vadd.s32 8, %v1715_v43  ;;  %v1730_v45 = vmul.u32 4, %v1534_v41  ;;  %v1424_v39 = vadd.s32 80, %v5363_v63  ;;  %v1426_v42 = vadd.s32 96, %v5363_v63 }
 0x255   :  { %3910 = vmatpush3.msra.mxu1 %v5361_v8  ;;  %v1398_v8 = vmax.f32 %v1239_v2, %v1322_v13  ;;  %v1718_v53 = vmul.u32 2, %v1421_v5  ;;  %v1425_v49 = vadd.s32 88, %v5363_v63 }
 0x256   :  { %3911 = vmatprep.subr.mxu1 %v1401_v18  ;;  %vm1762_vm12 = vcmp.eq.s32.totalorder %v5368_v10, %v1743_v9  ;;  %v1744_v47 = vadd.s32 %v1730_v45, %v1716_v29  ;;  %v1721_v51 = vmul.u32 2, %v1424_v39  ;;  %v1723_v56 = vmul.u32 2, %v1426_v42 }
 0x257   :  { %3912 = vmatpush3.msra.mxu1 %v5339_v61  ;;  %v1714_v61 = vmul.u32 2, %v1417_v20  ;;  %v1746_v44 = vadd.s32 16, %v1718_v53  ;;  %v1423_v20 = vadd.s32 72, %v5363_v63  ;;  %v1722_v46 = vmul.u32 2, %v1425_v49 }
 0x258   :  { %3913 = vmatprep.subr.mxu1 %v1400_v32  ;;  %vm1764_vm14 = vcmp.eq.s32.totalorder %v5368_v10, %v1744_v47  ;;  %v1427_v32 = vadd.s32 104, %v5363_v63 }
 0x259   :  { %3914 = vmatpush3.msra.mxu1 %v5343_v62  ;;  %v1742_v3 = vadd.s32 %v1728_v19, %v1714_v61  ;;  %v1720_v54 = vmul.u32 2, %v1423_v20  ;;  %v2348_v61 = vld [vmem:[%s6352_s3 + $0x38] sm:$0xff]  ;;  %v2347_v19 = vld [vmem:[%s6352_s3 + $0x30] sm:$0xff] }
 0x25a   :  { %3915 = vmatprep.subr.mxu1 %v1399_v58  ;;  %v1724_v25 = vmul.u32 2, %v1427_v32 }
 0x25b   :  { %3916 = vmatpush3.msra.mxu1 %v5315_v57  ;;  %v6367_v57 = vmov 0.0   ;;  %vm1760_vm7 = vcmp.eq.s32.totalorder %v5368_v10, %v1742_v3  ;;  %vm1759_vm13 = vcmp.eq.s32.totalorder %v5365_v7, %v1742_v3  ;;  %v1748_v38 = vadd.s32 20, %v1720_v54 }
 0x25c   :  { %3917 = vmatprep.subr.mxu1 %v1398_v8  ;;  %v1784_v62 = vsel %vm1756_vm15, 1.0, %v6367_v57  ;;  %v1786_v1 = vsel %vm1758_vm5, 1.0, %v6367_v57  ;;  %v1788_v11 = vsel %vm1760_vm7, 1.0, %v6367_v57  ;;  %v1790_v34 = vsel %vm1762_vm12, 1.0, %v6367_v57 }
 0x25d   :  { %3918 = vmatpush3.msra.mxu1 %v5318_v28  ;;  %v1422_v28 = vadd.s32 64, %v5363_v63  ;;  %vm1761_vm15 = vcmp.eq.s32.totalorder %v5365_v7, %v1743_v9  ;;  %v1792_v50 = vsel %vm1764_vm14, 1.0, %v6367_v57  ;;  %vm1768_vm7 = vcmp.eq.s32.totalorder %v5368_v10, %v1746_v44 }
 0x25e   :  { %3919 = vmatprep.subr.mxu1 %v1397_v36  ;;  %v1796_v33 = vsel %vm1768_vm7, 1.0, %v6367_v57  ;;  %vm1772_vm14 = vcmp.eq.s32.totalorder %v5368_v10, %v1748_v38  ;;  %v1752_v58 = vadd.s32 28, %v1724_v25 }
 0x25f   :  { %3920 = vmatpush3.msra.mxu1 %v5297_v59  ;;  %v1420_v59 = vadd.s32 48, %v5363_v63  ;;  %vm1593_vm9 = vcmp.ge.s32.totalorder %v1422_v28, 70  ;;  %v1719_v16 = vmul.u32 2, %v1422_v28  ;;  %v1800_v22 = vsel %vm1772_vm14, 1.0, %v6367_v57 }
 0x260   :  { %3789 = vmatmul.mubr.msk.f32.vlgmr.msra.gmra.mxu1 %vm1753_vm4, %v4488_v48  ;;  %4196 = vmatprep.subr.mxu1 %v6367_v57  ;;  %v1607_v27 = vsel %vm1593_vm9, 1, %v4487_v6  ;;  %vm1637_vm4 = vcmp.ge.s32.totalorder %v1424_v39, 84  ;;  %vm1681_vm9 = vcmp.ge.s32.totalorder %v1426_v42, 98  ;;  %vm1779_vm14 = vcmp.eq.s32.totalorder %v5365_v7, %v1752_v58 }
 0x261   :  { %3790 = vmatprep.mubr.msk.f32.mxu1 %vm1809_vm10, %v1784_v62  ;;  %v1717_v40 = vmul.u32 2, %v1420_v59  ;;  %v1621_v37 = vadd.s32 4, %v1607_v27  ;;  %v1651_v21 = vsel %vm1637_vm4, 1, %v4487_v6  ;;  %v1695_v60 = vsel %vm1681_vm9, 1, %v4487_v6  ;;  %v2345_v62 = vld [vmem:[%s6352_s3 + $0x20] sm:$0xff]  ;;  %v2343_v59 = vld [vmem:[%s6352_s3 + $0x10] sm:$0xff] }
 0x262   :  { %v1665_v23 = vadd.s32 5, %v1651_v21  ;;  %v1709_v12 = vadd.s32 6, %v1695_v60  ;;  %v1750_v6 = vadd.s32 24, %v1722_v46  ;;  %v2342_v27 = vld [vmem:[%s6352_s3 + $0x8] sm:$0xff] }
 0x263   :  { %v1745_v15 = vadd.s32 12, %v1717_v40  ;;  %v1733_v4 = vmul.u32 4, %v1621_v37 }
 0x264   :  { %3791 = vmatmul.mubr.msk.f32.gmra.mxu1 %vm1755_vm6, %v4488_v48  ;;  %vm1763_vm6 = vcmp.eq.s32.totalorder %v5365_v7, %v1744_v47  ;;  %v1735_v26 = vmul.u32 4, %v1665_v23  ;;  %v1737_v17 = vmul.u32 4, %v1709_v12  ;;  %vm1775_vm9 = vcmp.eq.s32.totalorder %v5365_v7, %v1750_v6 }
 0x265   :  { %3792 = vmatprep.mubr.msk.f32.mxu1 %vm1809_vm10, %v1786_v1  ;;  %vm1766_vm5 = vcmp.eq.s32.totalorder %v5368_v10, %v1745_v15  ;;  %v1747_v2 = vadd.s32 %v1733_v4, %v1719_v16  ;;  %v2344_v1 = vld [vmem:[%s6352_s3 + $0x18] sm:$0xff] }
 0x266   :  { %v1794_v55 = vsel %vm1766_vm5, 1.0, %v6367_v57  ;;  %v1749_v18 = vadd.s32 %v1735_v26, %v1721_v51  ;;  %vm1771_vm5 = vcmp.eq.s32.totalorder %v5365_v7, %v1748_v38  ;;  %v1751_v13 = vadd.s32 %v1737_v17, %v1723_v56 }
 0x267   :  { %vm1770_vm12 = vcmp.eq.s32.totalorder %v5368_v10, %v1747_v2 }
 0x268   :  { %3793 = vmatmul.mubr.msk.f32.gmra.mxu1 %vm1757_vm8, %v4488_v48  ;;  %vm1765_vm8 = vcmp.eq.s32.totalorder %v5365_v7, %v1745_v15  ;;  %v1798_v35 = vsel %vm1770_vm12, 1.0, %v6367_v57  ;;  %vm1774_vm4 = vcmp.eq.s32.totalorder %v5368_v10, %v1749_v18  ;;  %vm1773_vm7 = vcmp.eq.s32.totalorder %v5365_v7, %v1749_v18 }
 0x269   :  { %3794 = vmatprep.mubr.msk.f32.mxu1 %vm1809_vm10, %v1788_v11  ;;  %v1802_v52 = vsel %vm1774_vm4, 1.0, %v6367_v57  ;;  %vm1780_vm12 = vcmp.eq.s32.totalorder %v5368_v10, %v1752_v58  ;;  %vm4493_vm4 = vmmov 0  }
 0x26a   :  { %v1808_v8 = vsel %vm1780_vm12, 1.0, %v6367_v57  ;;  %vm3692_vm12 = vcmask 64512  }
 0x26c   :  { %3795 = vmatmul.mubr.msk.f32.gmra.mxu1 %vm1759_vm13, %v4488_v48  ;;  %vm1767_vm13 = vcmp.eq.s32.totalorder %v5365_v7, %v1746_v44 }
 0x26d   :  { %3796 = vmatprep.mubr.msk.f32.mxu1 %vm1809_vm10, %v1790_v34  ;;  %v2341_v34 = vld [vmem:[%s6352_s3] sm:$0xff] }
 0x270   :  { %3797 = vmatmul.mubr.msk.f32.gmra.mxu1 %vm1761_vm15, %v4488_v48  ;;  %vm1769_vm15 = vcmp.eq.s32.totalorder %v5365_v7, %v1747_v2 }
 0x271   :  { %3798 = vmatprep.mubr.msk.f32.mxu1 %vm1809_vm10, %v1792_v50 }
 0x274   :  { %3799 = vmatmul.mubr.msk.f32.gmra.mxu1 %vm1763_vm6, %v4488_v48  ;;  %vm1776_vm6 = vcmp.eq.s32.totalorder %v5368_v10, %v1750_v6 }
 0x275   :  { %3800 = vmatprep.mubr.msk.f32.mxu1 %vm1809_vm10, %v1794_v55  ;;  %v1804_v31 = vsel %vm1776_vm6, 1.0, %v6367_v57 }
 0x278   :  { %3801 = vmatmul.mubr.msk.f32.gmra.mxu1 %vm1765_vm8, %v4488_v48  ;;  %vm1778_vm8 = vcmp.eq.s32.totalorder %v5368_v10, %v1751_v13  ;;  %v2350_v10 = vld [vmem:[%s6352_s3 + $0x48] sm:$0xff]  ;;  %s4491_s3 = smov 48  }
 0x279   :  { %3802 = vmatprep.mubr.msk.f32.mxu1 %vm1809_vm10, %v1796_v33  ;;  %v1806_v14 = vsel %vm1778_vm8, 1.0, %v6367_v57  ;;  %4155 = vmatprep.subr.mxu0 %v2350_v10 }
 0x27a   :  { %4156 = vmatpush3.msra.mxu0 %v2350_v10 }
 0x27b   :  { %4157 = vmatprep.subr.mxu0 %v2349_v24 }
 0x27c   :  { %3803 = vmatmul.mubr.msk.f32.gmra.mxu1 %vm1767_vm13, %v4488_v48  ;;  %vm1777_vm13 = vcmp.eq.s32.totalorder %v5365_v7, %v1751_v13  ;;  %4158 = vmatpush3.msra.mxu0 %v2349_v24 }
 0x27d   :  { %3804 = vmatprep.mubr.msk.f32.mxu1 %vm1809_vm10, %v1798_v35  ;;  %4159 = vmatprep.subr.mxu0 %v2348_v61 }
 0x27e   :  { %4160 = vmatpush3.msra.mxu0 %v2348_v61 }
 0x27f   :  { %4161 = vmatprep.subr.mxu0 %v2347_v19 }
 0x280   :  { %3805 = vmatmul.mubr.msk.f32.gmra.mxu1 %vm1769_vm15, %v4488_v48  ;;  %4162 = vmatpush3.msra.mxu0 %v2347_v19  ;;  %vm2326_vm15 = vcmask 523264  }
 0x281   :  { %3806 = vmatprep.mubr.msk.f32.mxu1 %vm1809_vm10, %v1800_v22  ;;  %4163 = vmatprep.subr.mxu0 %v2346_v0 }
 0x282   :  { %4164 = vmatpush3.msra.mxu0 %v2346_v0 }
 0x283   :  { %4165 = vmatprep.subr.mxu0 %v2345_v62 }
 0x284   :  { %3807 = vmatmul.mubr.msk.f32.gmra.mxu1 %vm1771_vm5, %v4488_v48  ;;  %4166 = vmatpush3.msra.mxu0 %v2345_v62 }
 0x285   :  { %3808 = vmatprep.mubr.msk.f32.mxu1 %vm1809_vm10, %v1802_v52  ;;  %4167 = vmatprep.subr.mxu0 %v2344_v1 }
 0x286   :  { %4168 = vmatpush3.msra.mxu0 %v2344_v1 }
 0x287   :  { %4169 = vmatprep.subr.mxu0 %v2343_v59 }
 0x288   :  { %3809 = vmatmul.mubr.msk.f32.gmra.mxu1 %vm1773_vm7, %v4488_v48  ;;  %4170 = vmatpush3.msra.mxu0 %v2343_v59 }
 0x289   :  { %3810 = vmatprep.mubr.msk.f32.mxu1 %vm1809_vm10, %v1804_v31  ;;  %4171 = vmatprep.subr.mxu0 %v2342_v27 }
 0x28a   :  { %4172 = vmatpush3.msra.mxu0 %v2342_v27 }
 0x28b   :  { %4173 = vmatprep.subr.mxu0 %v2341_v34 }
 0x28c   :  { %3811 = vmatmul.mubr.msk.f32.gmra.mxu1 %vm1775_vm9, %v4488_v48  ;;  %4174 = vmatpush3.msra.mxu0 %v2341_v34  ;;  %vm3567_vm9 = vcmask 31744  }
 0x28d   :  { %3812 = vmatprep.mubr.msk.f32.mxu1 %vm1809_vm10, %v1806_v14  ;;  %4238 = vmatprep.subr.mxu0 %v6367_v57 }
 0x290   :  { %3813 = vmatmul.mubr.msk.f32.gmra.mxu1 %vm1777_vm13, %v4488_v48  ;;  %vm3595_vm13 = vcmask 23552  }
 0x291   :  { %3814 = vmatprep.mubr.msk.f32.mxu1 %vm1809_vm10, %v1808_v8  ;;  %vm2311_vm10 = vcmask 392192  }
 0x294   :  { %3815 = vmatmul.mubr.msk.f32.gmra.mxu1 %vm1779_vm14, %v4488_v48  ;;  %vm3697_vm14 = vcmp.eq.s32.totalorder %v5363_v63, %v5365_v7 }
 0x295   :  { %4224 = vmatprep.mubr.msk.f32.mxu1 %vm4493_vm4, %v6367_v57 }
 0x320   :  { %v3921_v30 = vpop.f32.mrf.mxu1 }
 0x322   :  { %v3922_v36 = vpop.f32.mrf.mxu1 }
 0x323   :  { %v5637_v43 = vadd.f32 %v3922_v36, %v3921_v30 }
 0x324   :  { %v3924_v3 = vpop.f32.mrf.mxu1 }
 0x325   :  { %v2005_v29 = vrot.slane %v5637_v43, 1  ;;  %v2074_v53 = vrot.slane %v5637_v43, 2  ;;  %v2143_v21 = vrot.slane %v5637_v43, 3  ;;  %v2212_v49 = vrot.slane %v5637_v43, 4 }
 0x326   :  { %v3925_v41 = vpop.f32.mrf.mxu1 }
 0x327   :  { %v5639_v28 = vadd.f32 %v3925_v41, %v3924_v3 }
 0x328   :  { %v3927_v9 = vpop.f32.mrf.mxu1 }
 0x329   :  { %v2006_v45 = vrot.slane %v5639_v28, 1  ;;  %v2075_v5 = vrot.slane %v5639_v28, 2  ;;  %v2144_v4 = vrot.slane %v5639_v28, 3  ;;  %v2213_v42 = vrot.slane %v5639_v28, 4 }
 0x32a   :  { %v3928_v11 = vpop.f32.mrf.mxu1 }
 0x32b   :  { %v5649_v40 = vadd.f32 %v3928_v11, %v3927_v9  ;;  %v2007_v47 = vsel %vm114_vm1, %v2005_v29, %v2006_v45  ;;  %v2076_v44 = vsel %vm274_vm0, %v2074_v53, %v2075_v5  ;;  %v2145_v54 = vsel %vm434_vm2, %v2143_v21, %v2144_v4 }
 0x32c   :  { %v3930_v39 = vpop.f32.mrf.mxu1  ;;  %2032 = vrot.lane.b32.xlu0 %v2007_v47, %s4489_s2  ;;  %v2214_v38 = vsel %vm594_vm3, %v2212_v49, %v2213_v42 }
 0x32d   :  { %v2008_v15 = vrot.slane %v5649_v40, 1  ;;  %v2077_v16 = vrot.slane %v5649_v40, 2  ;;  %v2146_v23 = vrot.slane %v5649_v40, 3  ;;  %v2215_v35 = vrot.slane %v5649_v40, 4 }
 0x32e   :  { %v3931_v37 = vpop.f32.mrf.mxu1 }
 0x32f   :  { %v2009_v50 = vsel %vm114_vm1, %v2006_v45, %v2008_v15  ;;  %v5671_v55 = vadd.f32 %v3931_v37, %v3930_v39  ;;  %v2078_v2 = vsel %vm274_vm0, %v2075_v5, %v2077_v16  ;;  %v2147_v26 = vsel %vm434_vm2, %v2144_v4, %v2146_v23 }
 0x330   :  { %2034 = vrot.lane.b32.xlu1 %v2009_v50, %s4489_s2  ;;  %2101 = vrot.lane.b32.xlu0 %v2076_v44, %s4490_s26  ;;  %v3933_v20 = vpop.f32.mrf.mxu1  ;;  %v2216_v12 = vsel %vm594_vm3, %v2213_v42, %v2215_v35 }
 0x331   :  { %v2010_v60 = vrot.slane %v5671_v55, 1  ;;  %v2079_v6 = vrot.slane %v5671_v55, 2  ;;  %v2148_v13 = vrot.slane %v5671_v55, 3  ;;  %v2217_v31 = vrot.slane %v5671_v55, 4 }
 0x332   :  { %v3934_v33 = vpop.f32.mrf.mxu1 }
 0x333   :  { %v5680_v51 = vadd.f32 %v3934_v33, %v3933_v20  ;;  %v2011_v18 = vsel %vm114_vm1, %v2008_v15, %v2010_v60  ;;  %v2080_v32 = vsel %vm274_vm0, %v2077_v16, %v2079_v6  ;;  %v2149_v8 = vsel %vm434_vm2, %v2146_v23, %v2148_v13 }
 0x334   :  { %2103 = vrot.lane.b32.xlu1 %v2078_v2, %s4490_s26  ;;  %2170 = vrot.lane.b32.xlu0 %v2145_v54, %s4491_s3  ;;  %v3936_v46 = vpop.f32.mrf.mxu1  ;;  %v2218_v61 = vsel %vm594_vm3, %v2215_v35, %v2217_v31 }
 0x335   :  { %v2012_v22 = vrot.slane %v5680_v51, 1  ;;  %v2081_v52 = vrot.slane %v5680_v51, 2  ;;  %v2150_v10 = vrot.slane %v5680_v51, 3  ;;  %v2219_v0 = vrot.slane %v5680_v51, 4 }
 0x336   :  { %v3937_v56 = vpop.f32.mrf.mxu1 }
 0x337   :  { %v2013_v17 = vsel %vm114_vm1, %v2010_v60, %v2012_v22  ;;  %v5700_v58 = vadd.f32 %v3937_v56, %v3936_v46  ;;  %v2082_v14 = vsel %vm274_vm0, %v2079_v6, %v2081_v52  ;;  %v2151_v30 = vsel %vm434_vm2, %v2148_v13, %v2150_v10 }
 0x338   :  { %2172 = vrot.lane.b32.xlu1 %v2147_v26, %s4491_s3  ;;  %2239 = vrot.lane.b32.xlu0 %v2214_v38, %s4492_s17  ;;  %v3939_v25 = vpop.f32.mrf.mxu1  ;;  %v2220_v41 = vsel %vm594_vm3, %v2217_v31, %v2219_v0 }
 0x339   :  { %v2014_v36 = vrot.slane %v5700_v58, 1  ;;  %v2083_v59 = vrot.slane %v5700_v58, 2  ;;  %v2152_v47 = vrot.slane %v5700_v58, 3  ;;  %v2221_v27 = vrot.slane %v5700_v58, 4 }
 0x33a   :  { %v3940_v24 = vpop.f32.mrf.mxu1 }
 0x33b   :  { %v5708_v19 = vadd.f32 %v3940_v24, %v3939_v25  ;;  %v2015_v3 = vsel %vm114_vm1, %v2012_v22, %v2014_v36  ;;  %v2084_v45 = vsel %vm274_vm0, %v2081_v52, %v2083_v59  ;;  %v2153_v15 = vsel %vm434_vm2, %v2150_v10, %v2152_v47 }
 0x33c   :  { %2036 = vrot.lane.b32.xlu1 %v2011_v18, %s4489_s2  ;;  %2241 = vrot.lane.b32.xlu0 %v2216_v12, %s4492_s17  ;;  %v3942_v62 = vpop.f32.mrf.mxu1  ;;  %v2222_v50 = vsel %vm594_vm3, %v2219_v0, %v2221_v27 }
 0x33d   :  { %v2016_v1 = vrot.slane %v5708_v19, 1  ;;  %v2085_v11 = vrot.slane %v5708_v19, 2  ;;  %v2154_v53 = vrot.slane %v5708_v19, 3  ;;  %v2223_v20 = vrot.slane %v5708_v19, 4 }
 0x33e   :  { %v3943_v9 = vpop.f32.mrf.mxu1 }
 0x33f   :  { %v2017_v29 = vsel %vm114_vm1, %v2014_v36, %v2016_v1  ;;  %v5728_v39 = vadd.f32 %v3943_v9, %v3942_v62  ;;  %v2086_v34 = vsel %vm274_vm0, %v2083_v59, %v2085_v11  ;;  %v2155_v16 = vsel %vm434_vm2, %v2152_v47, %v2154_v53 }
 0x340   :  { %2038 = vrot.lane.b32.xlu1 %v2013_v17, %s4489_s2  ;;  %2105 = vrot.lane.b32.xlu0 %v2080_v32, %s4490_s26  ;;  %v3945_v5 = vpop.f32.mrf.mxu1  ;;  %v2224_v2 = vsel %vm594_vm3, %v2221_v27, %v2223_v20 }
 0x341   :  { %v2018_v4 = vrot.slane %v5728_v39, 1  ;;  %v2087_v23 = vrot.slane %v5728_v39, 2  ;;  %v2156_v60 = vrot.slane %v5728_v39, 3  ;;  %v2225_v46 = vrot.slane %v5728_v39, 4 }
 0x342   :  { %v3946_v37 = vpop.f32.mrf.mxu1 }
 0x343   :  { %v5736_v44 = vadd.f32 %v3946_v37, %v3945_v5  ;;  %v2019_v42 = vsel %vm114_vm1, %v2016_v1, %v2018_v4  ;;  %v2088_v38 = vsel %vm274_vm0, %v2085_v11, %v2087_v23  ;;  %v2157_v22 = vsel %vm434_vm2, %v2154_v53, %v2156_v60 }
 0x344   :  { %2107 = vrot.lane.b32.xlu1 %v2082_v14, %s4490_s26  ;;  %2174 = vrot.lane.b32.xlu0 %v2149_v8, %s4491_s3  ;;  %v3948_v21 = vpop.f32.mrf.mxu1  ;;  %v2226_v17 = vsel %vm594_vm3, %v2223_v20, %v2225_v46 }
 0x345   :  { %v2020_v54 = vrot.slane %v5736_v44, 1  ;;  %v2089_v26 = vrot.slane %v5736_v44, 2  ;;  %v2158_v6 = vrot.slane %v5736_v44, 3  ;;  %v2227_v25 = vrot.slane %v5736_v44, 4 }
 0x346   :  { %v3949_v33 = vpop.f32.mrf.mxu1 }
 0x347   :  { %v2021_v49 = vsel %vm114_vm1, %v2018_v4, %v2020_v54  ;;  %v5756_v18 = vadd.f32 %v3949_v33, %v3948_v21  ;;  %v2090_v12 = vsel %vm274_vm0, %v2087_v23, %v2089_v26  ;;  %v2159_v52 = vsel %vm434_vm2, %v2156_v60, %v2158_v6 }
 0x348   :  { %2176 = vrot.lane.b32.xlu1 %v2151_v30, %s4491_s3  ;;  %2243 = vrot.lane.b32.xlu0 %v2218_v61, %s4492_s17  ;;  %v3951_v35 = vpop.f32.mrf.mxu1  ;;  %v2228_v8 = vsel %vm594_vm3, %v2225_v46, %v2227_v25 }
 0x349   :  { %v2022_v13 = vrot.slane %v5756_v18, 1  ;;  %v2091_v24 = vrot.slane %v5756_v18, 2  ;;  %v2160_v62 = vrot.slane %v5756_v18, 3 }
 0x34a   :  { %v3952_v56 = vpop.f32.mrf.mxu1 }
 0x34b   :  { %v5764_v32 = vadd.f32 %v3952_v56, %v3951_v35  ;;  %v2023_v14 = vsel %vm114_vm1, %v2020_v54, %v2022_v13  ;;  %v2092_v36 = vsel %vm274_vm0, %v2089_v26, %v2091_v24  ;;  %v2161_v9 = vsel %vm434_vm2, %v2158_v6, %v2160_v62 }
 0x34c   :  { %2040 = vrot.lane.b32.xlu1 %v2015_v3, %s4489_s2  ;;  %2245 = vrot.lane.b32.xlu0 %v2220_v41, %s4492_s17  ;;  %v3954_v31 = vpop.f32.mrf.mxu1  ;;  %v2229_v41 = vrot.slane %v5756_v18, 4 }
 0x34d   :  { %v2024_v10 = vrot.slane %v5764_v32, 1  ;;  %v2093_v0 = vrot.slane %v5764_v32, 2 }
 0x34e   :  { %v3955_v61 = vpop.f32.mrf.mxu1  ;;  %v2230_v11 = vsel %vm594_vm3, %v2227_v25, %v2229_v41 }
 0x34f   :  { %v2025_v30 = vsel %vm114_vm1, %v2022_v13, %v2024_v10  ;;  %v5784_v1 = vadd.f32 %v3955_v61, %v3954_v31  ;;  %v2094_v59 = vsel %vm274_vm0, %v2091_v24, %v2093_v0 }
 0x350   :  { %2042 = vrot.lane.b32.xlu1 %v2017_v29, %s4489_s2  ;;  %2109 = vrot.lane.b32.xlu0 %v2084_v45, %s4490_s26  ;;  %v3957_v3 = vpop.f32.mrf.mxu1  ;;  %v2162_v29 = vrot.slane %v5764_v32, 3 }
 0x351   :  { %v2026_v27 = vrot.slane %v5784_v1, 1 }
 0x352   :  { %v3958_v45 = vpop.f32.mrf.mxu1  ;;  %v2163_v5 = vsel %vm434_vm2, %v2160_v62, %v2162_v29 }
 0x353   :  { %v5792_v47 = vadd.f32 %v3958_v45, %v3957_v3 }
 0x354   :  { %2111 = vrot.lane.b32.xlu1 %v2086_v34, %s4490_s26  ;;  %2178 = vrot.lane.b32.xlu0 %v2153_v15, %s4491_s3  ;;  %v2231_v34 = vrot.slane %v5764_v32, 4  ;;  %v2027_v15 = vsel %vm114_vm1, %v2024_v10, %v2026_v27 }
 0x355   :  { %v2028_v37 = vrot.slane %v5792_v47, 1  ;;  %v2097_v21 = vrot.slane %v5792_v47, 2  ;;  %v2166_v33 = vrot.slane %v5792_v47, 3  ;;  %v2235_v35 = vrot.slane %v5792_v47, 4 }
 0x356   :  { %v2232_v53 = vsel %vm594_vm3, %v2229_v41, %v2231_v34 }
 0x357   :  { %v2029_v4 = vsel %vm114_vm1, %v2026_v27, %v2028_v37 }
 0x358   :  { %2180 = vrot.lane.b32.xlu1 %v2155_v16, %s4491_s3  ;;  %2247 = vrot.lane.b32.xlu0 %v2222_v50, %s4492_s17  ;;  %v2095_v50 = vrot.slane %v5784_v1, 2  ;;  %v3960_v16 = vpop.f32.mrf.mxu1 }
 0x35a   :  { %v2096_v20 = vsel %vm274_vm0, %v2093_v0, %v2095_v50  ;;  %v2098_v54 = vsel %vm274_vm0, %v2095_v50, %v2097_v21 }
 0x35c   :  { %2044 = vrot.lane.b32.xlu1 %v2019_v42, %s4489_s2  ;;  %2249 = vrot.lane.b32.xlu0 %v2224_v2, %s4492_s17  ;;  %v2164_v42 = vrot.slane %v5784_v1, 3  ;;  %v3961_v2 = vpop.f32.mrf.mxu1 }
 0x35e   :  { %v2165_v23 = vsel %vm434_vm2, %v2162_v29, %v2164_v42  ;;  %v2167_v26 = vsel %vm434_vm2, %v2164_v42, %v2166_v33 }
 0x360   :  { %2046 = vrot.lane.b32.xlu1 %v2021_v49, %s4489_s2  ;;  %2113 = vrot.lane.b32.xlu0 %v2088_v38, %s4490_s26  ;;  %v2233_v49 = vrot.slane %v5784_v1, 4  ;;  %v5817_v38 = vadd.f32 %v3961_v2, %v3960_v16 }
 0x362   :  { %v2234_v60 = vsel %vm594_vm3, %v2231_v34, %v2233_v49  ;;  %v2030_v46 = vrot.slane %v5817_v38, 1  ;;  %v2168_v56 = vrot.slane %v5817_v38, 3 }
 0x364   :  { %2115 = vrot.lane.b32.xlu1 %v2090_v12, %s4490_s26  ;;  %2182 = vrot.lane.b32.xlu0 %v2157_v22, %s4491_s3  ;;  %v2236_v12 = vsel %vm594_vm3, %v2233_v49, %v2235_v35  ;;  %v2099_v22 = vrot.slane %v5817_v38, 2  ;;  %v2031_v13 = vsel %vm114_vm1, %v2028_v37, %v2030_v46 }
 0x366   :  { %v2100_v6 = vsel %vm274_vm0, %v2097_v21, %v2099_v22  ;;  %vm2281_vm0 = vcmask 130048  }
 0x368   :  { %2184 = vrot.lane.b32.xlu1 %v2159_v52, %s4491_s3  ;;  %2251 = vrot.lane.b32.xlu0 %v2226_v17, %s4492_s17  ;;  %v2169_v17 = vsel %vm434_vm2, %v2166_v33, %v2168_v56  ;;  %v2237_v52 = vrot.slane %v5817_v38, 4  ;;  %vm2296_vm2 = vcmask 261120  }
 0x36a   :  { %v2238_v25 = vsel %vm594_vm3, %v2235_v35, %v2237_v52  ;;  %vm2358_vm3 = vcmask 654336  }
 0x36c   :  { %2048 = vrot.lane.b32.xlu1 %v2023_v14, %s4489_s2  ;;  %2253 = vrot.lane.b32.xlu0 %v2228_v8, %s4492_s17 }
 0x370   :  { %2050 = vrot.lane.b32.xlu1 %v2025_v30, %s4489_s2  ;;  %2117 = vrot.lane.b32.xlu0 %v2092_v36, %s4490_s26 }
 0x374   :  { %2119 = vrot.lane.b32.xlu1 %v2094_v59, %s4490_s26  ;;  %2186 = vrot.lane.b32.xlu0 %v2161_v9, %s4491_s3 }
 0x378   :  { %2188 = vrot.lane.b32.xlu1 %v2163_v5, %s4491_s3  ;;  %2255 = vrot.lane.b32.xlu0 %v2230_v11, %s4492_s17 }
 0x37c   :  { %2052 = vrot.lane.b32.xlu1 %v2027_v15, %s4489_s2  ;;  %2257 = vrot.lane.b32.xlu0 %v2232_v53, %s4492_s17 }
 0x380   :  { %2054 = vrot.lane.b32.xlu1 %v2029_v4, %s4489_s2  ;;  %2121 = vrot.lane.b32.xlu0 %v2096_v20, %s4490_s26 }
 0x384   :  { %2123 = vrot.lane.b32.xlu1 %v2098_v54, %s4490_s26  ;;  %2190 = vrot.lane.b32.xlu0 %v2165_v23, %s4491_s3 }
 0x388   :  { %2192 = vrot.lane.b32.xlu1 %v2167_v26, %s4491_s3  ;;  %2259 = vrot.lane.b32.xlu0 %v2234_v60, %s4492_s17 }
 0x38c   :  { %2058 = vrot.lane.b32.xlu1 %v2030_v46, %s4489_s2  ;;  %2261 = vrot.lane.b32.xlu0 %v2236_v12, %s4492_s17 }
 0x390   :  { %2127 = vrot.lane.b32.xlu1 %v2099_v22, %s4490_s26  ;;  %2125 = vrot.lane.b32.xlu0 %v2100_v6, %s4490_s26 }
 0x394   :  { %2196 = vrot.lane.b32.xlu1 %v2168_v56, %s4491_s3  ;;  %2194 = vrot.lane.b32.xlu0 %v2169_v17, %s4491_s3 }
 0x398   :  { %2056 = vrot.lane.b32.xlu1 %v2031_v13, %s4489_s2  ;;  %2263 = vrot.lane.b32.xlu0 %v2238_v25, %s4492_s17 }
 0x39c   :  { %2265 = vrot.lane.b32.xlu1 %v2237_v52, %s4492_s17 }
 0x39e   :  { %v2033_v31 = vpop.permute.xlu0 %2032 }
 0x39f   :  { %v2282_v61 = vsel %vm2281_vm0, %v5637_v43, %v2033_v31 }
 0x3a2   :  { %v2035_v14 = vpop.permute.xlu1 %2034  ;;  %v2102_v8 = vpop.permute.xlu0 %2101 }
 0x3a3   :  { %v2297_v30 = vsel %vm2296_vm2, %v2282_v61, %v2102_v8  ;;  %v2283_v41 = vsel %vm2281_vm0, %v5639_v28, %v2035_v14 }
 0x3a6   :  { %v2104_v10 = vpop.permute.xlu1 %2103  ;;  %v2171_v24 = vpop.permute.xlu0 %2170 }
 0x3a7   :  { %v2312_v36 = vsel %vm2311_vm10, %v2297_v30, %v2171_v24  ;;  %v2298_v59 = vsel %vm2296_vm2, %v2283_v41, %v2104_v10 }
 0x3aa   :  { %v2173_v0 = vpop.permute.xlu1 %2172  ;;  %v2240_v62 = vpop.permute.xlu0 %2239 }
 0x3ab   :  { %v2327_v3 = vsel %vm2326_vm15, %v2312_v36, %v2240_v62  ;;  %v2313_v9 = vsel %vm2311_vm10, %v2298_v59, %v2173_v0 }
 0x3ac   :  { %4175 = vmatprep.mubr.msk.f32.mxu0 %vm2358_vm3, %v2327_v3 }
 0x3ae   :  { %v2037_v43 = vpop.permute.xlu1 %2036  ;;  %v2242_v29 = vpop.permute.xlu0 %2241 }
 0x3af   :  { %v2328_v45 = vsel %vm2326_vm15, %v2313_v9, %v2242_v29  ;;  %v2284_v15 = vsel %vm2281_vm0, %v5649_v40, %v2037_v43 }
 0x3b0   :  { %4176 = vmatmul.mubr.msk.f32.vlgmr.msra.gmra.mxu0 %vm2358_vm3, %v2328_v45 }
 0x3b2   :  { %v2039_v11 = vpop.permute.xlu1 %2038  ;;  %v2106_v5 = vpop.permute.xlu0 %2105 }
 0x3b3   :  { %v2299_v28 = vsel %vm2296_vm2, %v2284_v15, %v2106_v5  ;;  %v2285_v4 = vsel %vm2281_vm0, %v5671_v55, %v2039_v11 }
 0x3b6   :  { %v2108_v27 = vpop.permute.xlu1 %2107  ;;  %v2175_v34 = vpop.permute.xlu0 %2174 }
 0x3b7   :  { %v2314_v53 = vsel %vm2311_vm10, %v2299_v28, %v2175_v34  ;;  %v2300_v20 = vsel %vm2296_vm2, %v2285_v4, %v2108_v27 }
 0x3ba   :  { %v2177_v37 = vpop.permute.xlu1 %2176  ;;  %v2244_v50 = vpop.permute.xlu0 %2243 }
 0x3bb   :  { %v2329_v16 = vsel %vm2326_vm15, %v2314_v53, %v2244_v50  ;;  %v2315_v21 = vsel %vm2311_vm10, %v2300_v20, %v2177_v37 }
 0x3bc   :  { %4178 = vmatprep.mubr.msk.f32.mxu0 %vm2358_vm3, %v2329_v16 }
 0x3be   :  { %v2041_v42 = vpop.permute.xlu1 %2040  ;;  %v2246_v2 = vpop.permute.xlu0 %2245 }
 0x3bf   :  { %v2330_v40 = vsel %vm2326_vm15, %v2315_v21, %v2246_v2  ;;  %v2286_v26 = vsel %vm2281_vm0, %v5680_v51, %v2041_v42 }
 0x3c0   :  { %4179 = vmatmul.mubr.msk.f32.gmra.mxu0 %vm2358_vm3, %v2330_v40 }
 0x3c2   :  { %v2043_v54 = vpop.permute.xlu1 %2042  ;;  %v2110_v23 = vpop.permute.xlu0 %2109 }
 0x3c3   :  { %v2301_v55 = vsel %vm2296_vm2, %v2286_v26, %v2110_v23  ;;  %v2287_v22 = vsel %vm2281_vm0, %v5700_v58, %v2043_v54 }
 0x3c6   :  { %v2112_v33 = vpop.permute.xlu1 %2111  ;;  %v2179_v49 = vpop.permute.xlu0 %2178 }
 0x3c7   :  { %v2316_v60 = vsel %vm2311_vm10, %v2301_v55, %v2179_v49  ;;  %v2302_v6 = vsel %vm2296_vm2, %v2287_v22, %v2112_v33 }
 0x3ca   :  { %v2181_v35 = vpop.permute.xlu1 %2180  ;;  %v2248_v46 = vpop.permute.xlu0 %2247 }
 0x3cb   :  { %v2331_v12 = vsel %vm2326_vm15, %v2316_v60, %v2248_v46  ;;  %v2317_v56 = vsel %vm2311_vm10, %v2302_v6, %v2181_v35 }
 0x3cc   :  { %4181 = vmatprep.mubr.msk.f32.mxu0 %vm2358_vm3, %v2331_v12 }
 0x3ce   :  { %v2045_v17 = vpop.permute.xlu1 %2044  ;;  %v2250_v52 = vpop.permute.xlu0 %2249 }
 0x3cf   :  { %v2332_v51 = vsel %vm2326_vm15, %v2317_v56, %v2250_v52  ;;  %v2288_v8 = vsel %vm2281_vm0, %v5708_v19, %v2045_v17 }
 0x3d0   :  { %4182 = vmatmul.mubr.msk.f32.gmra.mxu0 %vm2358_vm3, %v2332_v51 }
 0x3d2   :  { %v2047_v13 = vpop.permute.xlu1 %2046  ;;  %v2114_v25 = vpop.permute.xlu0 %2113 }
 0x3d3   :  { %v2303_v58 = vsel %vm2296_vm2, %v2288_v8, %v2114_v25  ;;  %v2289_v36 = vsel %vm2281_vm0, %v5728_v39, %v2047_v13 }
 0x3d6   :  { %v2116_v31 = vpop.permute.xlu1 %2115  ;;  %v2183_v14 = vpop.permute.xlu0 %2182 }
 0x3d7   :  { %v2318_v10 = vsel %vm2311_vm10, %v2303_v58, %v2183_v14  ;;  %v2304_v0 = vsel %vm2296_vm2, %v2289_v36, %v2116_v31 }
 0x3da   :  { %v2185_v24 = vpop.permute.xlu1 %2184  ;;  %v2252_v61 = vpop.permute.xlu0 %2251 }
 0x3db   :  { %v2333_v30 = vsel %vm2326_vm15, %v2318_v10, %v2252_v61  ;;  %v2319_v62 = vsel %vm2311_vm10, %v2304_v0, %v2185_v24 }
 0x3dc   :  { %4184 = vmatprep.mubr.msk.f32.mxu0 %vm2358_vm3, %v2333_v30 }
 0x3de   :  { %v2049_v3 = vpop.permute.xlu1 %2048  ;;  %v2254_v41 = vpop.permute.xlu0 %2253 }
 0x3df   :  { %v2334_v19 = vsel %vm2326_vm15, %v2319_v62, %v2254_v41  ;;  %v2290_v45 = vsel %vm2281_vm0, %v5736_v44, %v2049_v3 }
 0x3e0   :  { %4185 = vmatmul.mubr.msk.f32.gmra.mxu0 %vm2358_vm3, %v2334_v19  ;;  %v3816_v19 = vld [vmem:[%s6353_s4] ss:$0 sm:$0xff] }
 0x3e2   :  { %v2051_v59 = vpop.permute.xlu1 %2050  ;;  %v2118_v9 = vpop.permute.xlu0 %2117 }
 0x3e3   :  { %v2305_v39 = vsel %vm2296_vm2, %v2290_v45, %v2118_v9  ;;  %v2291_v15 = vsel %vm2281_vm0, %v5756_v18, %v2051_v59 }
 0x3e6   :  { %v2120_v43 = vpop.permute.xlu1 %2119  ;;  %v2187_v29 = vpop.permute.xlu0 %2186 }
 0x3e7   :  { %v2320_v11 = vsel %vm2311_vm10, %v2305_v39, %v2187_v29  ;;  %v2306_v28 = vsel %vm2296_vm2, %v2291_v15, %v2120_v43 }
 0x3ea   :  { %v2189_v5 = vpop.permute.xlu1 %2188  ;;  %v2256_v27 = vpop.permute.xlu0 %2255 }
 0x3eb   :  { %v2335_v34 = vsel %vm2326_vm15, %v2320_v11, %v2256_v27  ;;  %v2321_v53 = vsel %vm2311_vm10, %v2306_v28, %v2189_v5 }
 0x3ec   :  { %4187 = vmatprep.mubr.msk.f32.mxu0 %vm2358_vm3, %v2335_v34 }
 0x3ee   :  { %v2053_v37 = vpop.permute.xlu1 %2052  ;;  %v2258_v50 = vpop.permute.xlu0 %2257 }
 0x3ef   :  { %v2336_v44 = vsel %vm2326_vm15, %v2321_v53, %v2258_v50  ;;  %v2292_v42 = vsel %vm2281_vm0, %v5764_v32, %v2053_v37 }
 0x3f0   :  { %4188 = vmatmul.mubr.msk.f32.gmra.mxu0 %vm2358_vm3, %v2336_v44 }
 0x3f2   :  { %v2055_v16 = vpop.permute.xlu1 %2054  ;;  %v2122_v4 = vpop.permute.xlu0 %2121 }
 0x3f3   :  { %v2307_v18 = vsel %vm2296_vm2, %v2292_v42, %v2122_v4  ;;  %v2293_v33 = vsel %vm2281_vm0, %v5784_v1, %v2055_v16 }
 0x3f6   :  { %v2124_v20 = vpop.permute.xlu1 %2123  ;;  %v2191_v21 = vpop.permute.xlu0 %2190 }
 0x3f7   :  { %v2322_v2 = vsel %vm2311_vm10, %v2307_v18, %v2191_v21  ;;  %v2308_v49 = vsel %vm2296_vm2, %v2293_v33, %v2124_v20 }
 0x3fa   :  { %v2193_v40 = vpop.permute.xlu1 %2192  ;;  %v2260_v54 = vpop.permute.xlu0 %2259 }
 0x3fb   :  { %v2337_v23 = vsel %vm2326_vm15, %v2322_v2, %v2260_v54  ;;  %v2323_v26 = vsel %vm2311_vm10, %v2308_v49, %v2193_v40 }
 0x3fc   :  { %4190 = vmatprep.mubr.msk.f32.mxu0 %vm2358_vm3, %v2337_v23 }
 0x3fe   :  { %v2059_v55 = vpop.permute.xlu1 %2058  ;;  %v2262_v60 = vpop.permute.xlu0 %2261 }
 0x3ff   :  { %v2338_v32 = vsel %vm2326_vm15, %v2323_v26, %v2262_v60  ;;  %v2295_v56 = vsel %vm2281_vm0, %v5817_v38, %v2059_v55 }
 0x400   :  { %4191 = vmatmul.mubr.msk.f32.gmra.mxu0 %vm2358_vm3, %v2338_v32 }
 0x402   :  { %v2128_v35 = vpop.permute.xlu1 %2127  ;;  %v2126_v46 = vpop.permute.xlu0 %2125 }
 0x403   :  { %v2310_v52 = vsel %vm2296_vm2, %v2295_v56, %v2128_v35 }
 0x406   :  { %v2197_v12 = vpop.permute.xlu1 %2196  ;;  %v2195_v22 = vpop.permute.xlu0 %2194 }
 0x407   :  { %v2325_v25 = vsel %vm2311_vm10, %v2310_v52, %v2197_v12 }
 0x40a   :  { %v2057_v6 = vpop.permute.xlu1 %2056  ;;  %v2264_v13 = vpop.permute.xlu0 %2263 }
 0x40b   :  { %v2294_v1 = vsel %vm2281_vm0, %v5792_v47, %v2057_v6  ;;  %vm3730_vm0 = vcmp.eq.s32.totalorder %v5365_v7, 2 }
 0x40c   :  { %v2309_v17 = vsel %vm2296_vm2, %v2294_v1, %v2126_v46 }
 0x40d   :  { %v2324_v51 = vsel %vm2311_vm10, %v2309_v17, %v2195_v22  ;;  %vm3728_vm10 = vcmp.eq.s32.totalorder %v5365_v7, 0 }
 0x40e   :  { %v2339_v31 = vsel %vm2326_vm15, %v2324_v51, %v2264_v13  ;;  %v2266_v14 = vpop.permute.xlu1 %2265 }
 0x40f   :  { %v2340_v8 = vsel %vm2326_vm15, %v2325_v25, %v2266_v14  ;;  %4193 = vmatprep.mubr.msk.f32.mxu0 %vm2358_vm3, %v2339_v31 }
 0x410   :  { %4194 = vmatmul.mubr.msk.f32.gmra.mxu0 %vm2358_vm3, %v2340_v8 }
 0x411   :  { %4266 = vmatprep.mubr.msk.f32.mxu0 %vm4493_vm4, %v6367_v57 }
 0x470   :  { %v5930_v47 = vpop.f32.mrf.mxu0 }
 0x471   :  { %v2473_v25 = vadd.f32 %v5930_v47, %v3816_v19 }
 0x472   :  { %v5932_v38 = vpop.f32.mrf.mxu0 }
 0x473   :  { %v5986_v31 = vadd.f32 %v3816_v19, %v5932_v38 }
 0x480   :  { %v4180_v58 = vpop.f32.mrf.mxu0 }
 0x481   :  { %v5964_v46 = vadd.f32 %v4180_v58, %v3816_v19 }
 0x482   :  { %v2477_v10 = vpop.f32.mrf.mxu0 }
 0x483   :  { %v5966_v12 = vadd.f32 %v3816_v19, %v2477_v10  ;;  %v2539_v14 = vmax.f32 %v5964_v46, 0.0  ;;  %v2629_v46 = vld [vmem:[%s6354_s5 + $0x50] sm:$0xff] }
 0x485   :  { %v2538_v58 = vmax.f32 %v5966_v12, 0.0  ;;  %v2628_v12 = vld [vmem:[%s6354_s5 + $0x48] sm:$0xff] }
 0x490   :  { %v4183_v24 = vpop.f32.mrf.mxu0 }
 0x491   :  { %v5947_v40 = vadd.f32 %v4183_v24, %v3816_v19 }
 0x492   :  { %v2487_v61 = vpop.f32.mrf.mxu0 }
 0x493   :  { %v5949_v54 = vadd.f32 %v3816_v19, %v2487_v61  ;;  %v2541_v22 = vmax.f32 %v5947_v40, 0.0 }
 0x495   :  { %v2540_v1 = vmax.f32 %v5949_v54, 0.0  ;;  %v2573_v10 = vrot.slane %v2541_v22, 1 }
 0x497   :  { %v2571_v24 = vrot.slane %v2540_v1, 1 }
 0x4a0   :  { %v4186_v30 = vpop.f32.mrf.mxu0 }
 0x4a1   :  { %v2503_v37 = vadd.f32 %v4186_v30, %v3816_v19  ;;  %v2537_v30 = vmax.f32 %v2473_v25, 0.0  ;;  %v2633_v25 = vld [vmem:[%s6354_s5 + $0x70] sm:$0xff] }
 0x4a2   :  { %v2497_v36 = vpop.f32.mrf.mxu0 }
 0x4a3   :  { %v5937_v50 = vadd.f32 %v3816_v19, %v2497_v36  ;;  %v2543_v23 = vmax.f32 %v2503_v37, 0.0 }
 0x4a5   :  { %v2542_v49 = vmax.f32 %v5937_v50, 0.0  ;;  %v2577_v56 = vrot.slane %v2543_v23, 1 }
 0x4a7   :  { %v2575_v17 = vrot.slane %v2542_v49, 1 }
 0x4a9   :  { %v2578_v61 = vsel %vm114_vm1, %v2575_v17, %v2577_v56  ;;  %v2576_v38 = vsel %vm114_vm1, %v2573_v10, %v2575_v17 }
 0x4aa   :  { %v6004_v36 = vmax.f32 %v2542_v49, %v2578_v61 }
 0x4b0   :  { %v4189_v0 = vpop.f32.mrf.mxu0 }
 0x4b1   :  { %v2513_v45 = vadd.f32 %v4189_v0, %v3816_v19  ;;  %v6009_v0 = vmul.u32 14, %v5363_v63 }
 0x4b2   :  { %v2507_v62 = vpop.f32.mrf.mxu0 }
 0x4b3   :  { %v2508_v39 = vadd.f32 %v3816_v19, %v2507_v62  ;;  %v2545_v44 = vmax.f32 %v2513_v45, 0.0  ;;  %v2536_v62 = vmax.f32 %v5986_v31, 0.0  ;;  %vm2648_vm6 = vcmp.eq.s32.totalorder %v5365_v7, %v6009_v0  ;;  %v2632_v31 = vld [vmem:[%s6354_s5 + $0x68] sm:$0xff] }
 0x4b4   :  { %v2649_v50 = vsel %vm2648_vm6, 1.0, %v6367_v57  ;;  %v3101_v17 = vadd.s32 6, %v6009_v0 }
 0x4b5   :  { %v2544_v16 = vmax.f32 %v2508_v39, 0.0  ;;  %v2581_v26 = vrot.slane %v2545_v44, 1  ;;  %v2564_v45 = vrot.slane %v2536_v62, 1 }
 0x4b6   :  { %vm3102_vm8 = vcmp.eq.s32.totalorder %v5365_v7, %v3101_v17 }
 0x4b7   :  { %v2579_v55 = vrot.slane %v2544_v16, 1 }
 0x4b9   :  { %v2582_v52 = vsel %vm114_vm1, %v2579_v55, %v2581_v26  ;;  %v2580_v13 = vsel %vm114_vm1, %v2577_v56, %v2579_v55  ;;  %v2624_v55 = vld [vmem:[%s6354_s5 + $0x28] sm:$0xff] }
 0x4ba   :  { %v5989_v8 = vmax.f32 %v2544_v16, %v2582_v52  ;;  %v5997_v47 = vmax.f32 %v2543_v23, %v2580_v13  ;;  %v2621_v16 = vld [vmem:[%s6354_s5 + $0x10] sm:$0xff]  ;;  %v3103_v52 = vsel %vm3102_vm8, 1.0, %v6367_v57  ;;  %v2634_v13 = vld [vmem:[%s6354_s5 + $0x78] sm:$0xff] }
 0x4bb   :  { %v2625_v23 = vld [vmem:[%s6354_s5 + $0x30] sm:$0xff] }
 0x4c0   :  { %v4192_v3 = vpop.f32.mrf.mxu0 }
 0x4c1   :  { %v2523_v59 = vadd.f32 %v4192_v3, %v3816_v19  ;;  %v2569_v3 = vrot.slane %v2539_v14, 1 }
 0x4c2   :  { %v2517_v41 = vpop.f32.mrf.mxu0 }
 0x4c3   :  { %v2518_v9 = vadd.f32 %v3816_v19, %v2517_v41  ;;  %v2547_v5 = vmax.f32 %v2523_v59, 0.0  ;;  %v2567_v41 = vrot.slane %v2538_v58, 1  ;;  %v6015_v59 = vmax.f32 %v2541_v22, %v2576_v38  ;;  %v2627_v22 = vld [vmem:[%s6354_s5 + $0x40] sm:$0xff] }
 0x4c5   :  { %v2546_v27 = vmax.f32 %v2518_v9, 0.0  ;;  %v2585_v4 = vrot.slane %v2547_v5, 1  ;;  %v2572_v9 = vsel %vm114_vm1, %v2569_v3, %v2571_v24  ;;  %v2570_v39 = vsel %vm114_vm1, %v2567_v41, %v2569_v3 }
 0x4c7   :  { %v2583_v20 = vrot.slane %v2546_v27, 1 }
 0x4c9   :  { %v2586_v60 = vsel %vm114_vm1, %v2583_v20, %v2585_v4  ;;  %v2584_v35 = vsel %vm114_vm1, %v2581_v26, %v2583_v20  ;;  %v2619_v20 = vld [vmem:[%s6354_s5] sm:$0xff] }
 0x4ca   :  { %v5969_v6 = vmax.f32 %v2546_v27, %v2586_v60  ;;  %v5977_v51 = vmax.f32 %v2545_v44, %v2584_v35  ;;  %v2622_v44 = vld [vmem:[%s6354_s5 + $0x18] sm:$0xff]  ;;  %v2623_v60 = vld [vmem:[%s6354_s5 + $0x20] sm:$0xff] }
 0x4cb   :  { %v2630_v35 = vld [vmem:[%s6354_s5 + $0x58] sm:$0xff] }
 0x4d0   :  { %v4195_v43 = vpop.f32.mrf.mxu0 }
 0x4d1   :  { %v2533_v29 = vadd.f32 %v4195_v43, %v3816_v19 }
 0x4d2   :  { %v2527_v11 = vpop.f32.mrf.mxu0 }
 0x4d3   :  { %v2549_v34 = vmax.f32 %v2533_v29, 0.0  ;;  %v2528_v15 = vadd.f32 %v3816_v19, %v2527_v11  ;;  %v2574_v19 = vsel %vm114_vm1, %v2571_v24, %v2573_v10  ;;  %v2565_v29 = vrot.slane %v2537_v30, 1  ;;  %v3831_v10 = vld [vmem:[%s6355_s6] ss:$0 sm:$0xff] }
 0x4d4   :  { %v6022_v43 = vmax.f32 %v2540_v1, %v2574_v19  ;;  %v2801_v11 = vadd.s32 2, %v6009_v0 }
 0x4d5   :  { %v2589_v28 = vrot.slane %v2549_v34, 1  ;;  %v2548_v53 = vmax.f32 %v2528_v15, 0.0  ;;  %v2568_v27 = vsel %vm114_vm1, %v2565_v29, %v2567_v41  ;;  %v2566_v15 = vsel %vm114_vm1, %v2564_v45, %v2565_v29  ;;  %v3404_v45 = vld [vmem:[%s6356_s7 + $0x10] sm:$0xff] }
 0x4d6   :  { %vm2802_vm5 = vcmp.eq.s32.totalorder %v5365_v7, %v2801_v11  ;;  %v3403_v11 = vld [vmem:[%s6356_s7 + $0x8] sm:$0xff] }
 0x4d7   :  { %v5939_v21 = vmax.f32 %v2549_v34, %v2589_v28  ;;  %v2587_v42 = vrot.slane %v2548_v53, 1  ;;  %v6037_v34 = vmax.f32 %v2538_v58, %v2570_v39  ;;  %v2803_v37 = vsel %vm2802_vm5, 1.0, %v6367_v57 }
 0x4d9   :  { %v2588_v18 = vsel %vm114_vm1, %v2585_v4, %v2587_v42  ;;  %v2590_v2 = vsel %vm114_vm1, %v2587_v42, %v2589_v28  ;;  %4197 = vmatpush3.msk.msra.mxu1 %vm1852_vm11, %v5939_v21  ;;  %4239 = vmatpush3.msk.msra.mxu0 %vm1852_vm11, %v5939_v21  ;;  %v6045_v28 = vmax.f32 %v2537_v30, %v2568_v27  ;;  %vm2650_vm1 = vcmask 875520   ;;  %v2620_v4 = vld [vmem:[%s6354_s5 + $0x8] sm:$0xff] }
 0x4da   :  { %v5951_v33 = vmax.f32 %v2548_v53, %v2590_v2  ;;  %4198 = vmatprep.subr.mxu1 %v6367_v57  ;;  %4240 = vmatprep.subr.mxu0 %v6367_v57  ;;  %v5957_v32 = vmax.f32 %v2547_v5, %v2588_v18  ;;  %v6030_v5 = vmax.f32 %v2539_v14, %v2572_v9  ;;  %v2951_v42 = vadd.s32 4, %v6009_v0  ;;  %v2626_v2 = vld [vmem:[%s6354_s5 + $0x38] sm:$0xff]  ;;  %v2631_v14 = vld [vmem:[%s6354_s5 + $0x60] sm:$0xff] }
 0x4db   :  { %v6053_v53 = vmax.f32 %v2536_v62, %v2566_v15 }
 0x4dc   :  { %4199 = vmatpush3.msra.mxu1 %v5951_v33  ;;  %4241 = vmatpush3.msra.mxu0 %v5951_v33  ;;  %vm2952_vm7 = vcmp.eq.s32.totalorder %v5365_v7, %v2951_v42 }
 0x4dd   :  { %4200 = vmatprep.subr.mxu1 %v6367_v57  ;;  %4242 = vmatprep.subr.mxu0 %v6367_v57  ;;  %v2953_v18 = vsel %vm2952_vm7, 1.0, %v6367_v57 }
 0x4de   :  { %4201 = vmatpush3.msra.mxu1 %v5957_v32  ;;  %4243 = vmatpush3.msra.mxu0 %v5957_v32 }
 0x4df   :  { %4202 = vmatprep.subr.mxu1 %v6367_v57  ;;  %4244 = vmatprep.subr.mxu0 %v6367_v57 }
 0x4e0   :  { %4203 = vmatpush3.msra.mxu1 %v5969_v6  ;;  %4245 = vmatpush3.msra.mxu0 %v5969_v6 }
 0x4e1   :  { %4204 = vmatprep.subr.mxu1 %v6367_v57  ;;  %4246 = vmatprep.subr.mxu0 %v6367_v57 }
 0x4e2   :  { %4205 = vmatpush3.msra.mxu1 %v5977_v51  ;;  %4247 = vmatpush3.msra.mxu0 %v5977_v51 }
 0x4e3   :  { %4206 = vmatprep.subr.mxu1 %v6367_v57  ;;  %4248 = vmatprep.subr.mxu0 %v6367_v57 }
 0x4e4   :  { %4207 = vmatpush3.msra.mxu1 %v5989_v8  ;;  %4249 = vmatpush3.msra.mxu0 %v5989_v8 }
 0x4e5   :  { %4208 = vmatprep.subr.mxu1 %v6367_v57  ;;  %4250 = vmatprep.subr.mxu0 %v6367_v57 }
 0x4e6   :  { %4209 = vmatpush3.msra.mxu1 %v5997_v47  ;;  %4251 = vmatpush3.msra.mxu0 %v5997_v47 }
 0x4e7   :  { %4210 = vmatprep.subr.mxu1 %v6367_v57  ;;  %4252 = vmatprep.subr.mxu0 %v6367_v57 }
 0x4e8   :  { %4211 = vmatpush3.msra.mxu1 %v6004_v36  ;;  %4253 = vmatpush3.msra.mxu0 %v6004_v36 }
 0x4e9   :  { %4212 = vmatprep.subr.mxu1 %v6367_v57  ;;  %4254 = vmatprep.subr.mxu0 %v6367_v57 }
 0x4ea   :  { %4213 = vmatpush3.msra.mxu1 %v6015_v59  ;;  %4255 = vmatpush3.msra.mxu0 %v6015_v59 }
 0x4eb   :  { %4214 = vmatprep.subr.mxu1 %v6367_v57  ;;  %4256 = vmatprep.subr.mxu0 %v6367_v57 }
 0x4ec   :  { %4215 = vmatpush3.msra.mxu1 %v6022_v43  ;;  %4257 = vmatpush3.msra.mxu0 %v6022_v43 }
 0x4ed   :  { %4216 = vmatprep.subr.mxu1 %v6367_v57  ;;  %4258 = vmatprep.subr.mxu0 %v6367_v57 }
 0x4ee   :  { %4217 = vmatpush3.msra.mxu1 %v6030_v5  ;;  %4259 = vmatpush3.msra.mxu0 %v6030_v5 }
 0x4ef   :  { %4218 = vmatprep.subr.mxu1 %v6367_v57  ;;  %4260 = vmatprep.subr.mxu0 %v6367_v57 }
 0x4f0   :  { %4219 = vmatpush3.msra.mxu1 %v6037_v34  ;;  %4261 = vmatpush3.msra.mxu0 %v6037_v34 }
 0x4f1   :  { %4220 = vmatprep.subr.mxu1 %v6367_v57  ;;  %4262 = vmatprep.subr.mxu0 %v6367_v57 }
 0x4f2   :  { %4221 = vmatpush3.msra.mxu1 %v6045_v28  ;;  %4263 = vmatpush3.msra.mxu0 %v6045_v28 }
 0x4f3   :  { %4222 = vmatprep.subr.mxu1 %v6367_v57  ;;  %4264 = vmatprep.subr.mxu0 %v6367_v57 }
 0x4f4   :  { %4223 = vmatpush3.msra.mxu1 %v6053_v53  ;;  %4265 = vmatpush3.msra.mxu0 %v6053_v53 }
 0x4f5   :  { %4280 = vmatprep.subr.mxu0 %v6367_v57  ;;  %4267 = vmatmul.mubr.msk.f32.vlgmr.msra.gmra.mxu0 %vm2650_vm1, %v2803_v37  ;;  %v3488_v37 = vld [vmem:[%s6358_s9 + $0x10] sm:$0xff] }
 0x4f6   :  { %4281 = vmatpush3.msk.msra.mxu0 %vm1852_vm11, %v5939_v21  ;;  %4225 = vmatmul.mubr.msk.f32.vlgmr.msra.gmra.mxu1 %vm2650_vm1, %v2649_v50  ;;  %v3487_v50 = vld [vmem:[%s6358_s9 + $0x8] sm:$0xff] }
 0x4f7   :  { %4282 = vmatprep.subr.mxu0 %v6367_v57  ;;  %4308 = vmatprep.mubr.msk.f32.mxu0 %vm4493_vm4, %v6367_v57 }
 0x4f8   :  { %4283 = vmatpush3.msra.mxu0 %v5951_v33  ;;  %4227 = vmatprep.subr.mxu1 %v6367_v57 }
 0x4f9   :  { %4284 = vmatprep.subr.mxu0 %v6367_v57  ;;  %4228 = vmatpush3.msra.mxu1 %v2622_v44  ;;  %v3486_v44 = vld [vmem:[%s6358_s9] sm:$0xff] }
 0x4fa   :  { %4285 = vmatpush3.msra.mxu0 %v5957_v32  ;;  %4229 = vmatprep.subr.mxu1 %v6367_v57 }
 0x4fb   :  { %4286 = vmatprep.subr.mxu0 %v6367_v57  ;;  %4230 = vmatpush3.msra.mxu1 %v2621_v16  ;;  %v3847_v16 = vld [vmem:[%s6357_s8] ss:$0 sm:$0xff] }
 0x4fc   :  { %4287 = vmatpush3.msra.mxu0 %v5969_v6  ;;  %4231 = vmatprep.subr.mxu1 %v6367_v57 }
 0x4fd   :  { %4288 = vmatprep.subr.mxu0 %v6367_v57  ;;  %4232 = vmatpush3.msra.mxu1 %v2620_v4 }
 0x4fe   :  { %4289 = vmatpush3.msra.mxu0 %v5977_v51  ;;  %4233 = vmatprep.subr.mxu1 %v6367_v57 }
 0x4ff   :  { %4290 = vmatprep.subr.mxu0 %v6367_v57  ;;  %4234 = vmatpush3.msra.mxu1 %v2619_v20 }
 0x500   :  { %4291 = vmatpush3.msra.mxu0 %v5989_v8  ;;  %4235 = vmatprep.mubr.msk.f32.mxu1 %vm4493_vm4, %v6367_v57 }
 0x501   :  { %4292 = vmatprep.subr.mxu0 %v6367_v57  ;;  %4269 = vmatprep.subr.mxu1 %v6367_v57 }
 0x502   :  { %4293 = vmatpush3.msra.mxu0 %v5997_v47 }
 0x503   :  { %4294 = vmatprep.subr.mxu0 %v6367_v57 }
 0x504   :  { %4295 = vmatpush3.msra.mxu0 %v6004_v36 }
 0x505   :  { %4296 = vmatprep.subr.mxu0 %v6367_v57 }
 0x506   :  { %4297 = vmatpush3.msra.mxu0 %v6015_v59 }
 0x507   :  { %4298 = vmatprep.subr.mxu0 %v6367_v57 }
 0x508   :  { %4299 = vmatpush3.msra.mxu0 %v6022_v43 }
 0x509   :  { %4300 = vmatprep.subr.mxu0 %v6367_v57 }
 0x50a   :  { %4301 = vmatpush3.msra.mxu0 %v6030_v5 }
 0x50b   :  { %4302 = vmatprep.subr.mxu0 %v6367_v57 }
 0x50c   :  { %4303 = vmatpush3.msra.mxu0 %v6037_v34 }
 0x50d   :  { %4304 = vmatprep.subr.mxu0 %v6367_v57 }
 0x50e   :  { %4305 = vmatpush3.msra.mxu0 %v6045_v28 }
 0x50f   :  { %4306 = vmatprep.subr.mxu0 %v6367_v57 }
 0x510   :  { %4307 = vmatpush3.msra.mxu0 %v6053_v53 }
 0x511   :  { %4309 = vmatmul.mubr.msk.f32.vlgmr.msra.gmra.mxu0 %vm2650_vm1, %v2953_v18  ;;  %4353 = vmatprep.subr.mxu0 %v6367_v57 }
 0x512   :  { %4361 = vmatprep.mubr.msk.f32.mxu0 %vm4493_vm4, %v6367_v57  ;;  %4354 = vmatpush3.msra.mxu0 %v2634_v13 }
 0x513   :  { %4355 = vmatprep.subr.mxu0 %v6367_v57 }
 0x514   :  { %4356 = vmatpush3.msra.mxu0 %v2633_v25  ;;  %v3698_v25 = vsel %vm3697_vm14, 0.0, %v4488_v48 }
 0x515   :  { %4357 = vmatprep.subr.mxu0 %v6367_v57 }
 0x516   :  { %4358 = vmatpush3.msra.mxu0 %v2632_v31 }
 0x517   :  { %4359 = vmatprep.subr.mxu0 %v6367_v57 }
 0x518   :  { %4360 = vmatpush3.msra.mxu0 %v2631_v14 }
 0x519   :  { %4364 = vmatprep.subr.mxu0 %v6367_v57 }
 0x5b5   :  { %v2873_v40 = vpop.f32.mrf.mxu0 }
 0x5b6   :  { %v2723_v54 = vpop.f32.mrf.mxu1 }
 0x5b7   :  { %4236 = vmatmul.mubr.msk.f32.vlgmr.msra.gmra.mxu1 %vm2296_vm2, %v2723_v54  ;;  %v4268_v49 = vpop.f32.mrf.mxu0  ;;  %v3849_v54 = vld [vmem:[%s6359_s10] ss:$0 sm:$0xff] }
 0x5b8   :  { %4270 = vmatpush3.msra.mxu1 %v2626_v2  ;;  %4277 = vmatprep.mubr.msk.f32.mxu1 %vm4493_vm4, %v6367_v57  ;;  %v4226_v26 = vpop.f32.mrf.mxu1 }
 0x5b9   :  { %4271 = vmatprep.subr.mxu1 %v6367_v57 }
 0x5ba   :  { %4272 = vmatpush3.msra.mxu1 %v2625_v23 }
 0x5bb   :  { %4273 = vmatprep.subr.mxu1 %v6367_v57 }
 0x5bc   :  { %4274 = vmatpush3.msra.mxu1 %v2624_v55 }
 0x5bd   :  { %4275 = vmatprep.subr.mxu1 %v6367_v57 }
 0x5be   :  { %4276 = vmatpush3.msra.mxu1 %v2623_v60 }
 0x5bf   :  { %4278 = vmatmul.mubr.msk.f32.vlgmr.msra.gmra.mxu1 %vm2296_vm2, %v2873_v40  ;;  %4311 = vmatprep.subr.mxu1 %v6367_v57 }
 0x5c0   :  { %4312 = vmatpush3.msra.mxu1 %v2630_v35  ;;  %4319 = vmatprep.mubr.msk.f32.mxu1 %vm4493_vm4, %v6367_v57 }
 0x5c1   :  { %4313 = vmatprep.subr.mxu1 %v6367_v57 }
 0x5c2   :  { %4314 = vmatpush3.msra.mxu1 %v2629_v46 }
 0x5c3   :  { %4315 = vmatprep.subr.mxu1 %v6367_v57 }
 0x5c4   :  { %4316 = vmatpush3.msra.mxu1 %v2628_v12 }
 0x5c5   :  { %4317 = vmatprep.subr.mxu1 %v6367_v57 }
 0x5c6   :  { %4318 = vmatpush3.msra.mxu1 %v2627_v22 }
 0x5c7   :  { %4322 = vmatprep.subr.mxu1 %v6367_v57 }
 0x5d1   :  { %v3023_v1 = vpop.f32.mrf.mxu0 }
 0x5d2   :  { %4320 = vmatmul.mubr.msk.f32.vlgmr.msra.gmra.mxu1 %vm2296_vm2, %v3023_v1 }
 0x5d3   :  { %4323 = vmatpush3.msk.msra.mxu1 %vm1852_vm11, %v5939_v21  ;;  %v4310_v56 = vpop.f32.mrf.mxu0  ;;  %4350 = vmatprep.mubr.msk.f32.mxu1 %vm4493_vm4, %v6367_v57 }
 0x5d4   :  { %4324 = vmatprep.subr.mxu1 %v6367_v57 }
 0x5d5   :  { %4325 = vmatpush3.msra.mxu1 %v5951_v33 }
 0x5d6   :  { %4326 = vmatprep.subr.mxu1 %v6367_v57 }
 0x5d7   :  { %4327 = vmatpush3.msra.mxu1 %v5957_v32 }
 0x5d8   :  { %4328 = vmatprep.subr.mxu1 %v6367_v57 }
 0x5d9   :  { %4329 = vmatpush3.msra.mxu1 %v5969_v6 }
 0x5da   :  { %4330 = vmatprep.subr.mxu1 %v6367_v57 }
 0x5db   :  { %4331 = vmatpush3.msra.mxu1 %v5977_v51 }
 0x5dc   :  { %4332 = vmatprep.subr.mxu1 %v6367_v57 }
 0x5dd   :  { %4333 = vmatpush3.msra.mxu1 %v5989_v8 }
 0x5de   :  { %4334 = vmatprep.subr.mxu1 %v6367_v57 }
 0x5df   :  { %4335 = vmatpush3.msra.mxu1 %v5997_v47 }
 0x5e0   :  { %4336 = vmatprep.subr.mxu1 %v6367_v57 }
 0x5e1   :  { %4337 = vmatpush3.msra.mxu1 %v6004_v36 }
 0x5e2   :  { %4338 = vmatprep.subr.mxu1 %v6367_v57 }
 0x5e3   :  { %4339 = vmatpush3.msra.mxu1 %v6015_v59 }
 0x5e4   :  { %4340 = vmatprep.subr.mxu1 %v6367_v57 }
 0x5e5   :  { %4341 = vmatpush3.msra.mxu1 %v6022_v43 }
 0x5e6   :  { %4342 = vmatprep.subr.mxu1 %v6367_v57 }
 0x5e7   :  { %4343 = vmatpush3.msra.mxu1 %v6030_v5 }
 0x5e8   :  { %4344 = vmatprep.subr.mxu1 %v6367_v57 }
 0x5e9   :  { %4345 = vmatpush3.msra.mxu1 %v6037_v34 }
 0x5ea   :  { %4346 = vmatprep.subr.mxu1 %v6367_v57 }
 0x5eb   :  { %4347 = vmatpush3.msra.mxu1 %v6045_v28 }
 0x5ec   :  { %4348 = vmatprep.subr.mxu1 %v6367_v57 }
 0x5ed   :  { %4349 = vmatpush3.msra.mxu1 %v6053_v53 }
 0x5ee   :  { %4351 = vmatmul.mubr.msk.f32.vlgmr.msra.gmra.mxu1 %vm2650_vm1, %v3103_v52  ;;  %4395 = vmatprep.subr.mxu1 %v6367_v57 }
 0x5ef   :  { %4403 = vmatprep.mubr.msk.f32.mxu1 %vm4493_vm4, %v6367_v57 }
 0x677   :  { %v2796_v58 = vpop.f32.mrf.mxu1 }
 0x678   :  { %v2800_v61 = vadd.f32 %v3831_v10, %v2796_v58 }
 0x679   :  { %v4237_v24 = vpop.f32.mrf.mxu1 }
 0x67f   :  { %v2946_v38 = vpop.f32.mrf.mxu1 }
 0x680   :  { %v2950_v30 = vadd.f32 %v2946_v38, %v2800_v61 }
 0x681   :  { %v4279_v62 = vpop.f32.mrf.mxu1 }
 0x692   :  { %v3096_v3 = vpop.f32.mrf.mxu1 }
 0x693   :  { %v3100_v41 = vadd.f32 %v3096_v3, %v2950_v30  ;;  %v3699_v30 = vld [vmem:[%s6362_s13] sm:$0xff] }
 0x694   :  { %v4321_v19 = vpop.f32.mrf.mxu1  ;;  %v3700_v63 = vmul.f32 %v3699_v30, %v3698_v25 }
 0x696   :  { %v3710_v48 = vsel %vm3692_vm12, %v3700_v63, 0.0 }
 0x6ae   :  { %v3173_v9 = vpop.f32.mrf.mxu1 }
 0x6af   :  { %4362 = vmatmul.mubr.msk.f32.vlgmr.msra.gmra.mxu0 %vm2296_vm2, %v3173_v9 }
 0x6b0   :  { %4365 = vmatpush3.msk.msra.mxu0 %vm1852_vm11, %v5939_v21  ;;  %v4352_v29 = vpop.f32.mrf.mxu1  ;;  %4392 = vmatprep.mubr.msk.f32.mxu0 %vm4493_vm4, %v6367_v57  ;;  %v3251_v21 = vadd.s32 8, %v6009_v0 }
 0x6b1   :  { %4366 = vmatprep.subr.mxu0 %v6367_v57 }
 0x6b2   :  { %4367 = vmatpush3.msra.mxu0 %v5951_v33  ;;  %vm3252_vm11 = vcmp.eq.s32.totalorder %v5365_v7, %v3251_v21 }
 0x6b3   :  { %4368 = vmatprep.subr.mxu0 %v6367_v57  ;;  %v3253_v33 = vsel %vm3252_vm11, 1.0, %v6367_v57 }
 0x6b4   :  { %4369 = vmatpush3.msra.mxu0 %v5957_v32  ;;  %v2638_v32 = vld [vmem:[%s6354_s5 + $0x98] sm:$0xff] }
 0x6b5   :  { %4370 = vmatprep.subr.mxu0 %v6367_v57  ;;  %4396 = vmatpush3.msra.mxu1 %v2638_v32 }
 0x6b6   :  { %4371 = vmatpush3.msra.mxu0 %v5969_v6  ;;  %v2637_v6 = vld [vmem:[%s6354_s5 + $0x90] sm:$0xff]  ;;  %4397 = vmatprep.subr.mxu1 %v6367_v57 }
 0x6b7   :  { %4372 = vmatprep.subr.mxu0 %v6367_v57  ;;  %4398 = vmatpush3.msra.mxu1 %v2637_v6 }
 0x6b8   :  { %4373 = vmatpush3.msra.mxu0 %v5977_v51  ;;  %v2636_v51 = vld [vmem:[%s6354_s5 + $0x88] sm:$0xff]  ;;  %4399 = vmatprep.subr.mxu1 %v6367_v57 }
 0x6b9   :  { %4374 = vmatprep.subr.mxu0 %v6367_v57  ;;  %4400 = vmatpush3.msra.mxu1 %v2636_v51 }
 0x6ba   :  { %4375 = vmatpush3.msra.mxu0 %v5989_v8  ;;  %4401 = vmatprep.subr.mxu1 %v6367_v57  ;;  %v2635_v8 = vld [vmem:[%s6354_s5 + $0x80] sm:$0xff] }
 0x6bb   :  { %4376 = vmatprep.subr.mxu0 %v6367_v57  ;;  %4402 = vmatpush3.msra.mxu1 %v2635_v8  ;;  %v3594_v8 = vld [vmem:[%s6361_s12] sm:$0xff] }
 0x6bc   :  { %4377 = vmatpush3.msra.mxu0 %v5997_v47  ;;  %4406 = vmatprep.subr.mxu1 %v6367_v57 }
 0x6bd   :  { %4378 = vmatprep.subr.mxu0 %v6367_v57 }
 0x6be   :  { %4379 = vmatpush3.msra.mxu0 %v6004_v36 }
 0x6bf   :  { %4380 = vmatprep.subr.mxu0 %v6367_v57 }
 0x6c0   :  { %4381 = vmatpush3.msra.mxu0 %v6015_v59  ;;  %v3405_v59 = vld [vmem:[%s6356_s7 + $0x18] sm:$0xff] }
 0x6c1   :  { %4382 = vmatprep.subr.mxu0 %v6367_v57 }
 0x6c2   :  { %4383 = vmatpush3.msra.mxu0 %v6022_v43 }
 0x6c3   :  { %4384 = vmatprep.subr.mxu0 %v6367_v57 }
 0x6c4   :  { %4385 = vmatpush3.msra.mxu0 %v6030_v5  ;;  %v3402_v5 = vld [vmem:[%s6356_s7] sm:$0xff] }
 0x6c5   :  { %4386 = vmatprep.subr.mxu0 %v6367_v57 }
 0x6c6   :  { %4387 = vmatpush3.msra.mxu0 %v6037_v34 }
 0x6c7   :  { %4388 = vmatprep.subr.mxu0 %v6367_v57 }
 0x6c8   :  { %4389 = vmatpush3.msra.mxu0 %v6045_v28 }
 0x6c9   :  { %4390 = vmatprep.subr.mxu0 %v6367_v57 }
 0x6ca   :  { %4391 = vmatpush3.msra.mxu0 %v6053_v53  ;;  %v3489_v53 = vld [vmem:[%s6358_s9 + $0x18] sm:$0xff] }
 0x6cb   :  { %4393 = vmatmul.mubr.msk.f32.vlgmr.msra.gmra.mxu0 %vm2650_vm1, %v3253_v33  ;;  %4428 = vmatprep.subr.mxu0 %v6367_v57 }
 0x6cc   :  { %4430 = vmatprep.mubr.msk.f32.mxu0 %vm4493_vm4, %v6367_v57 }
 0x76f   :  { %v3246_v47 = vpop.f32.mrf.mxu0 }
 0x770   :  { %v3250_v36 = vadd.f32 %v3246_v47, %v3100_v41 }
 0x771   :  { %v4363_v0 = vpop.f32.mrf.mxu0 }
 0x78b   :  { %v3323_v43 = vpop.f32.mrf.mxu0 }
 0x78c   :  { %4404 = vmatmul.mubr.msk.f32.vlgmr.msra.gmra.mxu1 %vm2296_vm2, %v3323_v43 }
 0x78d   :  { %v4394_v39 = vpop.f32.mrf.mxu0  ;;  %4407 = vmatpush3.msra.mxu1 %v3405_v59  ;;  %4414 = vmatprep.mubr.msk.f32.mxu1 %vm4493_vm4, %v6367_v57 }
 0x78e   :  { %4408 = vmatprep.subr.mxu1 %v6367_v57 }
 0x78f   :  { %4409 = vmatpush3.msra.mxu1 %v3404_v45 }
 0x790   :  { %4410 = vmatprep.subr.mxu1 %v6367_v57 }
 0x791   :  { %4411 = vmatpush3.msra.mxu1 %v3403_v11 }
 0x792   :  { %4412 = vmatprep.subr.mxu1 %v6367_v57 }
 0x793   :  { %4413 = vmatpush3.msra.mxu1 %v3402_v5 }
 0x794   :  { %4417 = vmatprep.subr.mxu1 %v6367_v57 }
 0x84c   :  { %v3396_v27 = vpop.f32.mrf.mxu1 }
 0x84d   :  { %v3400_v34 = vadd.f32 %v3396_v27, %v3250_v36  ;;  %v3569_v36 = vld [vmem:[%s6360_s11] sm:$0xff]  ;;  %s4494_s11 = smov [#allocation2]  }
 0x84e   :  { %v4405_v15 = vpop.f32.mrf.mxu1  ;;  %s3743_s12 = sshll.u32 %s4494_s11, 4  ;;  %s3744_s12 = int_to_ptr.vmem [resolvable:$true] %s3743_s12 }
 0x84f   :  { %v3401_v28 = vmax.f32 %v3400_v34, 0.0  ;;  %s4460_s20 = scalar_lea.vmem %s3744_s12, 16  ;;  %s4464_s22 = scalar_lea.vmem %s3744_s12, 32 }
 0x850   :  { %p4461_p0 = scmp.ne.s32.totalorder %s3744_s12, %s4460_s20  ;;  %p4465_p1 = scmp.lt.s32.totalorder %s3744_s12, %s3744_s12 }
 0x851   :  { %4415 = vmatmul.mubr.msk.f32.vlgmr.msra.gmra.mxu1 %vm2296_vm2, %v3401_v28  ;;  %4429 = vmatpush3.xpose.msk.msra.mxu0 %vm2296_vm2, %v3401_v28  ;;  %p4466_p2 = scmp.lt.s32.totalorder %s4464_s22, %s4460_s20 }
 0x852   :  { %4418 = vmatpush3.msra.mxu1 %v3489_v53  ;;  %4425 = vmatprep.mubr.msk.f32.mxu1 %vm4493_vm4, %v6367_v57 }
 0x853   :  { %4419 = vmatprep.subr.mxu1 %v6367_v57  ;;  %p4467_p3 = por %p4466_p2, %p4465_p1 }
 0x854   :  { %4420 = vmatpush3.msra.mxu1 %v3488_v37  ;;  %4431 = vmatmul.mubr.msk.f32.vlgmr.msra.gmra.mxu0 %vm2296_vm2, %v3401_v28 }
 0x855   :  { %4421 = vmatprep.subr.mxu1 %v6367_v57  ;;  %p4468_p4 = pnand %p4467_p3, %p4461_p0 }
 0x856   :  { %4422 = vmatpush3.msra.mxu1 %v3487_v50 }
 0x857   :  { %4423 = vmatprep.subr.mxu1 %v6367_v57 }
 0x858   :  { %4424 = vmatpush3.msra.mxu1 %v3486_v44 }
 0x859   :  { %4426 = vmatmul.mubr.msk.f32.vlgmr.msra.gmra.mxu1 %vm2296_vm2, %v3401_v28  ;;  %vm3729_vm2 = vcmp.eq.s32.totalorder %v5365_v7, 1 }
 0x911   :  { %v3482_v4 = vpop.f32.mrf.mxu1 }
 0x912   :  { %v3483_v20 = vadd.f32 %v3847_v16, %v3482_v4 }
 0x913   :  { %v4416_v42 = vpop.f32.mrf.mxu1 }
 0x914   :  { %3568 = vst.msk [vmem:[%s6363_s14] sm:$0xff] %vm3567_vm9, %v3483_v20  ;;  %v3686_v18 = vpop.f32.mrf.mxu0  ;;  %v3570_v55 = vsel %vm3567_vm9, %v3483_v20, -inf }
 0x915   :  { %v3691_v2 = vmul.f32 14.285714, %v3686_v18 }
 0x916   :  { %v4432_v57 = vpop.f32.mrf.mxu0 }
 0x917   :  { %v3693_v40 = vsel %vm3692_vm12, %v3691_v2, -inf }
 0x918   :  { %3694 = vmax.xlane.f32.xlu0 %v3693_v40 }
 0x919   :  { %v3563_v23 = vpop.f32.mrf.mxu1 }
 0x91a   :  { %v3564_v49 = vadd.f32 %v3849_v54, %v3563_v23 }
 0x91b   :  { %v4427_v26 = vpop.f32.mrf.mxu1 }
 0x91c   :  { %3571 = vmax.xlane.f32.xlu0 %v3570_v55  ;;  %v3596_v60 = vsel %vm3595_vm13, %v3564_v49, -inf }
 0x91d   :  { %3597 = vmax.xlane.f32.xlu1 %v3596_v60 }
 0x9a1   :  { %v3695_v35 = vpop.xlane.xlu0 %3694 }
 0x9a2   :  { %v3696_v46 = vsub.f32 %v3691_v2, %v3695_v35 }
 0x9a4   :  { %v3701_v12 = vmul.f32 1.442695, %v3696_v46 }
 0x9a5   :  { %v3572_v22 = vpop.xlane.xlu0 %3571 }
 0x9a6   :  { %4446 = vpow2.f32 %v3701_v12  ;;  %v3573_v1 = vsub.f32 %v3483_v20, %v3572_v22  ;;  %v3598_v56 = vpop.xlane.xlu1 %3597 }
 0x9a7   :  { %v3599_v17 = vsub.f32 %v3564_v49, %v3598_v56 }
 0x9a8   :  { %v3574_v52 = vmul.f32 1.442695, %v3573_v1 }
 0x9a9   :  { %v3600_v13 = vmul.f32 1.442695, %v3599_v17 }
 0x9aa   :  { %4448 = vpow2.f32 %v3574_v52 }
 0x9ab   :  { %4450 = vpow2.f32 %v3600_v13 }
 0x9b3   :  { %v4447_v31 = vpop.eup %4446 }
 0x9b4   :  { %v3703_v14 = vmul.f32 %v4447_v31, %v3698_v25 }
 0x9b6   :  { %v3704_v58 = vsel %vm3692_vm12, %v3703_v14, 0.0 }
 0x9b7   :  { %v4449_v10 = vpop.eup %4448  ;;  %3705 = vadd.xlane.f32.xlu0 %v3704_v58 }
 0x9b8   :  { %v4451_v24 = vpop.eup %4450  ;;  %v3576_v38 = vsel %vm3567_vm9, %v4449_v10, 0.0 }
 0x9b9   :  { %v3602_v61 = vsel %vm3595_vm13, %v4451_v24, 0.0 }
 0x9ba   :  { %3603 = vadd.xlane.f32.xlu1 %v3602_v61 }
 0x9bb   :  { %3577 = vadd.xlane.f32.xlu0 %v3576_v38 }
 0x9be   :  { %3711 = vadd.xlane.f32.xlu1 %v3710_v48 }
 0xa40   :  { %v3706_v62 = vpop.xlane.xlu0 %3705 }
 0xa41   :  { %4452 = vlog2.f32 %v3706_v62 }
 0xa43   :  { %v3604_v3 = vpop.xlane.xlu1 %3603 }
 0xa44   :  { %4454 = vlog2.f32 %v3604_v3  ;;  %v3578_v41 = vpop.xlane.xlu0 %3577 }
 0xa45   :  { %4456 = vlog2.f32 %v3578_v41 }
 0xa47   :  { %v3712_v5 = vpop.xlane.xlu1 %3711 }
 0xa48   :  { %v3713_v27 = vmax.f32 %v3712_v5, 1.0 }
 0xa4a   :  { %4458 = vrcp.f32 %v3713_v27 }
 0xa4e   :  { %v4453_v19 = vpop.eup %4452 }
 0xa4f   :  { %v3708_v9 = vmul.f32 0.6931472, %v4453_v19 }
 0xa51   :  { %v4455_v29 = vpop.eup %4454  ;;  %v3709_v21 = vsub.f32 %v3696_v46, %v3708_v9 }
 0xa52   :  { %v4457_v33 = vpop.eup %4456  ;;  %v3606_v32 = vmul.f32 0.6931472, %v4455_v29 }
 0xa53   :  { %v3580_v6 = vmul.f32 0.6931472, %v4457_v33  ;;  %v3714_v51 = vmul.f32 %v3709_v21, %v3700_v63 }
 0xa54   :  { %v3607_v47 = vsub.f32 %v3599_v17, %v3606_v32 }
 0xa55   :  { %v3715_v0 = vsel %vm3692_vm12, %v3714_v51, 0.0  ;;  %v3581_v59 = vsub.f32 %v3573_v1, %v3580_v6 }
 0xa56   :  { %3716 = vadd.xlane.f32.xlu0 %v3715_v0  ;;  %v3608_v43 = vmul.f32 %v3607_v47, %v3594_v8 }
 0xa57   :  { %v3582_v45 = vmul.f32 %v3581_v59, %v3569_v36  ;;  %v4459_v34 = vpop.eup %4458 }
 0xa58   :  { %v3609_v39 = vsel %vm3595_vm13, %v3608_v43, 0.0 }
 0xa59   :  { %3610 = vadd.xlane.f32.xlu1 %v3609_v39  ;;  %v3583_v11 = vsel %vm3567_vm9, %v3582_v45, 0.0 }
 0xa5a   :  { %3584 = vadd.xlane.f32.xlu0 %v3583_v11 }
 0xadf   :  { %v3717_v15 = vpop.xlane.xlu0 %3716 }
 0xae0   :  { %v3719_v28 = vmul.f32 %v4459_v34, %v3717_v15 }
 0xae2   :  { %v3720_v53 = vmul.f32 -1.0, %v3719_v28  ;;  %v3611_v37 = vpop.xlane.xlu1 %3610 }
 0xae3   :  { %v3612_v50 = vsub.f32 0.0, %v3611_v37  ;;  %v3585_v44 = vpop.xlane.xlu0 %3584 }
 0xae4   :  { %v3721_v16 = vrot.slane %v3720_v53, 4  ;;  %v3586_v4 = vsub.f32 0.0, %v3585_v44 }
 0xae5   :  { %v3613_v20 = vrot.slane %v3612_v50, 4 }
 0xae6   :  { %v3722_v42 = vadd.f32 %v3721_v16, %v3720_v53  ;;  %v3587_v18 = vrot.slane %v3586_v4, 4 }
 0xae7   :  { %v3614_v2 = vadd.f32 %v3613_v20, %v3612_v50 }
 0xae8   :  { %v3723_v57 = vrot.slane %v3722_v42, 2  ;;  %v3588_v40 = vadd.f32 %v3587_v18, %v3586_v4 }
 0xae9   :  { %v3615_v54 = vrot.slane %v3614_v2, 2 }
 0xaea   :  { %v3724_v23 = vadd.f32 %v3723_v57, %v3722_v42  ;;  %v3589_v49 = vrot.slane %v3588_v40, 2 }
 0xaeb   :  { %v3616_v26 = vadd.f32 %v3615_v54, %v3614_v2 }
 0xaec   :  { %v3725_v55 = vrot.slane %v3724_v23, 1  ;;  %v3590_v60 = vadd.f32 %v3589_v49, %v3588_v40 }
 0xaed   :  { %v3617_v35 = vrot.slane %v3616_v26, 1 }
 0xaee   :  { %v3726_v46 = vadd.f32 %v3725_v55, %v3724_v23  ;;  %v3591_v12 = vrot.slane %v3590_v60, 1 }
 0xaef   :  { %v3618_v22 = vadd.f32 %v3617_v35, %v3616_v26 }
 0xaf0   :  { %v3727_v1 = vmul.f32 0.125, %v3726_v46  ;;  %v3592_v56 = vadd.f32 %v3591_v12, %v3590_v60 }
 0xaf1   :  { %v3619_v17 = vmul.f32 0.125, %v3618_v22 }
 0xaf2   :  { %v3593_v52 = vmul.f32 0.125, %v3592_v56  ;;  %v3731_v13 = vsel %vm3730_vm0, %v3727_v1, 0.0 }
 0xaf3   :  { %v3732_v25 = vsel %vm3729_vm2, %v3619_v17, %v3731_v13 }
 0xaf4   :  { %v3733_v31 = vsel %vm3728_vm10, %v3593_v52, %v3732_v25 }
 0xaf5   :  { %3734 = vst [vmem:[#allocation2] sm:$0x1] %v3733_v31 }
 0xaf6   :  { %4471 = shalt.err (!%p4468_p4)
}
 0xaf7   :  { %3746 = dma.vmem_to_hbm [thread:$0]  %s3744_s12, 16, %s6364_s15, [#allocation3]  }
 0xaf8   :  { %4480 = dma.done.wait [#allocation3], 16  }
 0xaf9   :  { %4481 = vsyncadd [#allocation3], 4294967280 }
 0xafa   :  { %3752 = vsyncpa [#allocation3], 1 }

</bundles_post_ra>
